<compile_context>
chip_gen: v7x
topology: tpu7x:2x2x1
jax: 0.10.0
libtpu: 0.0.40
codegen_flags: <defaults>
</compile_context>

<pallas_src>
import functools

import jax
import jax.numpy as jnp
from jax import lax
from jax.experimental import pallas as pl
from jax.experimental.pallas import tpu as pltpu

GN_EPS = 1e-5
GN_GROUPS = 32


def _gab_kernel(x_ref, gamma_ref, beta_ref, gmat_ref,
                wqT_ref, bq_ref, wkv_ref, bkv_ref,
                wg_ref, bg_ref, wp_ref, bp_ref,
                out_ref, *, heads, head_dim, groups, bblk):
    c = x_ref.shape[1]
    hw = x_ref.shape[2]
    g = c // groups
    ones_row = jnp.ones((1, hw), jnp.float32)

    for bi in range(bblk):                       # static unroll over the batch block
        x = x_ref[bi]                            # (C, HW) f32 -- skip connection

        # ---- GroupNorm(groups, C): true-f32 stats via lane reductions ----------
        chan_sum = jnp.sum(x, axis=-1, keepdims=True)                  # (C, 1)
        if g == 1:                                                     # groups == C
            gmean = chan_sum * (1.0 / hw)
        else:
            gmean = jnp.dot(gmat_ref[...], chan_sum,
                            precision=lax.Precision.HIGHEST,
                            preferred_element_type=jnp.float32) * (1.0 / (g * hw))
        xc = x - gmean
        sq_sum = jnp.sum(xc * xc, axis=-1, keepdims=True)              # (C, 1)
        if g == 1:
            gvar = sq_sum * (1.0 / hw)
        else:
            gvar = jnp.dot(gmat_ref[...], sq_sum,
                           precision=lax.Precision.HIGHEST,
                           preferred_element_type=jnp.float32) * (1.0 / (g * hw))
        scale_col = lax.rsqrt(gvar + GN_EPS) * gamma_ref[...]          # (C, 1)
        xn = xc * scale_col + beta_ref[...]                            # (C, HW) f32

        # ---- global feature: HW-mean of xn derived analytically from the stats --
        pooled = (chan_sum * (1.0 / hw) - gmean) * scale_col + beta_ref[...]   # (C, 1)
        gfeat = jnp.dot(wg_ref[...], pooled,
                        preferred_element_type=jnp.float32) + bg_ref[...]      # (C,1), 0.1 folded

        # ---- full-width Q and K/V matmuls (bf16 operands, f32 accumulation) -----
        xn_bf = xn.astype(jnp.bfloat16)
        xn_t_bf = jnp.transpose(xn).astype(jnp.bfloat16)               # (HW, C), one transpose
        q_full = jnp.dot(xn_t_bf, wqT_ref[...],
                         preferred_element_type=jnp.float32) + bq_ref[...]     # (HW, C), scale folded
        q_full_bf = q_full.astype(jnp.bfloat16)
        kv = jnp.dot(wkv_ref[...], xn_bf,
                     preferred_element_type=jnp.float32) + bkv_ref[...]        # (2C, HW)

        # ---- per-head attention (whole (HW,HW) logits tile fits VMEM at HW=256) --
        # TODO(synk): KV-tile (flash-style) the softmax if this block is reused at
        # spatial sizes where the (HW, HW) logits no longer fit VMEM (HW >~ 2K).
        head_outs = []
        for hi in range(heads):
            lo = hi * head_dim
            q_h = q_full_bf[:, lo:lo + head_dim]                        # (HW, hd)
            k_h = kv[lo:lo + head_dim, :].astype(jnp.bfloat16)          # (hd, HW)
            v_aug = jnp.concatenate(
                [kv[c + lo:c + lo + head_dim, :], ones_row],
                axis=0).astype(jnp.bfloat16)                            # (hd+1, HW)

            logits = jnp.dot(q_h, k_h, preferred_element_type=jnp.float32)   # (HW, HW)
            m = jnp.max(logits, axis=-1, keepdims=True)
            p_bf = jnp.exp(logits - m).astype(jnp.bfloat16)             # unnormalized

            # one NT matmul -> PV product and (via the ones row) the softmax denom
            o_aug = lax.dot_general(v_aug, p_bf, (((1,), (1,)), ((), ())),
                                    preferred_element_type=jnp.float32)  # (hd+1, HW)
            dinv = pl.reciprocal(o_aug[head_dim:head_dim + 1, :], approx=True)
            head_outs.append(o_aug[:head_dim, :] * dinv)                # (hd, HW)

        o_all_bf = jnp.concatenate(head_outs, axis=0).astype(jnp.bfloat16)   # (C, HW)
        y = jnp.dot(wp_ref[...], o_all_bf, preferred_element_type=jnp.float32)

        # ---- proj bias + global residual (0.1 pre-folded) + skip -----------------
        out_ref[bi] = y + bp_ref[...] + gfeat + x


def global_attention_block(x_nchw, params, heads, *, batch_block=1):
    """Pallas implementation of GlobalAttentionBlock.forward (NCHW f32 in/out)."""
    b, c, h, w = x_nchw.shape
    hw = h * w
    hd = c // heads
    assert c % GN_GROUPS == 0 and c % heads == 0 and b % batch_block == 0

    x_flat = x_nchw.reshape(b, c, hw)            # native NCHW flatten -- no transpose

    f32 = jnp.float32
    scale = float(hd) ** -0.5
    wqkv = params["Wqkv"].astype(f32)            # (3C, C), rows = output channel
    bqkv = params["bqkv"].astype(f32)

    # Q path (token-major): fold attn_scale into W and b.
    wqT = (wqkv[0:c] * scale).T.astype(jnp.bfloat16)                  # (Cin, Cout)
    bq_row = (bqkv[0:c] * scale).reshape(1, c)
    # K/V path (channel-major).  The K bias is constant along the key axis and
    # cancels under softmax, so it is zeroed (the global_k*0.1 key bias is
    # dropped entirely for the same reason).
    wkv = jnp.concatenate([wqkv[c:2 * c], wqkv[2 * c:3 * c]], axis=0).astype(jnp.bfloat16)
    bkv_col = jnp.concatenate([jnp.zeros((c,), f32),
                               bqkv[2 * c:3 * c]]).reshape(2 * c, 1)

    wp = params["Wp"].astype(jnp.bfloat16)                            # (Cout, Cin)
    bp_col = params["bp"].reshape(c, 1).astype(f32)
    wg01 = (params["Wg"] * 0.1).astype(f32)                           # 0.1 residual folded in
    bg01_col = (params["bg"] * 0.1).reshape(c, 1).astype(f32)
    gamma_col = params["gamma"].reshape(c, 1).astype(f32)
    beta_col = params["beta"].reshape(c, 1).astype(f32)

    g = c // GN_GROUPS
    grp = jnp.arange(c) // g
    gmat = (grp[:, None] == grp[None, :]).astype(f32)                 # used only if g > 1

    kern = functools.partial(_gab_kernel, heads=heads, head_dim=hd,
                             groups=GN_GROUPS, bblk=batch_block)

    def const_spec(shape):
        n = len(shape)
        return pl.BlockSpec(shape, lambda i, _n=n: (0,) * _n)

    out = pl.pallas_call(
        kern,
        out_shape=jax.ShapeDtypeStruct((b, c, hw), f32),
        grid=(b // batch_block,),
        in_specs=[
            pl.BlockSpec((batch_block, c, hw), lambda i: (i, 0, 0)),  # x
            const_spec((c, 1)), const_spec((c, 1)),                   # gamma, beta
            const_spec((c, c)),                                       # group indicator
            const_spec((c, c)), const_spec((1, c)),                   # WqT, bq (scaled)
            const_spec((2 * c, c)), const_spec((2 * c, 1)),           # Wkv, bkv
            const_spec((c, c)), const_spec((c, 1)),                   # 0.1*Wg, 0.1*bg
            const_spec((c, c)), const_spec((c, 1)),                   # Wp, bp
        ],
        out_specs=pl.BlockSpec((batch_block, c, hw), lambda i: (i, 0, 0)),
        # v7x: batch blocks shard across the two TensorCores; keep batch_block=1
        # when B is small/even.  On single-TC v5e/v6e a larger batch_block
        # amortizes the ~0.35us per-grid-step overhead.
        compiler_params=pltpu.CompilerParams(dimension_semantics=("parallel",)),
    )(x_flat, gamma_col, beta_col, gmat,
      wqT, bq_row, wkv, bkv_col, wg01, bg01_col, wp, bp_col)

    return out.reshape(b, c, h, w)


def reference_forward(x, params, heads):
    """Pure-JAX f32 mirror of the PyTorch forward (NCHW), including the
    softmax-invariant k-bias / global_k terms, for validation."""
    b, c, h, w = x.shape
    g = c // GN_GROUPS
    skip = x
    xr = x.reshape(b, GN_GROUPS, g, h, w)
    mean = xr.mean(axis=(2, 3, 4), keepdims=True)
    var = ((xr - mean) ** 2).mean(axis=(2, 3, 4), keepdims=True)
    xn = ((xr - mean) / jnp.sqrt(var + GN_EPS)).reshape(b, c, h, w)
    xn = xn * params["gamma"][None, :, None, None] + params["beta"][None, :, None, None]

    gfeat = xn.mean(axis=(2, 3), keepdims=True)                       # (B,C,1,1)
    gfeat = jnp.einsum("oc,bcij->boij", params["Wg"], gfeat) + params["bg"][None, :, None, None]

    qkv = jnp.einsum("oc,bchw->bohw", params["Wqkv"], xn) + params["bqkv"][None, :, None, None]
    q, k, v = jnp.split(qkv, 3, axis=1)
    hd = c // heads
    scale = hd ** (-0.5)
    q = q.reshape(b, heads, hd, h * w).transpose(0, 1, 3, 2)
    k = k.reshape(b, heads, hd, h * w)
    v = v.reshape(b, heads, hd, h * w).transpose(0, 1, 3, 2)
    gk = gfeat.reshape(b, heads, hd, 1)
    k = k + gk * 0.1
    attn = jnp.einsum("bhqd,bhdk->bhqk", q, k) * scale
    attn = jax.nn.softmax(attn, axis=-1)
    xo = jnp.einsum("bhqk,bhkd->bhqd", attn, v)
    xo = xo.transpose(0, 1, 3, 2).reshape(b, c, h, w)
    xo = jnp.einsum("oc,bchw->bohw", params["Wp"], xo) + params["bp"][None, :, None, None]
    xo = xo + gfeat * 0.1
    return xo + skip


if __name__ == "__main__":
    B, C, H, W, HEADS = 2, 32, 16, 16, 4    # GroupNorm(32, C) requires C % 32 == 0

    key = jax.random.PRNGKey(0)
    ks = jax.random.split(key, 9)
    x = jax.random.normal(ks[0], (B, C, H, W), jnp.float32)
    params = {
        "gamma": 1.0 + 0.1 * jax.random.normal(ks[1], (C,), jnp.float32),
        "beta": 0.1 * jax.random.normal(ks[2], (C,), jnp.float32),
        "Wqkv": 0.1 * jax.random.normal(ks[3], (3 * C, C), jnp.float32),
        "bqkv": 0.1 * jax.random.normal(ks[4], (3 * C,), jnp.float32),
        "Wp": 0.1 * jax.random.normal(ks[5], (C, C), jnp.float32),
        "bp": 0.1 * jax.random.normal(ks[6], (C,), jnp.float32),
        "Wg": 0.1 * jax.random.normal(ks[7], (C, C), jnp.float32),
        "bg": 0.1 * jax.random.normal(ks[8], (C,), jnp.float32),
    }

    out = jax.block_until_ready(global_attention_block(x, params, HEADS))
    ref = jax.block_until_ready(reference_forward(x, params, HEADS))

    assert out.shape == (B, C, H, W)
    # bf16 MXU operands + approx reciprocal -> loose-ish tolerance; GroupNorm
    # stats are exact f32 so the error budget is all in the attention path.
    err = float(jnp.max(jnp.abs(out - ref)))
    assert jnp.allclose(out, ref, atol=3e-2, rtol=3e-2), err
    print("KERNEL_OK")
</pallas_src>

<mosaic_0001>
module attributes {stable_mosaic.version = 11 : i64} {
  func.func @_gab_kernel(%arg0: i32, %arg1: memref<1x32x256xf32, #tpu.memory_space<vmem>>, %arg2: memref<32x1xf32, #tpu.memory_space<vmem>>, %arg3: memref<32x1xf32, #tpu.memory_space<vmem>>, %arg4: memref<32x32xf32, #tpu.memory_space<vmem>>, %arg5: memref<32x32xbf16, #tpu.memory_space<vmem>>, %arg6: memref<1x32xf32, #tpu.memory_space<vmem>>, %arg7: memref<64x32xbf16, #tpu.memory_space<vmem>>, %arg8: memref<64x1xf32, #tpu.memory_space<vmem>>, %arg9: memref<32x32xf32, #tpu.memory_space<vmem>>, %arg10: memref<32x1xf32, #tpu.memory_space<vmem>>, %arg11: memref<32x32xbf16, #tpu.memory_space<vmem>>, %arg12: memref<32x1xf32, #tpu.memory_space<vmem>>, %arg13: memref<1x32x256xf32, #tpu.memory_space<vmem>>) attributes {dimension_semantics = [#tpu.dimension_semantics<parallel>], iteration_bounds = array<i64: 2>, scalar_prefetch = 0 : i64, scratch_operands = 0 : i64, tpu.core_type = #tpu.core_type<tc>, window_params = [{transform_indices = @transform_0, window_bounds = array<i64: 1, 32, 256>}, {pipeline_mode = #tpu.pipeline_mode<synchronous>, transform_indices = @transform_1, window_bounds = array<i64: 32, 1>}, {pipeline_mode = #tpu.pipeline_mode<synchronous>, transform_indices = @transform_2, window_bounds = array<i64: 32, 1>}, {pipeline_mode = #tpu.pipeline_mode<synchronous>, transform_indices = @transform_3, window_bounds = array<i64: 32, 32>}, {pipeline_mode = #tpu.pipeline_mode<synchronous>, transform_indices = @transform_4, window_bounds = array<i64: 32, 32>}, {pipeline_mode = #tpu.pipeline_mode<synchronous>, transform_indices = @transform_5, window_bounds = array<i64: 1, 32>}, {pipeline_mode = #tpu.pipeline_mode<synchronous>, transform_indices = @transform_6, window_bounds = array<i64: 64, 32>}, {pipeline_mode = #tpu.pipeline_mode<synchronous>, transform_indices = @transform_7, window_bounds = array<i64: 64, 1>}, {pipeline_mode = #tpu.pipeline_mode<synchronous>, transform_indices = @transform_8, window_bounds = array<i64: 32, 32>}, {pipeline_mode = #tpu.pipeline_mode<synchronous>, transform_indices = @transform_9, window_bounds = array<i64: 32, 1>}, {pipeline_mode = #tpu.pipeline_mode<synchronous>, transform_indices = @transform_10, window_bounds = array<i64: 32, 32>}, {pipeline_mode = #tpu.pipeline_mode<synchronous>, transform_indices = @transform_11, window_bounds = array<i64: 32, 1>}, {transform_indices = @transform_12, window_bounds = array<i64: 1, 32, 256>}]} {
    %cst = arith.constant 1.000000e+00 : f32
    %0 = vector.broadcast %cst : f32 to vector<1x256xf32>
    %c0 = arith.constant 0 : index
    %c0_0 = arith.constant 0 : index
    %c0_1 = arith.constant 0 : index
    %1 = vector.load %arg1[%c0, %c0_0, %c0_1] : memref<1x32x256xf32, #tpu.memory_space<vmem>>, vector<1x32x256xf32>
    %2 = vector.shape_cast %1 : vector<1x32x256xf32> to vector<32x256xf32>
    %cst_2 = arith.constant dense<0.000000e+00> : vector<32xf32>
    %3 = vector.multi_reduction <add>, %2, %cst_2 [1] : vector<32x256xf32> to vector<32xf32>
    %4 = vector.shape_cast %3 : vector<32xf32> to vector<32x1xf32>
    %cst_3 = arith.constant 3.906250e-03 : f32
    %5 = vector.broadcast %cst_3 : f32 to vector<32x1xf32>
    %6 = arith.mulf %4, %5 : vector<32x1xf32>
    %7 = vector.broadcast %6 : vector<32x1xf32> to vector<32x256xf32>
    %8 = arith.subf %2, %7 : vector<32x256xf32>
    %9 = arith.mulf %8, %8 : vector<32x256xf32>
    %cst_4 = arith.constant dense<0.000000e+00> : vector<32xf32>
    %10 = vector.multi_reduction <add>, %9, %cst_4 [1] : vector<32x256xf32> to vector<32xf32>
    %11 = vector.shape_cast %10 : vector<32xf32> to vector<32x1xf32>
    %cst_5 = arith.constant 3.906250e-03 : f32
    %12 = vector.broadcast %cst_5 : f32 to vector<32x1xf32>
    %13 = arith.mulf %11, %12 : vector<32x1xf32>
    %cst_6 = arith.constant 9.99999974E-6 : f32
    %14 = vector.broadcast %cst_6 : f32 to vector<32x1xf32>
    %15 = arith.addf %13, %14 : vector<32x1xf32>
    %16 = math.rsqrt %15 : vector<32x1xf32>
    %c0_7 = arith.constant 0 : index
    %c0_8 = arith.constant 0 : index
    %17 = vector.load %arg2[%c0_7, %c0_8] : memref<32x1xf32, #tpu.memory_space<vmem>>, vector<32x1xf32>
    %18 = arith.mulf %16, %17 : vector<32x1xf32>
    %19 = vector.broadcast %18 : vector<32x1xf32> to vector<32x256xf32>
    %20 = arith.mulf %8, %19 : vector<32x256xf32>
    %c0_9 = arith.constant 0 : index
    %c0_10 = arith.constant 0 : index
    %21 = vector.load %arg3[%c0_9, %c0_10] : memref<32x1xf32, #tpu.memory_space<vmem>>, vector<32x1xf32>
    %22 = vector.broadcast %21 : vector<32x1xf32> to vector<32x256xf32>
    %23 = arith.addf %20, %22 : vector<32x256xf32>
    %cst_11 = arith.constant 3.906250e-03 : f32
    %24 = vector.broadcast %cst_11 : f32 to vector<32x1xf32>
    %25 = arith.mulf %4, %24 : vector<32x1xf32>
    %26 = arith.subf %25, %6 : vector<32x1xf32>
    %27 = arith.mulf %26, %18 : vector<32x1xf32>
    %c0_12 = arith.constant 0 : index
    %c0_13 = arith.constant 0 : index
    %28 = vector.load %arg3[%c0_12, %c0_13] : memref<32x1xf32, #tpu.memory_space<vmem>>, vector<32x1xf32>
    %29 = arith.addf %27, %28 : vector<32x1xf32>
    %c0_14 = arith.constant 0 : index
    %c0_15 = arith.constant 0 : index
    %30 = vector.load %arg9[%c0_14, %c0_15] : memref<32x32xf32, #tpu.memory_space<vmem>>, vector<32x32xf32>
    %cst_16 = arith.constant dense<0.000000e+00> : vector<32x1xf32>
    %31 = tpu.matmul %30, %29, %cst_16 {dimension_numbers = #tpu.dot_dimension_numbers<[1], [0], [0], [1], [0, 0, 1, 1], [], []>} : vector<32x32xf32>, vector<32x1xf32>, vector<32x1xf32> -> vector<32x1xf32>
    %c0_17 = arith.constant 0 : index
    %c0_18 = arith.constant 0 : index
    %32 = vector.load %arg10[%c0_17, %c0_18] : memref<32x1xf32, #tpu.memory_space<vmem>>, vector<32x1xf32>
    %33 = arith.addf %31, %32 : vector<32x1xf32>
    %34 = arith.truncf %23 : vector<32x256xf32> to vector<32x256xbf16>
    %35 = tpu.transpose %23, [1, 0] : vector<32x256xf32> -> vector<256x32xf32>
    %36 = arith.truncf %35 : vector<256x32xf32> to vector<256x32xbf16>
    %c0_19 = arith.constant 0 : index
    %c0_20 = arith.constant 0 : index
    %37 = vector.load %arg5[%c0_19, %c0_20] : memref<32x32xbf16, #tpu.memory_space<vmem>>, vector<32x32xbf16>
    %cst_21 = arith.constant dense<0.000000e+00> : vector<256x32xf32>
    %38 = tpu.matmul %36, %37, %cst_21 {dimension_numbers = #tpu.dot_dimension_numbers<[1], [0], [0], [1], [0, 0, 1, 1], [], []>} : vector<256x32xbf16>, vector<32x32xbf16>, vector<256x32xf32> -> vector<256x32xf32>
    %c0_22 = arith.constant 0 : index
    %c0_23 = arith.constant 0 : index
    %39 = vector.load %arg6[%c0_22, %c0_23] : memref<1x32xf32, #tpu.memory_space<vmem>>, vector<1x32xf32>
    %40 = vector.broadcast %39 : vector<1x32xf32> to vector<256x32xf32>
    %41 = arith.addf %38, %40 : vector<256x32xf32>
    %42 = arith.truncf %41 : vector<256x32xf32> to vector<256x32xbf16>
    %c0_24 = arith.constant 0 : index
    %c0_25 = arith.constant 0 : index
    %43 = vector.load %arg7[%c0_24, %c0_25] : memref<64x32xbf16, #tpu.memory_space<vmem>>, vector<64x32xbf16>
    %cst_26 = arith.constant dense<0.000000e+00> : vector<64x256xf32>
    %44 = tpu.matmul %43, %34, %cst_26 {dimension_numbers = #tpu.dot_dimension_numbers<[1], [0], [0], [1], [0, 0, 1, 1], [], []>} : vector<64x32xbf16>, vector<32x256xbf16>, vector<64x256xf32> -> vector<64x256xf32>
    %c0_27 = arith.constant 0 : index
    %c0_28 = arith.constant 0 : index
    %45 = vector.load %arg8[%c0_27, %c0_28] : memref<64x1xf32, #tpu.memory_space<vmem>>, vector<64x1xf32>
    %46 = vector.broadcast %45 : vector<64x1xf32> to vector<64x256xf32>
    %47 = arith.addf %44, %46 : vector<64x256xf32>
    %48 = vector.extract_strided_slice %42 {offsets = [0, 0], sizes = [256, 8], strides = [1, 1]} : vector<256x32xbf16> to vector<256x8xbf16>
    %49 = vector.extract_strided_slice %47 {offsets = [0, 0], sizes = [8, 256], strides = [1, 1]} : vector<64x256xf32> to vector<8x256xf32>
    %50 = arith.truncf %49 : vector<8x256xf32> to vector<8x256xbf16>
    %51 = vector.extract_strided_slice %47 {offsets = [32, 0], sizes = [8, 256], strides = [1, 1]} : vector<64x256xf32> to vector<8x256xf32>
    %52 = tpu.concatenate %51, %0 in 0 : vector<8x256xf32>, vector<1x256xf32> -> vector<9x256xf32>
    %53 = arith.truncf %52 : vector<9x256xf32> to vector<9x256xbf16>
    %cst_29 = arith.constant dense<0.000000e+00> : vector<256x256xf32>
    %54 = tpu.matmul %48, %50, %cst_29 {dimension_numbers = #tpu.dot_dimension_numbers<[1], [0], [0], [1], [0, 0, 1, 1], [], []>} : vector<256x8xbf16>, vector<8x256xbf16>, vector<256x256xf32> -> vector<256x256xf32>
    %cst_30 = arith.constant dense<0xFF800000> : vector<256xf32>
    %55 = vector.multi_reduction <maximumf>, %54, %cst_30 [1] : vector<256x256xf32> to vector<256xf32>
    %56 = vector.shape_cast %55 : vector<256xf32> to vector<256x1xf32>
    %57 = vector.broadcast %56 : vector<256x1xf32> to vector<256x256xf32>
    %58 = arith.subf %54, %57 : vector<256x256xf32>
    %59 = math.exp %58 : vector<256x256xf32>
    %60 = arith.truncf %59 : vector<256x256xf32> to vector<256x256xbf16>
    %cst_31 = arith.constant dense<0.000000e+00> : vector<9x256xf32>
    %61 = tpu.matmul %53, %60, %cst_31 {dimension_numbers = #tpu.dot_dimension_numbers<[1], [1], [0], [0], [0, 0, 1, 0], [], []>} : vector<9x256xbf16>, vector<256x256xbf16>, vector<9x256xf32> -> vector<9x256xf32>
    %62 = vector.extract_strided_slice %61 {offsets = [8, 0], sizes = [1, 256], strides = [1, 1]} : vector<9x256xf32> to vector<1x256xf32>
    %63 = tpu.reciprocal %62 {approx = true} : vector<1x256xf32> -> vector<1x256xf32>
    %64 = vector.extract_strided_slice %61 {offsets = [0, 0], sizes = [8, 256], strides = [1, 1]} : vector<9x256xf32> to vector<8x256xf32>
    %65 = vector.broadcast %63 : vector<1x256xf32> to vector<8x256xf32>
    %66 = arith.mulf %64, %65 : vector<8x256xf32>
    %67 = vector.extract_strided_slice %42 {offsets = [0, 8], sizes = [256, 8], strides = [1, 1]} : vector<256x32xbf16> to vector<256x8xbf16>
    %68 = vector.extract_strided_slice %47 {offsets = [8, 0], sizes = [8, 256], strides = [1, 1]} : vector<64x256xf32> to vector<8x256xf32>
    %69 = arith.truncf %68 : vector<8x256xf32> to vector<8x256xbf16>
    %70 = vector.extract_strided_slice %47 {offsets = [40, 0], sizes = [8, 256], strides = [1, 1]} : vector<64x256xf32> to vector<8x256xf32>
    %71 = tpu.concatenate %70, %0 in 0 : vector<8x256xf32>, vector<1x256xf32> -> vector<9x256xf32>
    %72 = arith.truncf %71 : vector<9x256xf32> to vector<9x256xbf16>
    %cst_32 = arith.constant dense<0.000000e+00> : vector<256x256xf32>
    %73 = tpu.matmul %67, %69, %cst_32 {dimension_numbers = #tpu.dot_dimension_numbers<[1], [0], [0], [1], [0, 0, 1, 1], [], []>} : vector<256x8xbf16>, vector<8x256xbf16>, vector<256x256xf32> -> vector<256x256xf32>
    %cst_33 = arith.constant dense<0xFF800000> : vector<256xf32>
    %74 = vector.multi_reduction <maximumf>, %73, %cst_33 [1] : vector<256x256xf32> to vector<256xf32>
    %75 = vector.shape_cast %74 : vector<256xf32> to vector<256x1xf32>
    %76 = vector.broadcast %75 : vector<256x1xf32> to vector<256x256xf32>
    %77 = arith.subf %73, %76 : vector<256x256xf32>
    %78 = math.exp %77 : vector<256x256xf32>
    %79 = arith.truncf %78 : vector<256x256xf32> to vector<256x256xbf16>
    %cst_34 = arith.constant dense<0.000000e+00> : vector<9x256xf32>
    %80 = tpu.matmul %72, %79, %cst_34 {dimension_numbers = #tpu.dot_dimension_numbers<[1], [1], [0], [0], [0, 0, 1, 0], [], []>} : vector<9x256xbf16>, vector<256x256xbf16>, vector<9x256xf32> -> vector<9x256xf32>
    %81 = vector.extract_strided_slice %80 {offsets = [8, 0], sizes = [1, 256], strides = [1, 1]} : vector<9x256xf32> to vector<1x256xf32>
    %82 = tpu.reciprocal %81 {approx = true} : vector<1x256xf32> -> vector<1x256xf32>
    %83 = vector.extract_strided_slice %80 {offsets = [0, 0], sizes = [8, 256], strides = [1, 1]} : vector<9x256xf32> to vector<8x256xf32>
    %84 = vector.broadcast %82 : vector<1x256xf32> to vector<8x256xf32>
    %85 = arith.mulf %83, %84 : vector<8x256xf32>
    %86 = vector.extract_strided_slice %42 {offsets = [0, 16], sizes = [256, 8], strides = [1, 1]} : vector<256x32xbf16> to vector<256x8xbf16>
    %87 = vector.extract_strided_slice %47 {offsets = [16, 0], sizes = [8, 256], strides = [1, 1]} : vector<64x256xf32> to vector<8x256xf32>
    %88 = arith.truncf %87 : vector<8x256xf32> to vector<8x256xbf16>
    %89 = vector.extract_strided_slice %47 {offsets = [48, 0], sizes = [8, 256], strides = [1, 1]} : vector<64x256xf32> to vector<8x256xf32>
    %90 = tpu.concatenate %89, %0 in 0 : vector<8x256xf32>, vector<1x256xf32> -> vector<9x256xf32>
    %91 = arith.truncf %90 : vector<9x256xf32> to vector<9x256xbf16>
    %cst_35 = arith.constant dense<0.000000e+00> : vector<256x256xf32>
    %92 = tpu.matmul %86, %88, %cst_35 {dimension_numbers = #tpu.dot_dimension_numbers<[1], [0], [0], [1], [0, 0, 1, 1], [], []>} : vector<256x8xbf16>, vector<8x256xbf16>, vector<256x256xf32> -> vector<256x256xf32>
    %cst_36 = arith.constant dense<0xFF800000> : vector<256xf32>
    %93 = vector.multi_reduction <maximumf>, %92, %cst_36 [1] : vector<256x256xf32> to vector<256xf32>
    %94 = vector.shape_cast %93 : vector<256xf32> to vector<256x1xf32>
    %95 = vector.broadcast %94 : vector<256x1xf32> to vector<256x256xf32>
    %96 = arith.subf %92, %95 : vector<256x256xf32>
    %97 = math.exp %96 : vector<256x256xf32>
    %98 = arith.truncf %97 : vector<256x256xf32> to vector<256x256xbf16>
    %cst_37 = arith.constant dense<0.000000e+00> : vector<9x256xf32>
    %99 = tpu.matmul %91, %98, %cst_37 {dimension_numbers = #tpu.dot_dimension_numbers<[1], [1], [0], [0], [0, 0, 1, 0], [], []>} : vector<9x256xbf16>, vector<256x256xbf16>, vector<9x256xf32> -> vector<9x256xf32>
    %100 = vector.extract_strided_slice %99 {offsets = [8, 0], sizes = [1, 256], strides = [1, 1]} : vector<9x256xf32> to vector<1x256xf32>
    %101 = tpu.reciprocal %100 {approx = true} : vector<1x256xf32> -> vector<1x256xf32>
    %102 = vector.extract_strided_slice %99 {offsets = [0, 0], sizes = [8, 256], strides = [1, 1]} : vector<9x256xf32> to vector<8x256xf32>
    %103 = vector.broadcast %101 : vector<1x256xf32> to vector<8x256xf32>
    %104 = arith.mulf %102, %103 : vector<8x256xf32>
    %105 = vector.extract_strided_slice %42 {offsets = [0, 24], sizes = [256, 8], strides = [1, 1]} : vector<256x32xbf16> to vector<256x8xbf16>
    %106 = vector.extract_strided_slice %47 {offsets = [24, 0], sizes = [8, 256], strides = [1, 1]} : vector<64x256xf32> to vector<8x256xf32>
    %107 = arith.truncf %106 : vector<8x256xf32> to vector<8x256xbf16>
    %108 = vector.extract_strided_slice %47 {offsets = [56, 0], sizes = [8, 256], strides = [1, 1]} : vector<64x256xf32> to vector<8x256xf32>
    %109 = tpu.concatenate %108, %0 in 0 : vector<8x256xf32>, vector<1x256xf32> -> vector<9x256xf32>
    %110 = arith.truncf %109 : vector<9x256xf32> to vector<9x256xbf16>
    %cst_38 = arith.constant dense<0.000000e+00> : vector<256x256xf32>
    %111 = tpu.matmul %105, %107, %cst_38 {dimension_numbers = #tpu.dot_dimension_numbers<[1], [0], [0], [1], [0, 0, 1, 1], [], []>} : vector<256x8xbf16>, vector<8x256xbf16>, vector<256x256xf32> -> vector<256x256xf32>
    %cst_39 = arith.constant dense<0xFF800000> : vector<256xf32>
    %112 = vector.multi_reduction <maximumf>, %111, %cst_39 [1] : vector<256x256xf32> to vector<256xf32>
    %113 = vector.shape_cast %112 : vector<256xf32> to vector<256x1xf32>
    %114 = vector.broadcast %113 : vector<256x1xf32> to vector<256x256xf32>
    %115 = arith.subf %111, %114 : vector<256x256xf32>
    %116 = math.exp %115 : vector<256x256xf32>
    %117 = arith.truncf %116 : vector<256x256xf32> to vector<256x256xbf16>
    %cst_40 = arith.constant dense<0.000000e+00> : vector<9x256xf32>
    %118 = tpu.matmul %110, %117, %cst_40 {dimension_numbers = #tpu.dot_dimension_numbers<[1], [1], [0], [0], [0, 0, 1, 0], [], []>} : vector<9x256xbf16>, vector<256x256xbf16>, vector<9x256xf32> -> vector<9x256xf32>
    %119 = vector.extract_strided_slice %118 {offsets = [8, 0], sizes = [1, 256], strides = [1, 1]} : vector<9x256xf32> to vector<1x256xf32>
    %120 = tpu.reciprocal %119 {approx = true} : vector<1x256xf32> -> vector<1x256xf32>
    %121 = vector.extract_strided_slice %118 {offsets = [0, 0], sizes = [8, 256], strides = [1, 1]} : vector<9x256xf32> to vector<8x256xf32>
    %122 = vector.broadcast %120 : vector<1x256xf32> to vector<8x256xf32>
    %123 = arith.mulf %121, %122 : vector<8x256xf32>
    %124 = tpu.concatenate %66, %85, %104, %123 in 0 : vector<8x256xf32>, vector<8x256xf32>, vector<8x256xf32>, vector<8x256xf32> -> vector<32x256xf32>
    %125 = arith.truncf %124 : vector<32x256xf32> to vector<32x256xbf16>
    %c0_41 = arith.constant 0 : index
    %c0_42 = arith.constant 0 : index
    %126 = vector.load %arg11[%c0_41, %c0_42] : memref<32x32xbf16, #tpu.memory_space<vmem>>, vector<32x32xbf16>
    %cst_43 = arith.constant dense<0.000000e+00> : vector<32x256xf32>
    %127 = tpu.matmul %126, %125, %cst_43 {dimension_numbers = #tpu.dot_dimension_numbers<[1], [0], [0], [1], [0, 0, 1, 1], [], []>} : vector<32x32xbf16>, vector<32x256xbf16>, vector<32x256xf32> -> vector<32x256xf32>
    %c0_44 = arith.constant 0 : index
    %c0_45 = arith.constant 0 : index
    %128 = vector.load %arg12[%c0_44, %c0_45] : memref<32x1xf32, #tpu.memory_space<vmem>>, vector<32x1xf32>
    %129 = vector.broadcast %128 : vector<32x1xf32> to vector<32x256xf32>
    %130 = arith.addf %127, %129 : vector<32x256xf32>
    %131 = vector.broadcast %33 : vector<32x1xf32> to vector<32x256xf32>
    %132 = arith.addf %130, %131 : vector<32x256xf32>
    %133 = arith.addf %132, %2 : vector<32x256xf32>
    %c0_46 = arith.constant 0 : index
    %c0_47 = arith.constant 0 : index
    %c0_48 = arith.constant 0 : index
    %134 = vector.load %arg13[%c0_46, %c0_47, %c0_48] : memref<1x32x256xf32, #tpu.memory_space<vmem>>, vector<1x32x256xf32>
    %135 = vector.shape_cast %134 : vector<1x32x256xf32> to vector<32x256xf32>
    %136 = vector.shape_cast %133 : vector<32x256xf32> to vector<1x32x256xf32>
    tpu.vector_store %arg13[%c0_46, %c0_47, %c0_48], %136 {strides = array<i32>} : memref<1x32x256xf32, #tpu.memory_space<vmem>>, vector<1x32x256xf32>,
    return
  }
  func.func @transform_0(%arg0: i32) -> (i32, i32, i32) {
    %c0_i32 = arith.constant 0 : i32
    %c0_i32_0 = arith.constant 0 : i32
    %c0_i32_1 = arith.constant 0 : i32
    return %arg0, %c0_i32, %c0_i32_0 : i32, i32, i32
  }
  func.func @transform_1(%arg0: i32) -> (i32, i32) {
    %c0_i32 = arith.constant 0 : i32
    %c0_i32_0 = arith.constant 0 : i32
    %c0_i32_1 = arith.constant 0 : i32
    return %c0_i32, %c0_i32_0 : i32, i32
  }
  func.func @transform_2(%arg0: i32) -> (i32, i32) {
    %c0_i32 = arith.constant 0 : i32
    %c0_i32_0 = arith.constant 0 : i32
    %c0_i32_1 = arith.constant 0 : i32
    return %c0_i32, %c0_i32_0 : i32, i32
  }
  func.func @transform_3(%arg0: i32) -> (i32, i32) {
    %c0_i32 = arith.constant 0 : i32
    %c0_i32_0 = arith.constant 0 : i32
    %c0_i32_1 = arith.constant 0 : i32
    return %c0_i32, %c0_i32_0 : i32, i32
  }
  func.func @transform_4(%arg0: i32) -> (i32, i32) {
    %c0_i32 = arith.constant 0 : i32
    %c0_i32_0 = arith.constant 0 : i32
    %c0_i32_1 = arith.constant 0 : i32
    return %c0_i32, %c0_i32_0 : i32, i32
  }
  func.func @transform_5(%arg0: i32) -> (i32, i32) {
    %c0_i32 = arith.constant 0 : i32
    %c0_i32_0 = arith.constant 0 : i32
    %c0_i32_1 = arith.constant 0 : i32
    return %c0_i32, %c0_i32_0 : i32, i32
  }
  func.func @transform_6(%arg0: i32) -> (i32, i32) {
    %c0_i32 = arith.constant 0 : i32
    %c0_i32_0 = arith.constant 0 : i32
    %c0_i32_1 = arith.constant 0 : i32
    return %c0_i32, %c0_i32_0 : i32, i32
  }
  func.func @transform_7(%arg0: i32) -> (i32, i32) {
    %c0_i32 = arith.constant 0 : i32
    %c0_i32_0 = arith.constant 0 : i32
    %c0_i32_1 = arith.constant 0 : i32
    return %c0_i32, %c0_i32_0 : i32, i32
  }
  func.func @transform_8(%arg0: i32) -> (i32, i32) {
    %c0_i32 = arith.constant 0 : i32
    %c0_i32_0 = arith.constant 0 : i32
    %c0_i32_1 = arith.constant 0 : i32
    return %c0_i32, %c0_i32_0 : i32, i32
  }
  func.func @transform_9(%arg0: i32) -> (i32, i32) {
    %c0_i32 = arith.constant 0 : i32
    %c0_i32_0 = arith.constant 0 : i32
    %c0_i32_1 = arith.constant 0 : i32
    return %c0_i32, %c0_i32_0 : i32, i32
  }
  func.func @transform_10(%arg0: i32) -> (i32, i32) {
    %c0_i32 = arith.constant 0 : i32
    %c0_i32_0 = arith.constant 0 : i32
    %c0_i32_1 = arith.constant 0 : i32
    return %c0_i32, %c0_i32_0 : i32, i32
  }
  func.func @transform_11(%arg0: i32) -> (i32, i32) {
    %c0_i32 = arith.constant 0 : i32
    %c0_i32_0 = arith.constant 0 : i32
    %c0_i32_1 = arith.constant 0 : i32
    return %c0_i32, %c0_i32_0 : i32, i32
  }
  func.func @transform_12(%arg0: i32) -> (i32, i32, i32) {
    %c0_i32 = arith.constant 0 : i32
    %c0_i32_0 = arith.constant 0 : i32
    %c0_i32_1 = arith.constant 0 : i32
    return %arg0, %c0_i32, %c0_i32_0 : i32, i32, i32
  }
}

</mosaic_0001>

<bundles_post_ra>
// kernel: tpu_custom_call.1
= control target key start
LH: loop header
LB: loop body
LE: loop exit
PB: predicated region body
PF: predicated region fallthrough
CT: control target
= control target key end

     0   :  { %17 = vsyncpa [#allocation3], 0  ;;  %s6713_s0 = inlined_call_operand.vmem [shape: f32[2,32,256], index: 0, kind: input, shape index: {}]   ;;  %s6714_s1 = inlined_call_operand.vmem [shape: f32[32,1], index: 1, kind: input, shape index: {}]   ;;  %s6715_s2 = inlined_call_operand.vmem [shape: f32[32,1], index: 2, kind: input, shape index: {}]   ;;  %s6716_s3 = inlined_call_operand.vmem [shape: f32[32,32], index: 3, kind: input, shape index: {}]   ;;  %s6717_s4 = inlined_call_operand.vmem [shape: bf16[32,32], index: 4, kind: input, shape index: {}]   ;;  %s6718_s5 = inlined_call_operand.vmem [shape: f32[1,32], index: 5, kind: input, shape index: {}]   ;;  %s6719_s6 = inlined_call_operand.vmem [shape: bf16[64,32], index: 6, kind: input, shape index: {}]   ;;  %s6720_s7 = inlined_call_operand.vmem [shape: f32[64,1], index: 7, kind: input, shape index: {}]   ;;  %s6721_s8 = inlined_call_operand.vmem [shape: f32[32,32], index: 8, kind: input, shape index: {}]   ;;  %s6722_s9 = inlined_call_operand.vmem [shape: f32[32,1], index: 9, kind: input, shape index: {}]   ;;  %s6723_s10 = inlined_call_operand.vmem [shape: bf16[32,32], index: 10, kind: input, shape index: {}]   ;;  %s6724_s11 = inlined_call_operand.vmem [shape: f32[32,1], index: 11, kind: input, shape index: {}]   ;;  %s6725_s12 = inlined_call_operand.hbm [shape: f32[2,32,256], index: 12, kind: output, shape index: {}]  }
   0x1   :  { %19 = vsyncpa [#allocation3 + $0x1], 0  ;;  %s4934_s20 = smov 0   ;;  %s4936_s21 = smov 0  }
   0x2   :  { %s4938_s22 = smov 0   ;;  %s4940_s23 = smov 0  }
   0x3 LB: > { %s4955_s24 = sadd.s32 4294967295, %s4859_s23   ;;  %s3995_s25 = sadd.s32 4294967294, %s4859_s23   ;;  %s4859_s23 = sphi %s4940_s23, %s7092_s23   ;;  %s4855_s22 = sphi %s4938_s22, %s7091_s22   ;;  %s4851_s21 = sphi %s4936_s21, %s7090_s21   ;;  %s4847_s20 = sphi %s4934_s20, %s7089_s20  }
   0x4   : > { %s4959_s26 = sadd.s32 1, %s4859_s23   ;;  %s289_s27 = sadd.s32 1, %s4855_s22 }
   0x5   : > { %s286_s28 = ssub.s32 %s4859_s23, %s4959_s26  ;;  %p299_p0 = scmp.ne.s32.totalorder %s4855_s22, %s4851_s21 }
   0x6   : > { %p287_p1 = scmp.eq.s32.totalorder %s286_s28, 0  ;;  %p300_p2 = scmp.eq.s32.totalorder %s4955_s24, 1 }
   0x7   : > { %p305_p3 = scmp.ne.s32.totalorder %s4851_s21, %s4847_s20  ;;  %p306_p4 = scmp.eq.s32.totalorder %s3995_s25, 1 }
   0x8   : > { %s4970_s29 = scalar_select %p287_p1, %s4855_s22, %s289_s27  }
   0x9   : > { %p4972_p5 = por %p300_p2, %p299_p0  ;;  %p4976_p6 = por %p306_p4, %p305_p3 }
   0xa   : > { %p3998_p7 = scmp.ge.s32.totalorder %s4859_s23, 1  ;;  %p365_p8 = scmp.lt.s32.totalorder %s4859_s23, 3 }
   0xc   : > { %p366_p9 = pnand %p3998_p7, %p365_p8 }
   0xe   : > { %369 = sbr.rel (%p366_p9) target bundleno = 3457 (0xd81), region = 68 }
  0x15   : > { %p407_p10 = scmp.lt.s32.totalorder %s4955_s24, 1  ;;  %v6726_v40 = vmov 0   ;;  %v513_v41 = vld [vmem:[%s6715_s2] sm:$0xff]  ;;  %v514_v42 = vld [vmem:[%s6715_s2 + $0x8] sm:$0xff]  ;;  %v515_v43 = vld [vmem:[%s6715_s2 + $0x10] sm:$0xff]  ;;  %vm565_vm0 = vcmask 261120  }
  0x16   : > { %4244 = vset.pattern.permute.xlu1 %v6726_v40  ;;  %4243 = vset.pattern.permute.xlu0 %v6726_v40  ;;  %v477_v56 = vld [vmem:[%s6714_s1] sm:$0xff]  ;;  %v478_v59 = vld [vmem:[%s6714_s1 + $0x8] sm:$0xff]  ;;  %v479_v61 = vld [vmem:[%s6714_s1 + $0x10] sm:$0xff]  ;;  %vm1209_vm1 = vcmask 1043456   ;;  %vm1160_vm2 = vcmask 64512   ;;  %s4864_s25 = smov 112  }
  0x17   : > { %s408_s14 = scalar_select %p407_p10, %s4955_s24, 1 }
  0x18   : > { %s4865_s3 = smov 104   ;;  %s4111_s16 = sshll.u32 %s4955_s24, 10 }
  0x19   : > { %s4110_s15 = sshll.u32 %s408_s14, 6  ;;  %s404_s14 = sand.u32 1, %s4851_s21  }
  0x1a   : > { %s4987_s17 = scalar_lea.vmem %s6713_s0, %s4110_s15  ;;  %s4862_s15 = smov 120  }
  0x1b   : > { %v413_v0 = vld [vmem:[%s4987_s17] sm:$0xff]  ;;  %v414_v1 = vld [vmem:[%s4987_s17 + $0x8] sm:$0xff]  ;;  %v415_v5 = vld [vmem:[%s4987_s17 + $0x10] sm:$0xff]  ;;  %s6662_s27 = scalar_lea.hbm %s6725_s12, %s4111_s16  ;;  %s6672_s24 = scalar_lea.sflag [#allocation3], %s404_s14 }
  0x1c   : > { %v417_v2 = vld [vmem:[%s4987_s17 + $0x20] sm:$0xff]  ;;  %v421_v3 = vadd.f32 %v414_v1, %v413_v0  ;;  %v418_v4 = vld [vmem:[%s4987_s17 + $0x28] sm:$0xff]  ;;  %v416_v6 = vld [vmem:[%s4987_s17 + $0x18] sm:$0xff] }
  0x1d   : > { %v427_v7 = vadd.f32 %v418_v4, %v417_v2  ;;  %v419_v8 = vld [vmem:[%s4987_s17 + $0x30] sm:$0xff]  ;;  %v420_v9 = vld [vmem:[%s4987_s17 + $0x38] sm:$0xff]  ;;  %v424_v10 = vadd.f32 %v416_v6, %v415_v5 }
  0x1e   : > { %422 = vadd.xlane.f32.xlu0 %v421_v3  ;;  %v430_v11 = vadd.f32 %v420_v9, %v419_v8 }
  0x1f   : > { %428 = vadd.xlane.f32.xlu1 %v427_v7  ;;  %v557_v7 = vld [vmem:[%s6721_s8] sm:$0xff] }
  0x20   : > { %4146 = vmatprep.mubr.msk.f32.mxu0 %vm565_vm0, %v557_v7 }
  0x22   : > { %425 = vadd.xlane.f32.xlu0 %v424_v10 }
  0x23   : > { %431 = vadd.xlane.f32.xlu1 %v430_v11 }
  0xab   : > { %v423_v12 = vpop.xlane.xlu0 %422 }
  0xac   : > { %v4997_v13 = vmul.f32 0.00390625, %v423_v12  ;;  %v429_v14 = vpop.xlane.xlu1 %428 }
  0xad   : > { %v4999_v15 = vmul.f32 0.00390625, %v429_v14  ;;  %v516_v14 = vld [vmem:[%s6715_s2 + $0x18] sm:$0xff] }
  0xae   : > { %v5002_v16 = vsub.f32 %v413_v0, %v4997_v13  ;;  %v5005_v17 = vsub.f32 %v414_v1, %v4997_v13  ;;  %v545_v60 = vsub.f32 %v4997_v13, %v4997_v13 }
  0xaf   : > { %v426_v18 = vpop.xlane.xlu0 %425  ;;  %v5008_v19 = vsub.f32 %v417_v2, %v4999_v15  ;;  %v5011_v20 = vsub.f32 %v418_v4, %v4999_v15  ;;  %v480_v4 = vld [vmem:[%s6714_s1 + $0x18] sm:$0xff] }
  0xb0   : > { %v5013_v21 = vmul.f32 0.00390625, %v426_v18  ;;  %v432_v22 = vpop.xlane.xlu1 %431  ;;  %v445_v23 = vmul.f32 %v5002_v16, %v5002_v16  ;;  %v446_v24 = vmul.f32 %v5005_v17, %v5005_v17 }
  0xb1   : > { %v5019_v25 = vmul.f32 0.00390625, %v432_v22  ;;  %v449_v26 = vmul.f32 %v5008_v19, %v5008_v19  ;;  %v450_v27 = vmul.f32 %v5011_v20, %v5011_v20 }
  0xb2   : > { %v453_v28 = vadd.f32 %v446_v24, %v445_v23  ;;  %v5026_v29 = vsub.f32 %v415_v5, %v5013_v21  ;;  %v5029_v30 = vsub.f32 %v416_v6, %v5013_v21  ;;  %v546_v0 = vsub.f32 %v5013_v21, %v5013_v21  ;;  %v4245_v24 = vld [vmem:[%s6717_s4] sm:$0xff]  }
  0xb3   : > { %v5032_v31 = vsub.f32 %v419_v8, %v5019_v25  ;;  %v5035_v32 = vsub.f32 %v420_v9, %v5019_v25  ;;  %v459_v33 = vadd.f32 %v450_v27, %v449_v26  ;;  %v547_v5 = vsub.f32 %v4999_v15, %v4999_v15  ;;  %v4246_v26 = vld [vmem:[%s6717_s4 + $0x8] sm:$0xff]  }
  0xb4   : > { %454 = vadd.xlane.f32.xlu0 %v453_v28  ;;  %v447_v34 = vmul.f32 %v5026_v29, %v5026_v29  ;;  %v448_v35 = vmul.f32 %v5029_v30, %v5029_v30  ;;  %v548_v9 = vsub.f32 %v5019_v25, %v5019_v25  ;;  %v558_v25 = vld [vmem:[%s6721_s8 + $0x8] sm:$0xff] }
  0xb5   : > { %v451_v36 = vmul.f32 %v5032_v31, %v5032_v31  ;;  %v452_v37 = vmul.f32 %v5035_v32, %v5035_v32 }
  0xb6   : > { %v456_v38 = vadd.f32 %v448_v35, %v447_v34 }
  0xb7   : > { %v462_v39 = vadd.f32 %v452_v37, %v451_v36 }
  0xb8   : > { %460 = vadd.xlane.f32.xlu0 %v459_v33  ;;  %457 = vadd.xlane.f32.xlu1 %v456_v38 }
  0xbc   : > { %463 = vadd.xlane.f32.xlu1 %v462_v39 }
  0xcd   : > { %519 = vperm.xlu1 %4244, %v513_v41  }
  0xd1   : > { %524 = vperm.xlu1 %4244, %v514_v42  }
  0xd5   : > { %529 = vperm.xlu1 %4244, %v515_v43  }
 0x141   : > { %v455_v44 = vpop.xlane.xlu0 %454 }
 0x142   : > { %v465_v45 = vmul.f32 0.00390625, %v455_v44 }
 0x144   : > { %v469_v46 = vadd.f32 1e-05, %v465_v45 }
 0x145   : > { %v458_v47 = vpop.xlane.xlu1 %457  ;;  %v461_v48 = vpop.xlane.xlu0 %460 }
 0x146   : > { %4253 = vrsqrt.f32 %v469_v46  ;;  %v466_v49 = vmul.f32 0.00390625, %v458_v47  ;;  %v467_v50 = vmul.f32 0.00390625, %v461_v48 }
 0x148   : > { %v470_v51 = vadd.f32 1e-05, %v466_v49  ;;  %v471_v52 = vadd.f32 1e-05, %v467_v50 }
 0x149   : > { %v464_v53 = vpop.xlane.xlu1 %463 }
 0x14a   : > { %4255 = vrsqrt.f32 %v470_v51  ;;  %v468_v54 = vmul.f32 0.00390625, %v464_v53 }
 0x14b   : > { %4257 = vrsqrt.f32 %v471_v52 }
 0x14c   : > { %v472_v55 = vadd.f32 1e-05, %v468_v54 }
 0x14d   : > { %v520_v27 = vpop.permute.xlu1 %519 }
 0x14e   : > { %4259 = vrsqrt.f32 %v472_v55 }
 0x150   : > { %v4254_v57 = vpop.eup %4253 }
 0x151   : > { %v481_v58 = vmul.f32 %v4254_v57, %v477_v56  ;;  %v525_v28 = vpop.permute.xlu1 %524  ;;  %v1003_v56 = vld [vmem:[%s6720_s7] sm:$0xff] }
 0x153   : > { %487 = vperm.xlu0 %4243, %v481_v58   ;;  %v549_v1 = vmul.f32 %v545_v60, %v481_v58 }
 0x154   : > { %v4256_v62 = vpop.eup %4255 }
 0x155   : > { %v4258_v63 = vpop.eup %4257  ;;  %v482_v2 = vmul.f32 %v4256_v62, %v478_v59  ;;  %v553_v10 = vadd.f32 %v549_v1, %v513_v41  ;;  %v530_v33 = vpop.permute.xlu1 %529 }
 0x156   : > { %v483_v3 = vmul.f32 %v4258_v63, %v479_v61 }
 0x157   : > { %v550_v6 = vmul.f32 %v546_v0, %v482_v2  ;;  %492 = vperm.xlu1 %4244, %v482_v2  }
 0x158   : > { %v4260_v8 = vpop.eup %4259  ;;  %v551_v12 = vmul.f32 %v547_v5, %v483_v3 }
 0x159   : > { %v554_v11 = vadd.f32 %v550_v6, %v514_v42  ;;  %v484_v13 = vmul.f32 %v4260_v8, %v480_v4 }
 0x15a   : > { %v555_v21 = vadd.f32 %v551_v12, %v515_v43 }
 0x15b   : > { %497 = vperm.xlu1 %4244, %v483_v3   ;;  %v4188_v15 = vpack.c.bf16 %v554_v11, %v553_v10  ;;  %v552_v18 = vmul.f32 %v548_v9, %v484_v13 }
 0x15d   : > { %4189 = vmatprep.subr.bf16.mxu0 %v4188_v15  ;;  %v556_v22 = vadd.f32 %v552_v18, %v516_v14 }
 0x15e   : > { %4191 = vmatpush3.bf16.msra.mxu0 %v4188_v15 }
 0x15f   : > { %502 = vperm.xlu1 %4244, %v484_v13   ;;  %v4192_v23 = vpack.c.bf16 %v556_v22, %v555_v21 }
 0x161   : > { %4193 = vmatprep.subr.bf16.mxu0 %v4192_v23 }
 0x162   : > { %4195 = vmatpush3.bf16.msra.mxu0 %v4192_v23 }
 0x163   : > { %534 = vperm.xlu1 %4244, %v516_v14   ;;  %4152 = vmatprep.subr.bf16.mxu0 %v4245_v24 }
 0x165   : > { %4147 = vmatmul.mubr.msk.f32.vlgmr.msra.gmra.mrb[0].mxu0 %vm565_vm0, %v558_v25 }
 0x166   : > { %4153 = vmatpush3.bf16.msra.mxu0 %v4245_v24 }
 0x167   : > { %4154 = vmatprep.subr.bf16.mxu0 %v4246_v26 }
 0x16a   : > { %4155 = vmatpush3.bf16.msra.mxu0 %v4246_v26 }
 0x1d2   : > { %v488_v34 = vpop.permute.xlu0 %487 }
 0x1d3   : > { %v505_v35 = vmul.f32 %v488_v34, %v5002_v16  ;;  %v506_v36 = vmul.f32 %v488_v34, %v5005_v17 }
 0x1d5   : > { %v538_v37 = vadd.f32 %v520_v27, %v506_v36  ;;  %v537_v38 = vadd.f32 %v520_v27, %v505_v35 }
 0x1d6   : > { %v493_v39 = vpop.permute.xlu1 %492 }
 0x1d7   : > { %v507_v41 = vmul.f32 %v493_v39, %v5026_v29  ;;  %v508_v42 = vmul.f32 %v493_v39, %v5029_v30  ;;  %699 = vxpose.xlu0.b32.start [1/4] (short) %v538_v37, 128  ;;  %667 = vxpose.xlu1.b32.start [1/4] (short) %v537_v38, 128  ;;  %v559_v29 = vld [vmem:[%s6721_s8 + $0x10] sm:$0xff]  ;;  %v560_v30 = vld [vmem:[%s6721_s8 + $0x18] sm:$0xff] }
 0x1d8   : > { %4149 = vmatprep.mubr.msk.f32.mxu0 %vm565_vm0, %v559_v29  ;;  %v4248_v29 = vld [vmem:[%s6719_s6 + $0x8] sm:$0xff]  }
 0x1d9   : > { %v539_v43 = vadd.f32 %v525_v28, %v507_v41  ;;  %v540_v44 = vadd.f32 %v525_v28, %v508_v42  ;;  %4150 = vmatmul.mubr.msk.f32.gmra.mrb[2].mxu0 %vm565_vm0, %v560_v30  ;;  %v4249_v30 = vld [vmem:[%s6719_s6 + $0x10] sm:$0xff]  }
 0x1da   : > { %v498_v45 = vpop.permute.xlu1 %497 }
 0x1db   : > { %v663_v46 = vpack.c.bf16 %v539_v43, %v537_v38  ;;  %v509_v47 = vmul.f32 %v498_v45, %v5008_v19  ;;  %v510_v48 = vmul.f32 %v498_v45, %v5011_v20  ;;  %700 = vxpose.xlu0.b32.cont [2/4] (short) %v540_v44, 128  ;;  %668 = vxpose.xlu1.b32.cont [2/4] (short) %v539_v43, 128 }
 0x1dc   : > { %v664_v16 = vpack.c.bf16 %v540_v44, %v538_v37 }
 0x1dd   : > { %v541_v17 = vadd.f32 %v530_v33, %v509_v47  ;;  %v542_v49 = vadd.f32 %v530_v33, %v510_v48 }
 0x1de   : > { %1083 = vmatprep.subr.bf16.mxu0 %v664_v16  ;;  %v503_v50 = vpop.permute.xlu1 %502 }
 0x1df   : > { %701 = vxpose.xlu0.b32.cont [3/4] (short) %v542_v49, 128  ;;  %669 = vxpose.xlu1.b32.cont [3/4] (short) %v541_v17, 128  ;;  %v511_v19 = vmul.f32 %v503_v50, %v5032_v31  ;;  %v512_v20 = vmul.f32 %v503_v50, %v5035_v32  ;;  %v4247_v50 = vld [vmem:[%s6719_s6] sm:$0xff]  }
 0x1e2   : > { %v535_v51 = vpop.permute.xlu1 %534 }
 0x1e3   : > { %v543_v52 = vadd.f32 %v535_v51, %v511_v19  ;;  %v544_v53 = vadd.f32 %v535_v51, %v512_v20  ;;  %v4250_v19 = vld [vmem:[%s6719_s6 + $0x18] sm:$0xff]   ;;  %v5160_v51 = vld [vmem:[%s6718_s5] ss:$0 sm:$0xff] }
 0x1e5   : > { %v665_v54 = vpack.c.bf16 %v543_v52, %v541_v17  ;;  %702 = vxpose.xlu0.b32.end [4/4] (short) %v544_v53, 128  ;;  %670 = vxpose.xlu1.b32.end [4/4] (short) %v543_v52, 128  ;;  %v666_v55 = vpack.c.bf16 %v544_v53, %v542_v49 }
 0x238   : > { %v5112_v57 = vpop.f32.mrb[0].mxu0 }
 0x239   : > { %6839 = vst [vmem:[#allocation5_spill] sm:$0xff] %v5112_v57  ;;  %v5114_v58 = vpop.f32.mrb[1].mxu0 }
 0x23a   : > { %6840 = vst [vmem:[#allocation6_spill] sm:$0xff] %v5114_v58 }
 0x23e   : > { %1013 = vperm.xlu0 %4243, %v1003_v56  }
 0x259   : > { %v683_v31 = vpop.trf.xlu1  ;;  %v715_v32 = vpop.trf.xlu0 }
 0x25d   : > { %v684_v59 = vpop.trf.xlu1  ;;  %v716_v61 = vpop.trf.xlu0 }
 0x25e   : > { %v731_v60 = vpack.c.bf16 %v684_v59, %v683_v31  ;;  %v739_v36 = vpack.c.bf16 %v716_v61, %v715_v32 }
 0x260   : > { %4156 = vmatprep.mubr.msk.bf16.mxu0 %vm565_vm0, %v731_v60 }
 0x261   : > { %v685_v62 = vpop.trf.xlu1  ;;  %v717_v0 = vpop.trf.xlu0 }
 0x265   : > { %v686_v63 = vpop.trf.xlu1  ;;  %v718_v3 = vpop.trf.xlu0 }
 0x266   : > { %v732_v1 = vpack.c.bf16 %v686_v63, %v685_v62  ;;  %v740_v38 = vpack.c.bf16 %v718_v3, %v717_v0 }
 0x268   : > { %4157 = vmatmul.mubr.msk.bf16.vlgmr.msra.gmra.mrb[4].mxu0 %vm565_vm0, %v732_v1 }
 0x269   : > { %1084 = vmatpush1.bf16.msra.mxu0 %v663_v46  ;;  %v687_v2 = vpop.trf.xlu1  ;;  %v719_v7 = vpop.trf.xlu0 }
 0x26a   : > { %1085 = vmatprep.subr.bf16.mxu0 %v666_v55 }
 0x26d   : > { %1086 = vmatpush1.bf16.msra.mxu0 %v665_v54  ;;  %v688_v4 = vpop.trf.xlu1  ;;  %v720_v10 = vpop.trf.xlu0 }
 0x26e   : > { %v733_v5 = vpack.c.bf16 %v688_v4, %v687_v2  ;;  %v741_v39 = vpack.c.bf16 %v720_v10, %v719_v7 }
 0x270   : > { %4160 = vmatprep.mubr.msk.bf16.mxu0 %vm565_vm0, %v733_v5 }
 0x271   : > { %v689_v6 = vpop.trf.xlu1  ;;  %v721_v13 = vpop.trf.xlu0 }
 0x275   : > { %v690_v8 = vpop.trf.xlu1  ;;  %v722_v18 = vpop.trf.xlu0 }
 0x276   : > { %v734_v9 = vpack.c.bf16 %v690_v8, %v689_v6  ;;  %v742_v42 = vpack.c.bf16 %v722_v18, %v721_v13 }
 0x278   : > { %4161 = vmatmul.mubr.msk.bf16.gmra.mrb[8].mxu0 %vm565_vm0, %v734_v9 }
 0x279   : > { %v691_v11 = vpop.trf.xlu1  ;;  %v723_v24 = vpop.trf.xlu0 }
 0x27d   : > { %v692_v12 = vpop.trf.xlu1  ;;  %v724_v27 = vpop.trf.xlu0 }
 0x27e   : > { %v735_v14 = vpack.c.bf16 %v692_v12, %v691_v11  ;;  %v743_v43 = vpack.c.bf16 %v724_v27, %v723_v24 }
 0x280   : > { %4164 = vmatprep.mubr.msk.bf16.mxu0 %vm565_vm0, %v735_v14 }
 0x281   : > { %v693_v15 = vpop.trf.xlu1  ;;  %v725_v34 = vpop.trf.xlu0 }
 0x285   : > { %v694_v21 = vpop.trf.xlu1  ;;  %v726_v37 = vpop.trf.xlu0 }
 0x286   : > { %v736_v22 = vpack.c.bf16 %v694_v21, %v693_v15  ;;  %v744_v46 = vpack.c.bf16 %v726_v37, %v725_v34 }
 0x288   : > { %4165 = vmatmul.mubr.msk.bf16.gmra.mrb[12].mxu0 %vm565_vm0, %v736_v22 }
 0x289   : > { %v695_v23 = vpop.trf.xlu1  ;;  %v727_v41 = vpop.trf.xlu0 }
 0x28d   : > { %v696_v25 = vpop.trf.xlu1  ;;  %v728_v44 = vpop.trf.xlu0 }
 0x28e   : > { %v737_v26 = vpack.c.bf16 %v696_v25, %v695_v23  ;;  %v745_v47 = vpack.c.bf16 %v728_v44, %v727_v41 }
 0x290   : > { %4168 = vmatprep.mubr.msk.bf16.mxu0 %vm565_vm0, %v737_v26 }
 0x291   : > { %v697_v28 = vpop.trf.xlu1  ;;  %v729_v45 = vpop.trf.xlu0 }
 0x295   : > { %v698_v33 = vpop.trf.xlu1  ;;  %v730_v48 = vpop.trf.xlu0 }
 0x296   : > { %v738_v35 = vpack.c.bf16 %v698_v33, %v697_v28  ;;  %v746_v49 = vpack.c.bf16 %v730_v48, %v729_v45 }
 0x298   : > { %4169 = vmatmul.mubr.msk.bf16.gmra.mrb[16].mxu0 %vm565_vm0, %v738_v35 }
 0x299   : > { %4172 = vmatprep.mubr.msk.bf16.mxu0 %vm565_vm0, %v739_v36 }
 0x2a0   : > { %4173 = vmatmul.mubr.msk.bf16.gmra.mrb[20].mxu0 %vm565_vm0, %v740_v38 }
 0x2a1   : > { %4176 = vmatprep.mubr.msk.bf16.mxu0 %vm565_vm0, %v741_v39 }
 0x2a8   : > { %4177 = vmatmul.mubr.msk.bf16.gmra.mrb[24].mxu0 %vm565_vm0, %v742_v42 }
 0x2a9   : > { %4180 = vmatprep.mubr.msk.bf16.mxu0 %vm565_vm0, %v743_v43 }
 0x2ac   : > { %v5131_v16 = vpop.f32.mrb[2].mxu0 }
 0x2ad   : > { %6841 = vst [vmem:[#allocation7_spill] sm:$0xff] %v5131_v16  ;;  %v5133_v17 = vpop.f32.mrb[3].mxu0 }
 0x2ae   : > { %6842 = vst [vmem:[#allocation8_spill] sm:$0xff] %v5133_v17 }
 0x2b0   : > { %4181 = vmatmul.mubr.msk.bf16.gmra.mrb[28].mxu0 %vm565_vm0, %v744_v46 }
 0x2b1   : > { %4184 = vmatprep.mubr.msk.bf16.mxu0 %vm565_vm0, %v745_v47 }
 0x2b8   : > { %4185 = vmatmul.mubr.msk.bf16.gmra.mrb[32].mxu0 %vm565_vm0, %v746_v49 }
 0x2b9   : > { %1115 = vmatprep.mubr.bf16.mxu0 %v6726_v40 }
 0x2c0   : > { %4029 = vmatmul.mubr.msk.bf16.vlgmr.msra.gmra.mrb[36].mxu0 %vm565_vm0, %v4247_v50 }
 0x2c1   : > { %1125 = vmatprep.mubr.bf16.mxu0 %v6726_v40 }
 0x2c8   : > { %4030 = vmatmul.mubr.msk.bf16.gmra.mrb[40].mxu0 %vm565_vm0, %v4248_v29 }
 0x2c9   : > { %1135 = vmatprep.mubr.bf16.mxu0 %v6726_v40 }
 0x2d0   : > { %4031 = vmatmul.mubr.msk.bf16.gmra.mrb[44].mxu0 %vm565_vm0, %v4249_v30 }
 0x2d1   : > { %1145 = vmatprep.mubr.bf16.mxu0 %v6726_v40 }
 0x2d8   : > { %4032 = vmatmul.mubr.msk.bf16.gmra.mrb[48].mxu0 %vm565_vm0, %v4250_v19 }
 0x2d9   : > { %1248 = vmatprep.mubr.bf16.mxu0 %v6726_v40 }
 0x33b   : > { %v4158_v20 = vpop.f32.mrb[4].mxu0 }
 0x33c   : > { %v852_v52 = vpop.f32.mrb[5].mxu0  ;;  %v861_v54 = vadd.f32 %v4158_v20, %v5160_v51 }
 0x33d   : > { %v4159_v53 = vpop.f32.mrb[6].mxu0  ;;  %v853_v31 = vadd.f32 %v5160_v51, %v852_v52 }
 0x33e   : > { %v864_v55 = vadd.f32 %v4159_v53, %v5160_v51  ;;  %v855_v56 = vpop.f32.mrb[7].mxu0 }
 0x33f   : > { %v856_v32 = vadd.f32 %v5160_v51, %v855_v56 }
 0x340   : > { %v5166_v59 = vpack.c.bf16 %v864_v55, %v861_v54 }
 0x341   : > { %v5168_v60 = vpack.c.bf16 %v856_v32, %v853_v31 }
 0x343   : > { %6843 = vst [vmem:[#allocation9_spill] sm:$0xff] %v5168_v60 }
 0x34b   : > { %v4162_v61 = vpop.f32.mrb[8].mxu0 }
 0x34c   : > { %v868_v62 = vpop.f32.mrb[9].mxu0  ;;  %v877_v0 = vadd.f32 %v4162_v61, %v5160_v51 }
 0x34d   : > { %v4163_v63 = vpop.f32.mrb[10].mxu0  ;;  %v869_v3 = vadd.f32 %v5160_v51, %v868_v62 }
 0x34e   : > { %v880_v1 = vadd.f32 %v4163_v63, %v5160_v51  ;;  %v871_v2 = vpop.f32.mrb[11].mxu0 }
 0x34f   : > { %v872_v4 = vadd.f32 %v5160_v51, %v871_v2 }
 0x350   : > { %v5174_v5 = vpack.c.bf16 %v880_v1, %v877_v0 }
 0x351   : > { %v5176_v6 = vpack.c.bf16 %v872_v4, %v869_v3 }
 0x35b   : > { %v4166_v7 = vpop.f32.mrb[12].mxu0 }
 0x35c   : > { %v884_v8 = vpop.f32.mrb[13].mxu0  ;;  %v893_v10 = vadd.f32 %v4166_v7, %v5160_v51 }
 0x35d   : > { %v4167_v9 = vpop.f32.mrb[14].mxu0  ;;  %v885_v13 = vadd.f32 %v5160_v51, %v884_v8 }
 0x35e   : > { %v896_v11 = vadd.f32 %v4167_v9, %v5160_v51  ;;  %v887_v12 = vpop.f32.mrb[15].mxu0 }
 0x35f   : > { %v888_v14 = vadd.f32 %v5160_v51, %v887_v12 }
 0x360   : > { %v5182_v15 = vpack.c.bf16 %v896_v11, %v893_v10 }
 0x361   : > { %v5184_v18 = vpack.c.bf16 %v888_v14, %v885_v13  ;;  %v1014_v13 = vpop.permute.xlu0 %1013 }
 0x36b   : > { %v4170_v21 = vpop.f32.mrb[16].mxu0 }
 0x36c   : > { %v900_v22 = vpop.f32.mrb[17].mxu0  ;;  %v909_v24 = vadd.f32 %v4170_v21, %v5160_v51 }
 0x36d   : > { %v4171_v23 = vpop.f32.mrb[18].mxu0  ;;  %v901_v27 = vadd.f32 %v5160_v51, %v900_v22 }
 0x36e   : > { %v912_v25 = vadd.f32 %v4171_v23, %v5160_v51  ;;  %v903_v26 = vpop.f32.mrb[19].mxu0 }
 0x36f   : > { %v904_v28 = vadd.f32 %v5160_v51, %v903_v26 }
 0x370   : > { %v5190_v33 = vpack.c.bf16 %v912_v25, %v909_v24 }
 0x371   : > { %v5192_v34 = vpack.c.bf16 %v904_v28, %v901_v27 }
 0x373   : > { %v4174_v35 = vpop.f32.mrb[20].mxu0 }
 0x374   : > { %v916_v36 = vpop.f32.mrb[21].mxu0  ;;  %v925_v38 = vadd.f32 %v4174_v35, %v5160_v51 }
 0x375   : > { %v4175_v37 = vpop.f32.mrb[22].mxu0  ;;  %v917_v42 = vadd.f32 %v5160_v51, %v916_v36 }
 0x376   : > { %v928_v39 = vadd.f32 %v4175_v37, %v5160_v51  ;;  %v919_v41 = vpop.f32.mrb[23].mxu0 }
 0x377   : > { %v920_v43 = vadd.f32 %v5160_v51, %v919_v41 }
 0x378   : > { %v5198_v44 = vpack.c.bf16 %v928_v39, %v925_v38 }
 0x379   : > { %v5200_v45 = vpack.c.bf16 %v920_v43, %v917_v42 }
 0x37b   : > { %v4178_v46 = vpop.f32.mrb[24].mxu0 }
 0x37c   : > { %v932_v47 = vpop.f32.mrb[25].mxu0  ;;  %v941_v49 = vadd.f32 %v4178_v46, %v5160_v51 }
 0x37d   : > { %v4179_v48 = vpop.f32.mrb[26].mxu0  ;;  %v933_v30 = vadd.f32 %v5160_v51, %v932_v47 }
 0x37e   : > { %v944_v50 = vadd.f32 %v4179_v48, %v5160_v51  ;;  %v935_v29 = vpop.f32.mrb[27].mxu0 }
 0x37f   : > { %v936_v19 = vadd.f32 %v5160_v51, %v935_v29 }
 0x380   : > { %v5206_v20 = vpack.c.bf16 %v944_v50, %v941_v49 }
 0x381   : > { %v5208_v52 = vpack.c.bf16 %v936_v19, %v933_v30 }
 0x383   : > { %v4182_v53 = vpop.f32.mrb[28].mxu0 }
 0x384   : > { %v948_v54 = vpop.f32.mrb[29].mxu0  ;;  %v957_v56 = vadd.f32 %v4182_v53, %v5160_v51 }
 0x385   : > { %v4183_v55 = vpop.f32.mrb[30].mxu0  ;;  %v949_v61 = vadd.f32 %v5160_v51, %v948_v54 }
 0x386   : > { %v960_v31 = vadd.f32 %v4183_v55, %v5160_v51  ;;  %v951_v32 = vpop.f32.mrb[31].mxu0 }
 0x387   : > { %v952_v62 = vadd.f32 %v5160_v51, %v951_v32 }
 0x388   : > { %v5214_v63 = vpack.c.bf16 %v960_v31, %v957_v56 }
 0x389   : > { %v5216_v0 = vpack.c.bf16 %v952_v62, %v949_v61 }
 0x38b   : > { %v4186_v1 = vpop.f32.mrb[32].mxu0 }
 0x38c   : > { %v964_v2 = vpop.f32.mrb[33].mxu0  ;;  %v973_v4 = vadd.f32 %v4186_v1, %v5160_v51 }
 0x38d   : > { %v4187_v3 = vpop.f32.mrb[34].mxu0  ;;  %v965_v9 = vadd.f32 %v5160_v51, %v964_v2 }
 0x38e   : > { %v976_v7 = vadd.f32 %v4187_v3, %v5160_v51  ;;  %v967_v8 = vpop.f32.mrb[35].mxu0 }
 0x38f   : > { %v968_v10 = vadd.f32 %v5160_v51, %v967_v8 }
 0x390   : > { %v5222_v11 = vpack.c.bf16 %v976_v7, %v973_v4 }
 0x391   : > { %v5224_v12 = vpack.c.bf16 %v968_v10, %v965_v9 }
 0x393   : > { %v1117_v14 = vpop.f32.mrb[36].mxu0 }
 0x394   : > { %v1118_v21 = vadd.f32 %v1117_v14, %v1014_v13  ;;  %v1119_v22 = vpop.f32.mrb[37].mxu0 }
 0x395   : > { %v1120_v23 = vadd.f32 %v1119_v22, %v1014_v13  ;;  %v5226_v24 = vpop.f32.mrb[38].mxu0 }
 0x396   : > { %6844 = vst [vmem:[#allocation10_spill] sm:$0xff] %v5226_v24  ;;  %v1156_v25 = vpack.c.bf16 %v1118_v21, %v1118_v21  ;;  %v5228_v26 = vpop.f32.mrb[39].mxu0 }
 0x397   : > { %6845 = vst [vmem:[#allocation11_spill] sm:$0xff] %v5228_v26  ;;  %v1157_v27 = vpack.c.bf16 %v1120_v23, %v1120_v23 }
 0x398   : > { %v1211_v28 = vsel %vm1209_vm1, %v1156_v25, 0 }
 0x399   : > { %4033 = vmatprep.subr.msk.bf16.mxu0 %vm1209_vm1, %v1157_v27 }
 0x39a   : > { %1217 = vmatpush1.bf16.msra.mxu0 %v1211_v28 }
 0x39b   : > { %v5256_v51 = vpop.f32.mrb[40].mxu0 }
 0x39c   : > { %6846 = vst [vmem:[#allocation12_spill] sm:$0xff] %v5256_v51  ;;  %v5258_v35 = vpop.f32.mrb[41].mxu0 }
 0x39d   : > { %4034 = vmatmul.mubr.msk.bf16.vlgmr.msra.gmra.mrb[52].mxu0 %vm1160_vm2, %v5168_v60  ;;  %6847 = vst [vmem:[#allocation13_spill] sm:$0xff] %v5258_v35  ;;  %v5260_v36 = vpop.f32.mrb[42].mxu0 }
 0x39e   : > { %1258 = vmatprep.mubr.bf16.mxu0 %v6726_v40  ;;  %6848 = vst [vmem:[#allocation14_spill] sm:$0xff] %v5260_v36  ;;  %v5262_v37 = vpop.f32.mrb[43].mxu0 }
 0x39f   : > { %6849 = vst [vmem:[#allocation15_spill] sm:$0xff] %v5262_v37 }
 0x3a3   : > { %v5267_v38 = vpop.f32.mrb[44].mxu0 }
 0x3a4   : > { %6850 = vst [vmem:[#allocation16_spill] sm:$0xff] %v5267_v38  ;;  %v5269_v39 = vpop.f32.mrb[45].mxu0 }
 0x3a5   : > { %4035 = vmatmul.mubr.msk.bf16.gmra.mrb[56].mxu0 %vm1160_vm2, %v5166_v59  ;;  %6851 = vst [vmem:[#allocation17_spill] sm:$0xff] %v5269_v39  ;;  %v5271_v41 = vpop.f32.mrb[46].mxu0 }
 0x3a6   : > { %1268 = vmatprep.mubr.bf16.mxu0 %v6726_v40  ;;  %6852 = vst [vmem:[#allocation18_spill] sm:$0xff] %v5271_v41  ;;  %v5273_v42 = vpop.f32.mrb[47].mxu0 }
 0x3a7   : > { %6853 = vst [vmem:[#allocation19_spill] sm:$0xff] %v5273_v42 }
 0x3ab   : > { %v5278_v43 = vpop.f32.mrb[48].mxu0 }
 0x3ac   : > { %6854 = vst [vmem:[#allocation20_spill] sm:$0xff] %v5278_v43  ;;  %v5280_v46 = vpop.f32.mrb[49].mxu0 }
 0x3ad   : > { %4036 = vmatmul.mubr.msk.bf16.gmra.mrb[60].mxu0 %vm1160_vm2, %v5176_v6  ;;  %6855 = vst [vmem:[#allocation21_spill] sm:$0xff] %v5280_v46  ;;  %v5282_v47 = vpop.f32.mrb[50].mxu0 }
 0x3ae   : > { %1278 = vmatprep.mubr.bf16.mxu0 %v6726_v40  ;;  %6856 = vst [vmem:[#allocation22_spill] sm:$0xff] %v5282_v47  ;;  %v5284_v48 = vpop.f32.mrb[51].mxu0 }
 0x3af   : > { %6857 = vst [vmem:[#allocation23_spill] sm:$0xff] %v5284_v48 }
 0x3b5   : > { %4037 = vmatmul.mubr.msk.bf16.gmra.mrb[64].mxu0 %vm1160_vm2, %v5174_v5 }
 0x3b6   : > { %1288 = vmatprep.mubr.bf16.mxu0 %v6726_v40 }
 0x3bd   : > { %4038 = vmatmul.mubr.msk.bf16.gmra.mrb[68].mxu0 %vm1160_vm2, %v5184_v18 }
 0x3be   : > { %1298 = vmatprep.mubr.bf16.mxu0 %v6726_v40 }
 0x3c5   : > { %4039 = vmatmul.mubr.msk.bf16.gmra.mrb[72].mxu0 %vm1160_vm2, %v5182_v15 }
 0x3c6   : > { %1308 = vmatprep.mubr.bf16.mxu0 %v6726_v40 }
 0x3cd   : > { %4040 = vmatmul.mubr.msk.bf16.gmra.mrb[76].mxu0 %vm1160_vm2, %v5192_v34 }
 0x3ce   : > { %1318 = vmatprep.mubr.bf16.mxu0 %v6726_v40 }
 0x3d5   : > { %4041 = vmatmul.mubr.msk.bf16.gmra.mrb[80].mxu0 %vm1160_vm2, %v5190_v33 }
 0x3d6   : > { %1328 = vmatprep.mubr.bf16.mxu0 %v6726_v40 }
 0x3dd   : > { %4042 = vmatmul.mubr.msk.bf16.gmra.mrb[84].mxu0 %vm1160_vm2, %v5200_v45 }
 0x3de   : > { %1338 = vmatprep.mubr.bf16.mxu0 %v6726_v40 }
 0x3e5   : > { %4043 = vmatmul.mubr.msk.bf16.gmra.mrb[88].mxu0 %vm1160_vm2, %v5198_v44 }
 0x3e6   : > { %1348 = vmatprep.mubr.bf16.mxu0 %v6726_v40 }
 0x3ed   : > { %4044 = vmatmul.mubr.msk.bf16.gmra.mrb[92].mxu0 %vm1160_vm2, %v5208_v52 }
 0x3ee   : > { %1358 = vmatprep.mubr.bf16.mxu0 %v6726_v40 }
 0x3f5   : > { %4045 = vmatmul.mubr.msk.bf16.gmra.mrb[96].mxu0 %vm1160_vm2, %v5206_v20 }
 0x3f6   : > { %1368 = vmatprep.mubr.bf16.mxu0 %v6726_v40 }
 0x3fd   : > { %4046 = vmatmul.mubr.msk.bf16.gmra.mrb[100].mxu0 %vm1160_vm2, %v5216_v0 }
 0x3fe   : > { %1378 = vmatprep.mubr.bf16.mxu0 %v6726_v40 }
 0x405   : > { %4047 = vmatmul.mubr.msk.bf16.gmra.mrb[104].mxu0 %vm1160_vm2, %v5214_v63 }
 0x406   : > { %1388 = vmatprep.mubr.bf16.mxu0 %v6726_v40 }
 0x40d   : > { %4048 = vmatmul.mubr.msk.bf16.gmra.mrb[108].mxu0 %vm1160_vm2, %v5224_v12 }
 0x40e   : > { %1398 = vmatprep.mubr.bf16.mxu0 %v6726_v40 }
 0x415   : > { %4049 = vmatmul.mubr.msk.bf16.gmra.mrb[112].mxu0 %vm1160_vm2, %v5222_v11 }
 0x470   : > { %v5303_v49 = vpop.f32.mrb[52].mxu0 }
 0x471   : > { %v5305_v50 = vpop.f32.mrb[53].mxu0 }
 0x472   : > { %v5307_v29 = vpop.f32.mrb[54].mxu0  ;;  %v1409_v30 = vmax.f32 %v5303_v49, %v5305_v50 }
 0x473   : > { %v5311_v19 = vpop.f32.mrb[55].mxu0 }
 0x474   : > { %1410 = vmax.xlane.f32.xlu1 %v1409_v30  ;;  %v1412_v53 = vmax.f32 %v5307_v29, %v5311_v19 }
 0x476   : > { %1413 = vmax.xlane.f32.xlu0 %v1412_v53 }
 0x478   : > { %v5315_v54 = vpop.f32.mrb[56].mxu0 }
 0x479   : > { %v5317_v55 = vpop.f32.mrb[57].mxu0 }
 0x47a   : > { %v5319_v56 = vpop.f32.mrb[58].mxu0  ;;  %v1415_v31 = vmax.f32 %v5315_v54, %v5317_v55 }
 0x47b   : > { %v5323_v32 = vpop.f32.mrb[59].mxu0 }
 0x47c   : > { %1416 = vmax.xlane.f32.xlu1 %v1415_v31  ;;  %v1418_v61 = vmax.f32 %v5319_v56, %v5323_v32 }
 0x480   : > { %1419 = vmax.xlane.f32.xlu1 %v1418_v61  ;;  %v5327_v62 = vpop.f32.mrb[60].mxu0 }
 0x481   : > { %v5329_v1 = vpop.f32.mrb[61].mxu0 }
 0x482   : > { %v5331_v2 = vpop.f32.mrb[62].mxu0  ;;  %v1421_v3 = vmax.f32 %v5327_v62, %v5329_v1 }
 0x483   : > { %v5335_v4 = vpop.f32.mrb[63].mxu0 }
 0x484   : > { %1422 = vmax.xlane.f32.xlu1 %v1421_v3  ;;  %v1424_v7 = vmax.f32 %v5331_v2, %v5335_v4 }
 0x488   : > { %1425 = vmax.xlane.f32.xlu1 %v1424_v7  ;;  %v5339_v8 = vpop.f32.mrb[64].mxu0 }
 0x489   : > { %v5341_v9 = vpop.f32.mrb[65].mxu0 }
 0x48a   : > { %v5343_v10 = vpop.f32.mrb[66].mxu0  ;;  %v1427_v13 = vmax.f32 %v5339_v8, %v5341_v9 }
 0x48b   : > { %v5347_v14 = vpop.f32.mrb[67].mxu0 }
 0x48c   : > { %1428 = vmax.xlane.f32.xlu1 %v1427_v13  ;;  %v1430_v21 = vmax.f32 %v5343_v10, %v5347_v14 }
 0x490   : > { %1431 = vmax.xlane.f32.xlu1 %v1430_v21  ;;  %v5351_v22 = vpop.f32.mrb[68].mxu0 }
 0x491   : > { %v5353_v23 = vpop.f32.mrb[69].mxu0 }
 0x492   : > { %v5355_v25 = vpop.f32.mrb[70].mxu0  ;;  %v1433_v27 = vmax.f32 %v5351_v22, %v5353_v23 }
 0x493   : > { %v5359_v28 = vpop.f32.mrb[71].mxu0 }
 0x494   : > { %1434 = vmax.xlane.f32.xlu1 %v1433_v27  ;;  %v1436_v30 = vmax.f32 %v5355_v25, %v5359_v28 }
 0x496   : > { %1437 = vmax.xlane.f32.xlu0 %v1436_v30 }
 0x498   : > { %v5363_v53 = vpop.f32.mrb[72].mxu0 }
 0x499   : > { %v5365_v31 = vpop.f32.mrb[73].mxu0 }
 0x49a   : > { %v5367_v61 = vpop.f32.mrb[74].mxu0  ;;  %v1439_v3 = vmax.f32 %v5363_v53, %v5365_v31 }
 0x49b   : > { %v5371_v7 = vpop.f32.mrb[75].mxu0 }
 0x49c   : > { %1440 = vmax.xlane.f32.xlu1 %v1439_v3  ;;  %v1442_v13 = vmax.f32 %v5367_v61, %v5371_v7 }
 0x49e   : > { %1443 = vmax.xlane.f32.xlu0 %v1442_v13 }
 0x4a0   : > { %v5375_v21 = vpop.f32.mrb[76].mxu0 }
 0x4a1   : > { %v5377_v27 = vpop.f32.mrb[77].mxu0 }
 0x4a2   : > { %v5379_v30 = vpop.f32.mrb[78].mxu0  ;;  %v1445_v40 = vmax.f32 %v5375_v21, %v5377_v27 }
 0x4a3   : > { %v5383_v47 = vpop.f32.mrb[79].mxu0 }
 0x4a4   : > { %1446 = vmax.xlane.f32.xlu1 %v1445_v40  ;;  %v1448_v48 = vmax.f32 %v5379_v30, %v5383_v47 }
 0x4a6   : > { %1449 = vmax.xlane.f32.xlu0 %v1448_v48 }
 0x4a8   : > { %v5387_v3 = vpop.f32.mrb[80].mxu0 }
 0x4a9   : > { %v5389_v16 = vpop.f32.mrb[81].mxu0 }
 0x4aa   : > { %v5391_v13 = vpop.f32.mrb[82].mxu0  ;;  %v1451_v17 = vmax.f32 %v5387_v3, %v5389_v16 }
 0x4ab   : > { %v5395_v57 = vpop.f32.mrb[83].mxu0 }
 0x4ac   : > { %1452 = vmax.xlane.f32.xlu1 %v1451_v17  ;;  %v1454_v58 = vmax.f32 %v5391_v13, %v5395_v57 }
 0x4ae   : > { %1455 = vmax.xlane.f32.xlu0 %v1454_v58 }
 0x4b0   : > { %v5399_v40 = vpop.f32.mrb[84].mxu0 }
 0x4b1   : > { %v5401_v43 = vpop.f32.mrb[85].mxu0 }
 0x4b2   : > { %v5403_v48 = vpop.f32.mrb[86].mxu0  ;;  %v1457_v36 = vmax.f32 %v5399_v40, %v5401_v43 }
 0x4b3   : > { %v5407_v37 = vpop.f32.mrb[87].mxu0 }
 0x4b4   : > { %1458 = vmax.xlane.f32.xlu1 %v1457_v36  ;;  %v1460_v46 = vmax.f32 %v5403_v48, %v5407_v37 }
 0x4b6   : > { %1461 = vmax.xlane.f32.xlu0 %v1460_v46 }
 0x4b8   : > { %v5411_v17 = vpop.f32.mrb[88].mxu0 }
 0x4b9   : > { %v5413_v41 = vpop.f32.mrb[89].mxu0 }
 0x4ba   : > { %6858 = vst [vmem:[#allocation24_spill] sm:$0xff] %v5413_v41  ;;  %v5415_v58 = vpop.f32.mrb[90].mxu0  ;;  %v1463_v51 = vmax.f32 %v5411_v17, %v5413_v41 }
 0x4bb   : > { %6859 = vst [vmem:[#allocation25_spill] sm:$0xff] %v5415_v58  ;;  %v5419_v35 = vpop.f32.mrb[91].mxu0 }
 0x4bc   : > { %6860 = vst [vmem:[#allocation26_spill] sm:$0xff] %v5419_v35  ;;  %1464 = vmax.xlane.f32.xlu1 %v1463_v51  ;;  %v1466_v42 = vmax.f32 %v5415_v58, %v5419_v35 }
 0x4be   : > { %1467 = vmax.xlane.f32.xlu0 %v1466_v42 }
 0x4c0   : > { %v5423_v36 = vpop.f32.mrb[92].mxu0 }
 0x4c1   : > { %6861 = vst [vmem:[#allocation27_spill] sm:$0xff] %v5423_v36  ;;  %v5425_v38 = vpop.f32.mrb[93].mxu0 }
 0x4c2   : > { %6862 = vst [vmem:[#allocation28_spill] sm:$0xff] %v5425_v38  ;;  %v5427_v46 = vpop.f32.mrb[94].mxu0  ;;  %v1469_v24 = vmax.f32 %v5423_v36, %v5425_v38 }
 0x4c3   : > { %6863 = vst [vmem:[#allocation29_spill] sm:$0xff] %v5427_v46  ;;  %v5431_v26 = vpop.f32.mrb[95].mxu0 }
 0x4c4   : > { %6864 = vst [vmem:[#allocation30_spill] sm:$0xff] %v5431_v26  ;;  %1470 = vmax.xlane.f32.xlu1 %v1469_v24  ;;  %v1472_v39 = vmax.f32 %v5427_v46, %v5431_v26 }
 0x4c6   : > { %1473 = vmax.xlane.f32.xlu0 %v1472_v39 }
 0x4c8   : > { %v5435_v51 = vpop.f32.mrb[96].mxu0 }
 0x4c9   : > { %6865 = vst [vmem:[#allocation31_spill] sm:$0xff] %v5435_v51  ;;  %v5437_v35 = vpop.f32.mrb[97].mxu0 }
 0x4ca   : > { %6866 = vst [vmem:[#allocation32_spill] sm:$0xff] %v5437_v35  ;;  %v5439_v42 = vpop.f32.mrb[98].mxu0  ;;  %v1475_v58 = vmax.f32 %v5435_v51, %v5437_v35 }
 0x4cb   : > { %6867 = vst [vmem:[#allocation33_spill] sm:$0xff] %v5439_v42  ;;  %v5443_v41 = vpop.f32.mrb[99].mxu0 }
 0x4cc   : > { %6868 = vst [vmem:[#allocation34_spill] sm:$0xff] %v5443_v41  ;;  %1476 = vmax.xlane.f32.xlu1 %v1475_v58  ;;  %v1478_v38 = vmax.f32 %v5439_v42, %v5443_v41 }
 0x4ce   : > { %1479 = vmax.xlane.f32.xlu0 %v1478_v38 }
 0x4d0   : > { %v5447_v24 = vpop.f32.mrb[100].mxu0 }
 0x4d1   : > { %6869 = vst [vmem:[#allocation35_spill] sm:$0xff] %v5447_v24  ;;  %v5449_v26 = vpop.f32.mrb[101].mxu0 }
 0x4d2   : > { %6870 = vst [vmem:[#allocation36_spill] sm:$0xff] %v5449_v26  ;;  %v5451_v39 = vpop.f32.mrb[102].mxu0  ;;  %v1481_v46 = vmax.f32 %v5447_v24, %v5449_v26 }
 0x4d3   : > { %6871 = vst [vmem:[#allocation37_spill] sm:$0xff] %v5451_v39  ;;  %v5455_v36 = vpop.f32.mrb[103].mxu0 }
 0x4d4   : > { %6872 = vst [vmem:[#allocation38_spill] sm:$0xff] %v5455_v36  ;;  %1482 = vmax.xlane.f32.xlu1 %v1481_v46  ;;  %v1484_v35 = vmax.f32 %v5451_v39, %v5455_v36 }
 0x4d6   : > { %1485 = vmax.xlane.f32.xlu0 %v1484_v35 }
 0x4d8   : > { %v5459_v58 = vpop.f32.mrb[104].mxu0 }
 0x4d9   : > { %6873 = vst [vmem:[#allocation39_spill] sm:$0xff] %v5459_v58  ;;  %v5461_v41 = vpop.f32.mrb[105].mxu0 }
 0x4da   : > { %6874 = vst [vmem:[#allocation40_spill] sm:$0xff] %v5461_v41  ;;  %v5463_v38 = vpop.f32.mrb[106].mxu0  ;;  %v1487_v42 = vmax.f32 %v5459_v58, %v5461_v41 }
 0x4db   : > { %6875 = vst [vmem:[#allocation41_spill] sm:$0xff] %v5463_v38  ;;  %v5467_v51 = vpop.f32.mrb[107].mxu0 }
 0x4dc   : > { %6876 = vst [vmem:[#allocation42_spill] sm:$0xff] %v5467_v51  ;;  %1488 = vmax.xlane.f32.xlu1 %v1487_v42  ;;  %v1490_v26 = vmax.f32 %v5463_v38, %v5467_v51 }
 0x4de   : > { %1491 = vmax.xlane.f32.xlu0 %v1490_v26 }
 0x4e0   : > { %v5471_v46 = vpop.f32.mrb[108].mxu0 }
 0x4e1   : > { %v5473_v36 = vpop.f32.mrb[109].mxu0 }
 0x4e2   : > { %6877 = vst [vmem:[#allocation43_spill] sm:$0xff] %v5473_v36  ;;  %v5475_v35 = vpop.f32.mrb[110].mxu0  ;;  %v1493_v39 = vmax.f32 %v5471_v46, %v5473_v36 }
 0x4e3   : > { %6878 = vst [vmem:[#allocation44_spill] sm:$0xff] %v5475_v35  ;;  %v5479_v24 = vpop.f32.mrb[111].mxu0 }
 0x4e4   : > { %6879 = vst [vmem:[#allocation45_spill] sm:$0xff] %v5479_v24  ;;  %1494 = vmax.xlane.f32.xlu1 %v1493_v39  ;;  %v1496_v41 = vmax.f32 %v5475_v35, %v5479_v24 }
 0x4e6   : > { %1497 = vmax.xlane.f32.xlu0 %v1496_v41  ;;  %v1007_v41 = vld [vmem:[%s6720_s7 + $0x20] sm:$0xff] }
 0x4e8   : > { %v5483_v42 = vpop.f32.mrb[112].mxu0 }
 0x4e9   : > { %6880 = vst [vmem:[#allocation46_spill] sm:$0xff] %v5483_v42  ;;  %v5485_v51 = vpop.f32.mrb[113].mxu0 }
 0x4ea   : > { %6881 = vst [vmem:[#allocation47_spill] sm:$0xff] %v5485_v51  ;;  %v5487_v26 = vpop.f32.mrb[114].mxu0  ;;  %v1499_v38 = vmax.f32 %v5483_v42, %v5485_v51  ;;  %v1004_v51 = vld [vmem:[%s6720_s7 + $0x8] sm:$0xff] }
 0x4eb   : > { %6882 = vst [vmem:[#allocation48_spill] sm:$0xff] %v5487_v26  ;;  %v5491_v58 = vpop.f32.mrb[115].mxu0 }
 0x4ec   : > { %6883 = vst [vmem:[#allocation49_spill] sm:$0xff] %v5491_v58  ;;  %1500 = vmax.xlane.f32.xlu1 %v1499_v38  ;;  %v1502_v36 = vmax.f32 %v5487_v26, %v5491_v58 }
 0x4ee   : > { %1503 = vmax.xlane.f32.xlu0 %v1502_v36 }
 0x4fd   : > { %1033 = vperm.xlu1 %4244, %v1007_v41  }
 0x501   : > { %v1411_v39 = vpop.xlane.xlu1 %1410  ;;  %1804 = vrot.lane.b32.xlu1 %v5168_v60, %s4862_s15 }
 0x502   : > { %v1505_v38 = vsub.f32 %v5303_v49, %v1411_v39  ;;  %v1506_v42 = vsub.f32 %v5305_v50, %v1411_v39 }
 0x503   : > { %v1414_v58 = vpop.xlane.xlu0 %1413 }
 0x504   : > { %v1569_v36 = vmul.f32 1.442695, %v1505_v38  ;;  %v1571_v26 = vmul.f32 1.442695, %v1506_v42  ;;  %v1507_v24 = vsub.f32 %v5307_v29, %v1414_v58  ;;  %v1508_v41 = vsub.f32 %v5311_v19, %v1414_v58  ;;  %1018 = vperm.xlu0 %4243, %v1004_v51  }
 0x505   : > { %1806 = vrot.lane.b32.xlu1 %v5166_v59, %s4862_s15 }
 0x506   : > { %4261 = vpow2.f32 %v1569_v36  ;;  %v1573_v60 = vmul.f32 1.442695, %v1507_v24  ;;  %v1575_v35 = vmul.f32 1.442695, %v1508_v41 }
 0x507   : > { %4263 = vpow2.f32 %v1571_v26 }
 0x508   : > { %4265 = vpow2.f32 %v1573_v60  ;;  %1808 = vrot.lane.b32.xlu0 %v5176_v6, %s4862_s15 }
 0x509   : > { %4267 = vpow2.f32 %v1575_v35  ;;  %v1417_v49 = vpop.xlane.xlu1 %1416  ;;  %1810 = vrot.lane.b32.xlu1 %v5174_v5, %s4862_s15 }
 0x50a   : > { %v1509_v50 = vsub.f32 %v5315_v54, %v1417_v49  ;;  %v1510_v29 = vsub.f32 %v5317_v55, %v1417_v49 }
 0x50c   : > { %v1577_v19 = vmul.f32 1.442695, %v1509_v50  ;;  %1812 = vrot.lane.b32.xlu0 %v5184_v18, %s4862_s15  ;;  %v1579_v51 = vmul.f32 1.442695, %v1510_v29 }
 0x50d   : > { %v1420_v24 = vpop.xlane.xlu1 %1419  ;;  %1814 = vrot.lane.b32.xlu1 %v5182_v15, %s4862_s15 }
 0x50e   : > { %v1511_v60 = vsub.f32 %v5319_v56, %v1420_v24  ;;  %v1512_v58 = vsub.f32 %v5323_v32, %v1420_v24  ;;  %4269 = vpow2.f32 %v1577_v19 }
 0x50f   : > { %4271 = vpow2.f32 %v1579_v51 }
 0x510   : > { %v4262_v35 = vpop.eup %4261  ;;  %v1581_v42 = vmul.f32 1.442695, %v1511_v60  ;;  %v1583_v26 = vmul.f32 1.442695, %v1512_v58  ;;  %1816 = vrot.lane.b32.xlu0 %v5192_v34, %s4862_s15 }
 0x511   : > { %v4264_v54 = vpop.eup %4263  ;;  %v1423_v55 = vpop.xlane.xlu1 %1422  ;;  %1818 = vrot.lane.b32.xlu1 %v5190_v33, %s4862_s15 }
 0x512   : > { %v4266_v39 = vpop.eup %4265  ;;  %4273 = vpow2.f32 %v1581_v42  ;;  %v1513_v38 = vsub.f32 %v5327_v62, %v1423_v55  ;;  %v1514_v56 = vsub.f32 %v5329_v1, %v1423_v55 }
 0x513   : > { %v4268_v32 = vpop.eup %4267  ;;  %4275 = vpow2.f32 %v1583_v26  ;;  %v1697_v36 = vpack.c.bf16 %v4266_v39, %v4262_v35 }
 0x514   : > { %v1585_v41 = vmul.f32 1.442695, %v1513_v38  ;;  %1820 = vrot.lane.b32.xlu0 %v5200_v45, %s4862_s15  ;;  %v1698_v49 = vpack.c.bf16 %v4268_v32, %v4264_v54  ;;  %v1587_v50 = vmul.f32 1.442695, %v1514_v56 }
 0x515   : > { %v1426_v29 = vpop.xlane.xlu1 %1425  ;;  %1822 = vrot.lane.b32.xlu1 %v5198_v44, %s4862_s15 }
 0x516   : > { %1729 = vmatprep.subr.bf16.mxu1 %v1698_v49  ;;  %v1515_v19 = vsub.f32 %v5331_v2, %v1426_v29  ;;  %v1516_v62 = vsub.f32 %v5335_v4, %v1426_v29  ;;  %4277 = vpow2.f32 %v1585_v41 }
 0x517   : > { %1730 = vmatpush1.bf16.xpose.msra.mxu1 %v1697_v36  ;;  %4279 = vpow2.f32 %v1587_v50 }
 0x518   : > { %v1589_v1 = vmul.f32 1.442695, %v1515_v19  ;;  %v1591_v51 = vmul.f32 1.442695, %v1516_v62  ;;  %1824 = vrot.lane.b32.xlu0 %v5208_v52, %s4862_s15  ;;  %v4270_v60 = vpop.eup %4269 }
 0x519   : > { %v1429_v24 = vpop.xlane.xlu1 %1428  ;;  %1826 = vrot.lane.b32.xlu1 %v5206_v20, %s4862_s15  ;;  %v4272_v35 = vpop.eup %4271 }
 0x51a   : > { %4281 = vpow2.f32 %v1589_v1  ;;  %v1517_v58 = vsub.f32 %v5339_v8, %v1429_v24  ;;  %v1518_v2 = vsub.f32 %v5341_v9, %v1429_v24 }
 0x51b   : > { %4283 = vpow2.f32 %v1591_v51 }
 0x51c   : > { %v4274_v4 = vpop.eup %4273  ;;  %v1593_v42 = vmul.f32 1.442695, %v1517_v58  ;;  %1828 = vrot.lane.b32.xlu0 %v5216_v0, %s4862_s15  ;;  %v1595_v54 = vmul.f32 1.442695, %v1518_v2 }
 0x51d   : > { %v4276_v26 = vpop.eup %4275  ;;  %v1432_v55 = vpop.xlane.xlu1 %1431  ;;  %1830 = vrot.lane.b32.xlu1 %v5214_v63, %s4862_s15  ;;  %v1699_v39 = vpack.c.bf16 %v4274_v4, %v4270_v60 }
 0x51e   : > { %v1519_v38 = vsub.f32 %v5343_v10, %v1432_v55  ;;  %v1520_v8 = vsub.f32 %v5347_v14, %v1432_v55  ;;  %v1700_v56 = vpack.c.bf16 %v4276_v26, %v4272_v35  ;;  %4285 = vpow2.f32 %v1593_v42 }
 0x51f   : > { %4287 = vpow2.f32 %v1595_v54 }
 0x520   : > { %v1597_v9 = vmul.f32 1.442695, %v1519_v38  ;;  %v1599_v32 = vmul.f32 1.442695, %v1520_v8  ;;  %1731 = vmatprep.subr.bf16.mxu1 %v1700_v56  ;;  %1832 = vrot.lane.b32.xlu0 %v5224_v12, %s4862_s15  ;;  %v4278_v41 = vpop.eup %4277 }
 0x521   : > { %1732 = vmatpush1.bf16.xpose.msra.mxu1 %v1699_v39  ;;  %v1435_v36 = vpop.xlane.xlu1 %1434  ;;  %1834 = vrot.lane.b32.xlu1 %v5222_v11, %s4862_s15  ;;  %v4280_v49 = vpop.eup %4279  ;;  %s3999_s15 = sshll.u32 %s404_s14, 6 }
 0x522   : > { %4289 = vpow2.f32 %v1597_v9  ;;  %v1521_v10 = vsub.f32 %v5351_v22, %v1435_v36  ;;  %v1522_v14 = vsub.f32 %v5353_v23, %v1435_v36 }
 0x523   : > { %4291 = vpow2.f32 %v1599_v32  ;;  %v1438_v50 = vpop.xlane.xlu0 %1437 }
 0x524   : > { %v4282_v29 = vpop.eup %4281  ;;  %v1601_v19 = vmul.f32 1.442695, %v1521_v10  ;;  %v1523_v62 = vsub.f32 %v5355_v25, %v1438_v50  ;;  %v1524_v1 = vsub.f32 %v5359_v28, %v1438_v50  ;;  %v1603_v60 = vmul.f32 1.442695, %v1522_v14 }
 0x525   : > { %v4284_v51 = vpop.eup %4283  ;;  %v1701_v24 = vpack.c.bf16 %v4282_v29, %v4278_v41 }
 0x526   : > { %v1605_v58 = vmul.f32 1.442695, %v1523_v62  ;;  %v1607_v2 = vmul.f32 1.442695, %v1524_v1  ;;  %v1702_v35 = vpack.c.bf16 %v4284_v51, %v4280_v49  ;;  %4293 = vpow2.f32 %v1601_v19 }
 0x528   : > { %4295 = vpow2.f32 %v1605_v58  ;;  %1733 = vmatprep.subr.bf16.mxu1 %v1702_v35  ;;  %v4286_v23 = vpop.eup %4285 }
 0x529   : > { %4297 = vpow2.f32 %v1607_v2  ;;  %1734 = vmatpush1.bf16.xpose.msra.mxu1 %v1701_v24  ;;  %v1441_v22 = vpop.xlane.xlu1 %1440  ;;  %v4288_v42 = vpop.eup %4287 }
 0x52a   : > { %4299 = vpow2.f32 %v1603_v60  ;;  %v1525_v4 = vsub.f32 %v5363_v53, %v1441_v22  ;;  %v1526_v25 = vsub.f32 %v5365_v31, %v1441_v22 }
 0x52b   : > { %v1444_v28 = vpop.xlane.xlu0 %1443 }
 0x52c   : > { %v4290_v26 = vpop.eup %4289  ;;  %v1609_v54 = vmul.f32 1.442695, %v1525_v4  ;;  %v1527_v55 = vsub.f32 %v5367_v61, %v1444_v28  ;;  %v1528_v39 = vsub.f32 %v5371_v7, %v1444_v28  ;;  %v1611_v56 = vmul.f32 1.442695, %v1526_v25 }
 0x52d   : > { %v4292_v38 = vpop.eup %4291  ;;  %v1703_v8 = vpack.c.bf16 %v4290_v26, %v4286_v23 }
 0x52e   : > { %v1613_v9 = vmul.f32 1.442695, %v1527_v55  ;;  %v1615_v32 = vmul.f32 1.442695, %v1528_v39  ;;  %v1704_v36 = vpack.c.bf16 %v4292_v38, %v4288_v42  ;;  %4301 = vpow2.f32 %v1609_v54 }
 0x530   : > { %4303 = vpow2.f32 %v1613_v9  ;;  %1735 = vmatprep.subr.bf16.mxu1 %v1704_v36  ;;  %v4294_v53 = vpop.eup %4293 }
 0x531   : > { %4305 = vpow2.f32 %v1615_v32  ;;  %1736 = vmatpush1.bf16.xpose.msra.mxu1 %v1703_v8  ;;  %v1447_v31 = vpop.xlane.xlu1 %1446 }
 0x532   : > { %v4296_v41 = vpop.eup %4295  ;;  %4307 = vpow2.f32 %v1611_v56  ;;  %v1529_v10 = vsub.f32 %v5375_v21, %v1447_v31  ;;  %v1530_v61 = vsub.f32 %v5377_v27, %v1447_v31 }
 0x533   : > { %v4298_v7 = vpop.eup %4297  ;;  %v1450_v14 = vpop.xlane.xlu0 %1449  ;;  %v1705_v49 = vpack.c.bf16 %v4296_v41, %v4294_v53 }
 0x534   : > { %v4300_v50 = vpop.eup %4299  ;;  %v1617_v29 = vmul.f32 1.442695, %v1529_v10  ;;  %v1531_v19 = vsub.f32 %v5379_v30, %v1450_v14  ;;  %v1532_v62 = vsub.f32 %v5383_v47, %v1450_v14  ;;  %v1619_v51 = vmul.f32 1.442695, %v1530_v61 }
 0x535   : > { %v1706_v1 = vpack.c.bf16 %v4298_v7, %v4300_v50 }
 0x536   : > { %v1621_v24 = vmul.f32 1.442695, %v1531_v19  ;;  %v1623_v60 = vmul.f32 1.442695, %v1532_v62  ;;  %4309 = vpow2.f32 %v1617_v29 }
 0x537   : > { %1737 = vmatprep.subr.bf16.mxu1 %v1706_v1  ;;  %v6885_v1 = vld [vmem:[#allocation25_spill] sm:$0xff] }
 0x538   : > { %4311 = vpow2.f32 %v1621_v24  ;;  %v4302_v58 = vpop.eup %4301  ;;  %v6886_v24 = vld [vmem:[#allocation26_spill] sm:$0xff] }
 0x539   : > { %4313 = vpow2.f32 %v1623_v60  ;;  %1738 = vmatpush1.bf16.xpose.msra.mxu1 %v1705_v49  ;;  %v1453_v21 = vpop.xlane.xlu1 %1452  ;;  %v6884_v49 = vld [vmem:[#allocation24_spill] sm:$0xff] }
 0x53a   : > { %v4304_v27 = vpop.eup %4303  ;;  %4315 = vpow2.f32 %v1619_v51  ;;  %v1533_v2 = vsub.f32 %v5387_v3, %v1453_v21  ;;  %v1534_v35 = vsub.f32 %v5389_v16, %v1453_v21 }
 0x53b   : > { %v4306_v30 = vpop.eup %4305  ;;  %v1456_v22 = vpop.xlane.xlu0 %1455  ;;  %v1707_v47 = vpack.c.bf16 %v4304_v27, %v4302_v58 }
 0x53c   : > { %v4308_v23 = vpop.eup %4307  ;;  %v1625_v4 = vmul.f32 1.442695, %v1533_v2  ;;  %v1535_v25 = vsub.f32 %v5391_v13, %v1456_v22  ;;  %v1536_v42 = vsub.f32 %v5395_v57, %v1456_v22  ;;  %v1627_v26 = vmul.f32 1.442695, %v1534_v35  ;;  %v6887_v22 = vld [vmem:[#allocation27_spill] sm:$0xff] }
 0x53d   : > { %v1708_v28 = vpack.c.bf16 %v4306_v30, %v4308_v23  ;;  %v6888_v23 = vld [vmem:[#allocation28_spill] sm:$0xff] }
 0x53e   : > { %v1629_v54 = vmul.f32 1.442695, %v1535_v25  ;;  %v1631_v55 = vmul.f32 1.442695, %v1536_v42  ;;  %4317 = vpow2.f32 %v1625_v4 }
 0x53f   : > { %1739 = vmatprep.subr.bf16.mxu1 %v1708_v28 }
 0x540   : > { %4319 = vpow2.f32 %v1629_v54  ;;  %v4310_v39 = vpop.eup %4309 }
 0x541   : > { %4321 = vpow2.f32 %v1631_v55  ;;  %1740 = vmatpush1.bf16.xpose.msra.mxu1 %v1707_v47  ;;  %v1459_v16 = vpop.xlane.xlu1 %1458  ;;  %v6889_v55 = vld [vmem:[#allocation29_spill] sm:$0xff] }
 0x542   : > { %v4312_v3 = vpop.eup %4311  ;;  %4323 = vpow2.f32 %v1627_v26  ;;  %v1537_v38 = vsub.f32 %v5399_v40, %v1459_v16  ;;  %v1538_v8 = vsub.f32 %v5401_v43, %v1459_v16  ;;  %v6890_v16 = vld [vmem:[#allocation30_spill] sm:$0xff] }
 0x543   : > { %v4314_v13 = vpop.eup %4313  ;;  %v1462_v56 = vpop.xlane.xlu0 %1461  ;;  %v1709_v57 = vpack.c.bf16 %v4312_v3, %v4310_v39 }
 0x544   : > { %v4316_v9 = vpop.eup %4315  ;;  %v1633_v32 = vmul.f32 1.442695, %v1537_v38  ;;  %v1539_v36 = vsub.f32 %v5403_v48, %v1462_v56  ;;  %v1540_v53 = vsub.f32 %v5407_v37, %v1462_v56  ;;  %v1635_v41 = vmul.f32 1.442695, %v1538_v8 }
 0x545   : > { %v1710_v31 = vpack.c.bf16 %v4314_v13, %v4316_v9 }
 0x546   : > { %v1637_v10 = vmul.f32 1.442695, %v1539_v36  ;;  %v1639_v61 = vmul.f32 1.442695, %v1540_v53  ;;  %4325 = vpow2.f32 %v1633_v32  ;;  %v6891_v36 = vld [vmem:[#allocation31_spill] sm:$0xff] }
 0x547   : > { %1741 = vmatprep.subr.bf16.mxu1 %v1710_v31  ;;  %v6892_v31 = vld [vmem:[#allocation32_spill] sm:$0xff] }
 0x548   : > { %4327 = vpow2.f32 %v1637_v10  ;;  %v4318_v7 = vpop.eup %4317 }
 0x549   : > { %4329 = vpow2.f32 %v1639_v61  ;;  %1742 = vmatpush1.bf16.xpose.msra.mxu1 %v1709_v57  ;;  %v1465_v43 = vpop.xlane.xlu1 %1464 }
 0x54a   : > { %v4320_v40 = vpop.eup %4319  ;;  %4331 = vpow2.f32 %v1635_v41  ;;  %v1541_v14 = vsub.f32 %v5411_v17, %v1465_v43  ;;  %v1542_v50 = vsub.f32 %v6884_v49, %v1465_v43 }
 0x54b   : > { %v4322_v48 = vpop.eup %4321  ;;  %v1468_v29 = vpop.xlane.xlu0 %1467  ;;  %v1711_v37 = vpack.c.bf16 %v4320_v40, %v4318_v7 }
 0x54c   : > { %v4324_v19 = vpop.eup %4323  ;;  %v1641_v62 = vmul.f32 1.442695, %v1541_v14  ;;  %v1543_v51 = vsub.f32 %v6885_v1, %v1468_v29  ;;  %v1544_v60 = vsub.f32 %v6886_v24, %v1468_v29  ;;  %v1643_v21 = vmul.f32 1.442695, %v1542_v50  ;;  %v6893_v14 = vld [vmem:[#allocation33_spill] sm:$0xff]  ;;  %v6894_v50 = vld [vmem:[#allocation34_spill] sm:$0xff] }
 0x54d   : > { %v1712_v58 = vpack.c.bf16 %v4322_v48, %v4324_v19 }
 0x54e   : > { %v1645_v27 = vmul.f32 1.442695, %v1543_v51  ;;  %v1647_v2 = vmul.f32 1.442695, %v1544_v60  ;;  %4333 = vpow2.f32 %v1641_v62  ;;  %v6895_v60 = vld [vmem:[#allocation35_spill] sm:$0xff] }
 0x54f   : > { %1743 = vmatprep.subr.bf16.mxu1 %v1712_v58 }
 0x550   : > { %4335 = vpow2.f32 %v1645_v27  ;;  %v4326_v35 = vpop.eup %4325 }
 0x551   : > { %4337 = vpow2.f32 %v1647_v2  ;;  %1744 = vmatpush1.bf16.xpose.msra.mxu1 %v1711_v37  ;;  %v1471_v17 = vpop.xlane.xlu1 %1470 }
 0x552   : > { %v4328_v30 = vpop.eup %4327  ;;  %4339 = vpow2.f32 %v1643_v21  ;;  %v1545_v47 = vsub.f32 %v6887_v22, %v1471_v17  ;;  %v1546_v4 = vsub.f32 %v6888_v23, %v1471_v17  ;;  %v6896_v21 = vld [vmem:[#allocation36_spill] sm:$0xff] }
 0x553   : > { %v4330_v25 = vpop.eup %4329  ;;  %v1474_v42 = vpop.xlane.xlu0 %1473  ;;  %v1713_v28 = vpack.c.bf16 %v4328_v30, %v4326_v35 }
 0x554   : > { %v4332_v26 = vpop.eup %4331  ;;  %v1649_v54 = vmul.f32 1.442695, %v1545_v47  ;;  %v1547_v39 = vsub.f32 %v6889_v55, %v1474_v42  ;;  %v1548_v3 = vsub.f32 %v6890_v16, %v1474_v42  ;;  %v1651_v8 = vmul.f32 1.442695, %v1546_v4  ;;  %v6897_v47 = vld [vmem:[#allocation37_spill] sm:$0xff]  ;;  %v6898_v4 = vld [vmem:[#allocation38_spill] sm:$0xff] }
 0x555   : > { %v1714_v38 = vpack.c.bf16 %v4330_v25, %v4332_v26 }
 0x556   : > { %v1653_v13 = vmul.f32 1.442695, %v1547_v39  ;;  %v1655_v56 = vmul.f32 1.442695, %v1548_v3  ;;  %4341 = vpow2.f32 %v1649_v54  ;;  %v6899_v3 = vld [vmem:[#allocation39_spill] sm:$0xff] }
 0x557   : > { %1745 = vmatprep.subr.bf16.mxu1 %v1714_v38 }
 0x558   : > { %4343 = vpow2.f32 %v1653_v13  ;;  %v4334_v57 = vpop.eup %4333 }
 0x559   : > { %4345 = vpow2.f32 %v1655_v56  ;;  %1746 = vmatpush1.bf16.xpose.msra.mxu1 %v1713_v28  ;;  %v1477_v9 = vpop.xlane.xlu1 %1476 }
 0x55a   : > { %v4336_v32 = vpop.eup %4335  ;;  %4347 = vpow2.f32 %v1651_v8  ;;  %v1549_v53 = vsub.f32 %v6891_v36, %v1477_v9  ;;  %v1550_v41 = vsub.f32 %v6892_v31, %v1477_v9  ;;  %v6900_v8 = vld [vmem:[#allocation40_spill] sm:$0xff] }
 0x55b   : > { %v4338_v10 = vpop.eup %4337  ;;  %v1480_v61 = vpop.xlane.xlu0 %1479  ;;  %v1715_v7 = vpack.c.bf16 %v4336_v32, %v4334_v57 }
 0x55c   : > { %v4340_v43 = vpop.eup %4339  ;;  %v1657_v40 = vmul.f32 1.442695, %v1549_v53  ;;  %v1551_v49 = vsub.f32 %v6893_v14, %v1480_v61  ;;  %v1552_v48 = vsub.f32 %v6894_v50, %v1480_v61  ;;  %v1659_v37 = vmul.f32 1.442695, %v1550_v41  ;;  %v6901_v53 = vld [vmem:[#allocation41_spill] sm:$0xff]  ;;  %v6902_v41 = vld [vmem:[#allocation42_spill] sm:$0xff] }
 0x55d   : > { %v1716_v29 = vpack.c.bf16 %v4338_v10, %v4340_v43 }
 0x55e   : > { %v1661_v19 = vmul.f32 1.442695, %v1551_v49  ;;  %v1663_v62 = vmul.f32 1.442695, %v1552_v48  ;;  %4349 = vpow2.f32 %v1657_v40 }
 0x55f   : > { %1747 = vmatprep.subr.bf16.mxu1 %v1716_v29  ;;  %v6903_v29 = vld [vmem:[#allocation43_spill] sm:$0xff] }
 0x560   : > { %4351 = vpow2.f32 %v1661_v19  ;;  %v4342_v1 = vpop.eup %4341 }
 0x561   : > { %4353 = vpow2.f32 %v1663_v62  ;;  %1748 = vmatpush1.bf16.xpose.msra.mxu1 %v1715_v7  ;;  %v1483_v51 = vpop.xlane.xlu1 %1482 }
 0x562   : > { %v4344_v24 = vpop.eup %4343  ;;  %4355 = vpow2.f32 %v1659_v37  ;;  %v1553_v58 = vsub.f32 %v6895_v60, %v1483_v51  ;;  %v1554_v27 = vsub.f32 %v6896_v21, %v1483_v51 }
 0x563   : > { %v4346_v2 = vpop.eup %4345  ;;  %v1486_v35 = vpop.xlane.xlu0 %1485  ;;  %v1717_v17 = vpack.c.bf16 %v4344_v24, %v4342_v1 }
 0x564   : > { %v4348_v30 = vpop.eup %4347  ;;  %v1665_v22 = vmul.f32 1.442695, %v1553_v58  ;;  %v1555_v23 = vsub.f32 %v6897_v47, %v1486_v35  ;;  %v1556_v25 = vsub.f32 %v6898_v4, %v1486_v35  ;;  %v1667_v28 = vmul.f32 1.442695, %v1554_v27  ;;  %v6904_v58 = vld [vmem:[#allocation44_spill] sm:$0xff]  ;;  %v6905_v27 = vld [vmem:[#allocation45_spill] sm:$0xff] }
 0x565   : > { %v1718_v42 = vpack.c.bf16 %v4346_v2, %v4348_v30 }
 0x566   : > { %v1669_v26 = vmul.f32 1.442695, %v1555_v23  ;;  %v1671_v54 = vmul.f32 1.442695, %v1556_v25  ;;  %4357 = vpow2.f32 %v1665_v22  ;;  %v6906_v23 = vld [vmem:[#allocation46_spill] sm:$0xff]  ;;  %v6907_v25 = vld [vmem:[#allocation47_spill] sm:$0xff] }
 0x567   : > { %1749 = vmatprep.subr.bf16.mxu1 %v1718_v42 }
 0x568   : > { %4359 = vpow2.f32 %v1669_v26  ;;  %v4350_v55 = vpop.eup %4349 }
 0x569   : > { %4361 = vpow2.f32 %v1671_v54  ;;  %1750 = vmatpush1.bf16.xpose.msra.mxu1 %v1717_v17  ;;  %v1489_v39 = vpop.xlane.xlu1 %1488 }
 0x56a   : > { %v4352_v16 = vpop.eup %4351  ;;  %4363 = vpow2.f32 %v1667_v28  ;;  %v1557_v38 = vsub.f32 %v6899_v3, %v1489_v39  ;;  %v1558_v13 = vsub.f32 %v6900_v8, %v1489_v39  ;;  %v6908_v3 = vld [vmem:[#allocation48_spill] sm:$0xff]  ;;  %v6909_v8 = vld [vmem:[#allocation49_spill] sm:$0xff] }
 0x56b   : > { %v4354_v56 = vpop.eup %4353  ;;  %v1492_v57 = vpop.xlane.xlu0 %1491  ;;  %v1719_v9 = vpack.c.bf16 %v4352_v16, %v4350_v55 }
 0x56c   : > { %v4356_v32 = vpop.eup %4355  ;;  %v1673_v36 = vmul.f32 1.442695, %v1557_v38  ;;  %v1559_v31 = vsub.f32 %v6901_v53, %v1492_v57  ;;  %v1560_v10 = vsub.f32 %v6902_v41, %v1492_v57  ;;  %v1675_v7 = vmul.f32 1.442695, %v1558_v13 }
 0x56d   : > { %v1720_v61 = vpack.c.bf16 %v4354_v56, %v4356_v32 }
 0x56e   : > { %v1677_v43 = vmul.f32 1.442695, %v1559_v31  ;;  %v1679_v40 = vmul.f32 1.442695, %v1560_v10  ;;  %4365 = vpow2.f32 %v1673_v36  ;;  %v6910_v36 = vld [vmem:[#allocation17_spill] sm:$0xff]  ;;  %v6756_v10 = vmov 1.0  }
 0x56f   : > { %1751 = vmatprep.subr.bf16.mxu1 %v1720_v61 }
 0x570   : > { %4367 = vpow2.f32 %v1677_v43  ;;  %v4358_v14 = vpop.eup %4357 }
 0x571   : > { %4369 = vpow2.f32 %v1679_v40  ;;  %1752 = vmatpush1.bf16.xpose.msra.mxu1 %v1719_v9  ;;  %v1495_v49 = vpop.xlane.xlu1 %1494 }
 0x572   : > { %v4360_v50 = vpop.eup %4359  ;;  %4371 = vpow2.f32 %v1675_v7  ;;  %v1561_v48 = vsub.f32 %v5471_v46, %v1495_v49  ;;  %v1562_v37 = vsub.f32 %v6903_v29, %v1495_v49 }
 0x573   : > { %v4362_v19 = vpop.eup %4361  ;;  %v1498_v62 = vpop.xlane.xlu0 %1497  ;;  %v1721_v1 = vpack.c.bf16 %v4360_v50, %v4358_v14 }
 0x574   : > { %v4364_v51 = vpop.eup %4363  ;;  %v1681_v24 = vmul.f32 1.442695, %v1561_v48  ;;  %v1683_v60 = vmul.f32 1.442695, %v1562_v37  ;;  %v1563_v21 = vsub.f32 %v6904_v58, %v1498_v62  ;;  %v1564_v2 = vsub.f32 %v6905_v27, %v1498_v62  ;;  %v6911_v62 = vld [vmem:[#allocation11_spill] sm:$0xff] }
 0x575   : > { %v1722_v35 = vpack.c.bf16 %v4362_v19, %v4364_v51 }
 0x576   : > { %4373 = vpow2.f32 %v1681_v24  ;;  %v1685_v17 = vmul.f32 1.442695, %v1563_v21  ;;  %v1687_v30 = vmul.f32 1.442695, %v1564_v2  ;;  %v6912_v24 = vld [vmem:[#allocation10_spill] sm:$0xff]  ;;  %v6913_v21 = vld [vmem:[#allocation16_spill] sm:$0xff] }
 0x577   : > { %4375 = vpow2.f32 %v1683_v60  ;;  %1753 = vmatprep.subr.bf16.mxu1 %v1722_v35 }
 0x578   : > { %4377 = vpow2.f32 %v1685_v17  ;;  %v4366_v46 = vpop.eup %4365 }
 0x579   : > { %4379 = vpow2.f32 %v1687_v30  ;;  %1754 = vmatpush1.bf16.xpose.msra.mxu1 %v1721_v1  ;;  %v1501_v22 = vpop.xlane.xlu1 %1500  ;;  %v6914_v30 = vmov 0  }
 0x57a   : > { %v4368_v47 = vpop.eup %4367  ;;  %v1565_v4 = vsub.f32 %v6906_v23, %v1501_v22  ;;  %v1566_v42 = vsub.f32 %v6907_v25, %v1501_v22 }
 0x57b   : > { %v4370_v28 = vpop.eup %4369  ;;  %v1504_v26 = vpop.xlane.xlu0 %1503  ;;  %v1723_v54 = vpack.c.bf16 %v4368_v47, %v4366_v46 }
 0x57c   : > { %v4372_v55 = vpop.eup %4371  ;;  %v1689_v39 = vmul.f32 1.442695, %v1565_v4  ;;  %v1691_v16 = vmul.f32 1.442695, %v1566_v42  ;;  %v1567_v38 = vsub.f32 %v6908_v3, %v1504_v26  ;;  %v1568_v13 = vsub.f32 %v6909_v8, %v1504_v26 }
 0x57d   : > { %v1724_v56 = vpack.c.bf16 %v4370_v28, %v4372_v55  ;;  %v1034_v57 = vpop.permute.xlu1 %1033 }
 0x57e   : > { %4381 = vpow2.f32 %v1689_v39  ;;  %v1693_v9 = vmul.f32 1.442695, %v1567_v38  ;;  %v1695_v32 = vmul.f32 1.442695, %v1568_v13  ;;  %v1140_v53 = vadd.f32 %v6910_v36, %v1034_v57 }
 0x57f   : > { %4383 = vpow2.f32 %v1691_v16  ;;  %1755 = vmatprep.subr.bf16.mxu1 %v1724_v56  ;;  %v1138_v27 = vadd.f32 %v6913_v21, %v1034_v57 }
 0x580   : > { %v4374_v31 = vpop.eup %4373  ;;  %4385 = vpow2.f32 %v1693_v9  ;;  %v1159_v61 = vpack.c.bf16 %v6756_v10, %v1140_v53  ;;  %v1774_v9 = vlaneseq }
 0x581   : > { %v4376_v41 = vpop.eup %4375  ;;  %4387 = vpow2.f32 %v1695_v32  ;;  %1756 = vmatpush1.bf16.xpose.msra.mxu1 %v1723_v54  ;;  %v1158_v35 = vpack.c.bf16 %v6756_v10, %v1138_v27  ;;  %v1805_v46 = vpop.permute.xlu1 %1804 }
 0x582   : > { %v4378_v7 = vpop.eup %4377  ;;  %1761 = vmatprep.mubr.bf16.mxu1 %v1159_v61  ;;  %v1775_v36 = vshrl.u32 %v1774_v9, 7 }
 0x583   : > { %v4380_v43 = vpop.eup %4379  ;;  %v1725_v40 = vpack.c.bf16 %v4378_v7, %v4374_v31  ;;  %v1019_v48 = vpop.permute.xlu0 %1018 }
 0x584   : > { %v1726_v14 = vpack.c.bf16 %v4380_v43, %v4376_v41  ;;  %v1124_v1 = vadd.f32 %v6911_v62, %v1019_v48  ;;  %v1122_v60 = vadd.f32 %v6912_v24, %v1019_v48  ;;  %v5645_v7 = vsub.s32 0, %v1775_v36 }
 0x585   : > { %v1807_v22 = vpop.permute.xlu1 %1806 }
 0x586   : > { %1757 = vmatprep.subr.bf16.mxu1 %v1726_v14  ;;  %v1785_v58 = vpack.c.bf16 %v1124_v1, %v1124_v1  ;;  %v1784_v2 = vpack.c.bf16 %v1122_v60, %v1122_v60  ;;  %6915 = vst [vmem:[#allocation24_spill] sm:$0xff] %v5645_v7 }
 0x587   : > { %v1809_v47 = vpop.permute.xlu0 %1808 }
 0x588   : > { %v4382_v49 = vpop.eup %4381  ;;  %v1885_v17 = vsel %vm1209_vm1, %v1784_v2, 0 }
 0x589   : > { %v4384_v50 = vpop.eup %4383  ;;  %1758 = vmatpush1.bf16.xpose.msra.mxu1 %v1725_v40  ;;  %v1811_v23 = vpop.permute.xlu1 %1810 }
 0x58a   : > { %v4386_v29 = vpop.eup %4385 }
 0x58b   : > { %v4388_v37 = vpop.eup %4387  ;;  %v1727_v19 = vpack.c.bf16 %v4386_v29, %v4382_v49  ;;  %v1813_v4 = vpop.permute.xlu0 %1812 }
 0x58c   : > { %v1728_v51 = vpack.c.bf16 %v4388_v37, %v4384_v50 }
 0x58d   : > { %v1815_v25 = vpop.permute.xlu1 %1814 }
 0x58e   : > { %1759 = vmatprep.subr.bf16.mxu1 %v1728_v51 }
 0x58f   : > { %v1817_v42 = vpop.permute.xlu0 %1816 }
 0x591   : > { %1760 = vmatpush1.bf16.xpose.msra.mxu1 %v1727_v19  ;;  %v1819_v28 = vpop.permute.xlu1 %1818 }
 0x592   : > { %4050 = vmatprep.subr.msk.bf16.mxu1 %vm1209_vm1, %v1785_v58 }
 0x593   : > { %v1821_v26 = vpop.permute.xlu0 %1820 }
 0x595   : > { %v1823_v54 = vpop.permute.xlu1 %1822 }
 0x597   : > { %v1825_v55 = vpop.permute.xlu0 %1824 }
 0x598   : > { %1762 = vmatmul.mubr.bf16.vlgmr.msra.gmra.mrb[0].mxu1 %v1158_v35 }
 0x599   : > { %1891 = vmatpush1.bf16.msra.mxu1 %v1885_v17  ;;  %1922 = vmatprep.mubr.bf16.mxu1 %v6914_v30  ;;  %v1827_v39 = vpop.permute.xlu1 %1826 }
 0x59b   : > { %v1829_v16 = vpop.permute.xlu0 %1828 }
 0x59d   : > { %v1831_v3 = vpop.permute.xlu1 %1830 }
 0x59f   : > { %v1833_v38 = vpop.permute.xlu0 %1832 }
 0x5a0   : > { %4051 = vmatmul.mubr.msk.bf16.vlgmr.msra.gmra.mrb[4].mxu1 %vm1160_vm2, %v1805_v46 }
 0x5a1   : > { %1932 = vmatprep.mubr.bf16.mxu1 %v6914_v30  ;;  %v1835_v8 = vpop.permute.xlu1 %1834 }
 0x5a8   : > { %4052 = vmatmul.mubr.msk.bf16.gmra.mrb[8].mxu1 %vm1160_vm2, %v1807_v22 }
 0x5a9   : > { %1942 = vmatprep.mubr.bf16.mxu1 %v6914_v30 }
 0x5b0   : > { %4053 = vmatmul.mubr.msk.bf16.gmra.mrb[12].mxu1 %vm1160_vm2, %v1809_v47 }
 0x5b1   : > { %1952 = vmatprep.mubr.bf16.mxu1 %v6914_v30 }
 0x5b8   : > { %4054 = vmatmul.mubr.msk.bf16.gmra.mrb[16].mxu1 %vm1160_vm2, %v1811_v23 }
 0x5b9   : > { %1962 = vmatprep.mubr.bf16.mxu1 %v6914_v30 }
 0x5c0   : > { %4055 = vmatmul.mubr.msk.bf16.gmra.mrb[20].mxu1 %vm1160_vm2, %v1813_v4 }
 0x5c1   : > { %1972 = vmatprep.mubr.bf16.mxu1 %v6914_v30 }
 0x5c8   : > { %4056 = vmatmul.mubr.msk.bf16.gmra.mrb[24].mxu1 %vm1160_vm2, %v1815_v25 }
 0x5c9   : > { %1982 = vmatprep.mubr.bf16.mxu1 %v6914_v30 }
 0x5d0   : > { %4057 = vmatmul.mubr.msk.bf16.gmra.mrb[28].mxu1 %vm1160_vm2, %v1817_v42 }
 0x5d1   : > { %1992 = vmatprep.mubr.bf16.mxu1 %v6914_v30 }
 0x5d8   : > { %4058 = vmatmul.mubr.msk.bf16.gmra.mrb[32].mxu1 %vm1160_vm2, %v1819_v28 }
 0x5d9   : > { %2002 = vmatprep.mubr.bf16.mxu1 %v6914_v30 }
 0x5e0   : > { %4059 = vmatmul.mubr.msk.bf16.gmra.mrb[36].mxu1 %vm1160_vm2, %v1821_v26 }
 0x5e1   : > { %2012 = vmatprep.mubr.bf16.mxu1 %v6914_v30 }
 0x5e8   : > { %4060 = vmatmul.mubr.msk.bf16.gmra.mrb[40].mxu1 %vm1160_vm2, %v1823_v54 }
 0x5e9   : > { %2022 = vmatprep.mubr.bf16.mxu1 %v6914_v30 }
 0x5f0   : > { %4061 = vmatmul.mubr.msk.bf16.gmra.mrb[44].mxu1 %vm1160_vm2, %v1825_v55 }
 0x5f1   : > { %2032 = vmatprep.mubr.bf16.mxu1 %v6914_v30 }
 0x5f8   : > { %4062 = vmatmul.mubr.msk.bf16.gmra.mrb[48].mxu1 %vm1160_vm2, %v1827_v39 }
 0x5f9   : > { %2042 = vmatprep.mubr.bf16.mxu1 %v6914_v30 }
 0x600   : > { %4063 = vmatmul.mubr.msk.bf16.gmra.mrb[52].mxu1 %vm1160_vm2, %v1829_v16 }
 0x601   : > { %2052 = vmatprep.mubr.bf16.mxu1 %v6914_v30 }
 0x608   : > { %4064 = vmatmul.mubr.msk.bf16.gmra.mrb[56].mxu1 %vm1160_vm2, %v1831_v3 }
 0x609   : > { %2062 = vmatprep.mubr.bf16.mxu1 %v6914_v30 }
 0x610   : > { %4065 = vmatmul.mubr.msk.bf16.gmra.mrb[60].mxu1 %vm1160_vm2, %v1833_v38 }
 0x611   : > { %2072 = vmatprep.mubr.bf16.mxu1 %v6914_v30 }
 0x618   : > { %4066 = vmatmul.mubr.msk.bf16.gmra.mrb[64].mxu1 %vm1160_vm2, %v1835_v8 }
 0x66b   : > { %v1763_v13 = vpop.f32.mrb[0].mxu1 }
 0x66c   : > { %v1765_v56 = vpop.f32.mrb[1].mxu1 }
 0x66d   : > { %v1767_v57 = vpop.f32.mrb[2].mxu1 }
 0x66e   : > { %4389 = vrcp.f32 %v1767_v57  ;;  %v1769_v32 = vpop.f32.mrb[3].mxu1 }
 0x66f   : > { %4391 = vrcp.f32 %v1769_v32 }
 0x673   : > { %v5637_v53 = vpop.f32.mrb[4].mxu1 }
 0x674   : > { %v5639_v31 = vpop.f32.mrb[5].mxu1 }
 0x675   : > { %v5641_v41 = vpop.f32.mrb[6].mxu1  ;;  %v2083_v61 = vmax.f32 %v5637_v53, %v5639_v31 }
 0x676   : > { %v5647_v43 = vpop.f32.mrb[7].mxu1 }
 0x677   : > { %v2086_v40 = vmax.f32 %v5641_v41, %v5647_v43  ;;  %2084 = vmax.xlane.f32.xlu0 %v2083_v61 }
 0x678   : > { %v4390_v14 = vpop.eup %4389 }
 0x679   : > { %v4392_v49 = vpop.eup %4391  ;;  %2087 = vmax.xlane.f32.xlu1 %v2086_v40  ;;  %v1777_v50 = vrot.slane %v4390_v14, %v5645_v7 }
 0x67a   : > { %v1781_v48 = vrot.slane %v4392_v49, %v5645_v7 }
 0x67b   : > { %v5653_v29 = vpop.f32.mrb[8].mxu1  ;;  %v5655_v37 = vmul.f32 %v1777_v50, %v1763_v13 }
 0x67c   : > { %v5657_v19 = vpop.f32.mrb[9].mxu1  ;;  %v5659_v62 = vmul.f32 %v1781_v48, %v1765_v56 }
 0x67d   : > { %6916 = vst [vmem:[#allocation25_spill] sm:$0xff] %v5655_v37  ;;  %v5661_v1 = vpop.f32.mrb[10].mxu1  ;;  %v2089_v51 = vmax.f32 %v5653_v29, %v5657_v19 }
 0x67e   : > { %6917 = vst [vmem:[#allocation26_spill] sm:$0xff] %v5659_v62  ;;  %v5665_v24 = vpop.f32.mrb[11].mxu1 }
 0x67f   : > { %2090 = vmax.xlane.f32.xlu0 %v2089_v51  ;;  %v2092_v60 = vmax.f32 %v5661_v1, %v5665_v24 }
 0x683   : > { %2093 = vmax.xlane.f32.xlu0 %v2092_v60  ;;  %v5669_v58 = vpop.f32.mrb[12].mxu1 }
 0x684   : > { %v5671_v21 = vpop.f32.mrb[13].mxu1 }
 0x685   : > { %v2095_v27 = vmax.f32 %v5669_v58, %v5671_v21  ;;  %v5675_v2 = vpop.f32.mrb[14].mxu1 }
 0x686   : > { %v5677_v35 = vpop.f32.mrb[15].mxu1 }
 0x687   : > { %2096 = vmax.xlane.f32.xlu1 %v2095_v27  ;;  %v2098_v17 = vmax.f32 %v5675_v2, %v5677_v35 }
 0x689   : > { %2099 = vmax.xlane.f32.xlu0 %v2098_v17 }
 0x68b   : > { %v5681_v46 = vpop.f32.mrb[16].mxu1 }
 0x68c   : > { %v5683_v22 = vpop.f32.mrb[17].mxu1 }
 0x68d   : > { %v2101_v47 = vmax.f32 %v5681_v46, %v5683_v22  ;;  %v5687_v23 = vpop.f32.mrb[18].mxu1 }
 0x68e   : > { %v5689_v4 = vpop.f32.mrb[19].mxu1 }
 0x68f   : > { %2102 = vmax.xlane.f32.xlu1 %v2101_v47  ;;  %v2104_v25 = vmax.f32 %v5687_v23, %v5689_v4 }
 0x691   : > { %2105 = vmax.xlane.f32.xlu0 %v2104_v25 }
 0x693   : > { %v5693_v42 = vpop.f32.mrb[20].mxu1 }
 0x694   : > { %v5695_v28 = vpop.f32.mrb[21].mxu1 }
 0x695   : > { %v2107_v26 = vmax.f32 %v5693_v42, %v5695_v28  ;;  %v5699_v54 = vpop.f32.mrb[22].mxu1 }
 0x696   : > { %v5701_v55 = vpop.f32.mrb[23].mxu1 }
 0x697   : > { %2108 = vmax.xlane.f32.xlu1 %v2107_v26  ;;  %v2110_v39 = vmax.f32 %v5699_v54, %v5701_v55 }
 0x699   : > { %2111 = vmax.xlane.f32.xlu0 %v2110_v39 }
 0x69b   : > { %v5705_v16 = vpop.f32.mrb[24].mxu1 }
 0x69c   : > { %v5707_v3 = vpop.f32.mrb[25].mxu1 }
 0x69d   : > { %v2113_v38 = vmax.f32 %v5705_v16, %v5707_v3  ;;  %v5711_v8 = vpop.f32.mrb[26].mxu1 }
 0x69e   : > { %v5713_v13 = vpop.f32.mrb[27].mxu1 }
 0x69f   : > { %v2116_v56 = vmax.f32 %v5711_v8, %v5713_v13  ;;  %2114 = vmax.xlane.f32.xlu1 %v2113_v38 }
 0x6a1   : > { %2117 = vmax.xlane.f32.xlu0 %v2116_v56 }
 0x6a3   : > { %v5717_v57 = vpop.f32.mrb[28].mxu1 }
 0x6a4   : > { %v5719_v9 = vpop.f32.mrb[29].mxu1 }
 0x6a5   : > { %v2119_v32 = vmax.f32 %v5717_v57, %v5719_v9  ;;  %v5723_v36 = vpop.f32.mrb[30].mxu1 }
 0x6a6   : > { %v5725_v61 = vpop.f32.mrb[31].mxu1 }
 0x6a7   : > { %v2122_v40 = vmax.f32 %v5723_v36, %v5725_v61  ;;  %2120 = vmax.xlane.f32.xlu1 %v2119_v32 }
 0x6a9   : > { %2123 = vmax.xlane.f32.xlu0 %v2122_v40 }
 0x6ab   : > { %v5729_v14 = vpop.f32.mrb[32].mxu1 }
 0x6ac   : > { %v5731_v49 = vpop.f32.mrb[33].mxu1 }
 0x6ad   : > { %v2125_v50 = vmax.f32 %v5729_v14, %v5731_v49  ;;  %v5735_v48 = vpop.f32.mrb[34].mxu1 }
 0x6ae   : > { %v5737_v51 = vpop.f32.mrb[35].mxu1 }
 0x6af   : > { %v2128_v60 = vmax.f32 %v5735_v48, %v5737_v51  ;;  %2126 = vmax.xlane.f32.xlu1 %v2125_v50 }
 0x6b1   : > { %2129 = vmax.xlane.f32.xlu0 %v2128_v60 }
 0x6b3   : > { %v5741_v27 = vpop.f32.mrb[36].mxu1 }
 0x6b4   : > { %v5743_v17 = vpop.f32.mrb[37].mxu1 }
 0x6b5   : > { %v2131_v47 = vmax.f32 %v5741_v27, %v5743_v17  ;;  %v5747_v25 = vpop.f32.mrb[38].mxu1 }
 0x6b6   : > { %v5749_v26 = vpop.f32.mrb[39].mxu1 }
 0x6b7   : > { %v2134_v39 = vmax.f32 %v5747_v25, %v5749_v26  ;;  %2132 = vmax.xlane.f32.xlu1 %v2131_v47 }
 0x6b9   : > { %2135 = vmax.xlane.f32.xlu0 %v2134_v39 }
 0x6bb   : > { %v5753_v38 = vpop.f32.mrb[40].mxu1 }
 0x6bc   : > { %v5755_v56 = vpop.f32.mrb[41].mxu1 }
 0x6bd   : > { %v2137_v32 = vmax.f32 %v5753_v38, %v5755_v56  ;;  %v5759_v40 = vpop.f32.mrb[42].mxu1 }
 0x6be   : > { %6918 = vst [vmem:[#allocation27_spill] sm:$0xff] %v5759_v40  ;;  %v5761_v50 = vpop.f32.mrb[43].mxu1 }
 0x6bf   : > { %6919 = vst [vmem:[#allocation28_spill] sm:$0xff] %v5761_v50  ;;  %v2140_v60 = vmax.f32 %v5759_v40, %v5761_v50  ;;  %2138 = vmax.xlane.f32.xlu1 %v2137_v32 }
 0x6c1   : > { %2141 = vmax.xlane.f32.xlu0 %v2140_v60 }
 0x6c3   : > { %v5765_v10 = vpop.f32.mrb[44].mxu1 }
 0x6c4   : > { %6920 = vst [vmem:[#allocation29_spill] sm:$0xff] %v5765_v10  ;;  %v5767_v47 = vpop.f32.mrb[45].mxu1 }
 0x6c5   : > { %6921 = vst [vmem:[#allocation30_spill] sm:$0xff] %v5767_v47  ;;  %v2143_v39 = vmax.f32 %v5765_v10, %v5767_v47  ;;  %v5771_v62 = vpop.f32.mrb[46].mxu1 }
 0x6c6   : > { %6922 = vst [vmem:[#allocation31_spill] sm:$0xff] %v5771_v62  ;;  %v5773_v37 = vpop.f32.mrb[47].mxu1 }
 0x6c7   : > { %6923 = vst [vmem:[#allocation32_spill] sm:$0xff] %v5773_v37  ;;  %v2146_v7 = vmax.f32 %v5771_v62, %v5773_v37  ;;  %2144 = vmax.xlane.f32.xlu1 %v2143_v39 }
 0x6c9   : > { %2147 = vmax.xlane.f32.xlu0 %v2146_v7 }
 0x6cb   : > { %v5777_v30 = vpop.f32.mrb[48].mxu1 }
 0x6cc   : > { %6924 = vst [vmem:[#allocation33_spill] sm:$0xff] %v5777_v30  ;;  %v5779_v32 = vpop.f32.mrb[49].mxu1 }
 0x6cd   : > { %6925 = vst [vmem:[#allocation34_spill] sm:$0xff] %v5779_v32  ;;  %v2149_v60 = vmax.f32 %v5777_v30, %v5779_v32  ;;  %v5783_v50 = vpop.f32.mrb[50].mxu1 }
 0x6ce   : > { %6926 = vst [vmem:[#allocation35_spill] sm:$0xff] %v5783_v50  ;;  %v5785_v40 = vpop.f32.mrb[51].mxu1 }
 0x6cf   : > { %6927 = vst [vmem:[#allocation36_spill] sm:$0xff] %v5785_v40  ;;  %v2152_v47 = vmax.f32 %v5783_v50, %v5785_v40  ;;  %2150 = vmax.xlane.f32.xlu1 %v2149_v60 }
 0x6d1   : > { %2153 = vmax.xlane.f32.xlu0 %v2152_v47 }
 0x6d3   : > { %v5789_v10 = vpop.f32.mrb[52].mxu1 }
 0x6d4   : > { %6928 = vst [vmem:[#allocation37_spill] sm:$0xff] %v5789_v10  ;;  %v5791_v39 = vpop.f32.mrb[53].mxu1 }
 0x6d5   : > { %6929 = vst [vmem:[#allocation38_spill] sm:$0xff] %v5791_v39  ;;  %v2155_v7 = vmax.f32 %v5789_v10, %v5791_v39  ;;  %v5795_v37 = vpop.f32.mrb[54].mxu1 }
 0x6d6   : > { %6930 = vst [vmem:[#allocation39_spill] sm:$0xff] %v5795_v37  ;;  %v5797_v62 = vpop.f32.mrb[55].mxu1 }
 0x6d7   : > { %6931 = vst [vmem:[#allocation40_spill] sm:$0xff] %v5797_v62  ;;  %v2158_v32 = vmax.f32 %v5795_v37, %v5797_v62  ;;  %2156 = vmax.xlane.f32.xlu1 %v2155_v7 }
 0x6d9   : > { %2159 = vmax.xlane.f32.xlu0 %v2158_v32 }
 0x6db   : > { %v5801_v30 = vpop.f32.mrb[56].mxu1 }
 0x6dc   : > { %6932 = vst [vmem:[#allocation41_spill] sm:$0xff] %v5801_v30  ;;  %v5803_v60 = vpop.f32.mrb[57].mxu1 }
 0x6dd   : > { %6933 = vst [vmem:[#allocation42_spill] sm:$0xff] %v5803_v60  ;;  %v2161_v47 = vmax.f32 %v5801_v30, %v5803_v60  ;;  %v5807_v40 = vpop.f32.mrb[58].mxu1 }
 0x6de   : > { %6934 = vst [vmem:[#allocation43_spill] sm:$0xff] %v5807_v40  ;;  %v5809_v50 = vpop.f32.mrb[59].mxu1 }
 0x6df   : > { %6935 = vst [vmem:[#allocation44_spill] sm:$0xff] %v5809_v50  ;;  %v2164_v39 = vmax.f32 %v5807_v40, %v5809_v50  ;;  %2162 = vmax.xlane.f32.xlu1 %v2161_v47 }
 0x6e1   : > { %2165 = vmax.xlane.f32.xlu0 %v2164_v39 }
 0x6e3   : > { %v5813_v10 = vpop.f32.mrb[60].mxu1 }
 0x6e4   : > { %6936 = vst [vmem:[#allocation45_spill] sm:$0xff] %v5813_v10  ;;  %v5815_v7 = vpop.f32.mrb[61].mxu1 }
 0x6e5   : > { %6937 = vst [vmem:[#allocation46_spill] sm:$0xff] %v5815_v7  ;;  %v2167_v32 = vmax.f32 %v5813_v10, %v5815_v7  ;;  %v5819_v62 = vpop.f32.mrb[62].mxu1 }
 0x6e6   : > { %6938 = vst [vmem:[#allocation47_spill] sm:$0xff] %v5819_v62  ;;  %v5821_v37 = vpop.f32.mrb[63].mxu1 }
 0x6e7   : > { %6939 = vst [vmem:[#allocation48_spill] sm:$0xff] %v5821_v37  ;;  %v2170_v60 = vmax.f32 %v5819_v62, %v5821_v37  ;;  %2168 = vmax.xlane.f32.xlu1 %v2167_v32  ;;  %v6944_v32 = vld [vmem:[#allocation9_spill] sm:$0xff] }
 0x6e9   : > { %2171 = vmax.xlane.f32.xlu0 %v2170_v60  ;;  %v1008_v60 = vld [vmem:[%s6720_s7 + $0x28] sm:$0xff] }
 0x6eb   : > { %v5825_v30 = vpop.f32.mrb[64].mxu1 }
 0x6ec   : > { %6940 = vst [vmem:[#allocation49_spill] sm:$0xff] %v5825_v30  ;;  %v5827_v47 = vpop.f32.mrb[65].mxu1 }
 0x6ed   : > { %6941 = vst [vmem:[#allocation17_spill] sm:$0xff] %v5827_v47  ;;  %v2173_v39 = vmax.f32 %v5825_v30, %v5827_v47  ;;  %v5831_v50 = vpop.f32.mrb[66].mxu1  ;;  %v1005_v47 = vld [vmem:[%s6720_s7 + $0x10] sm:$0xff] }
 0x6ee   : > { %6942 = vst [vmem:[#allocation11_spill] sm:$0xff] %v5831_v50  ;;  %v5833_v40 = vpop.f32.mrb[67].mxu1 }
 0x6ef   : > { %6943 = vst [vmem:[#allocation10_spill] sm:$0xff] %v5833_v40  ;;  %v2176_v7 = vmax.f32 %v5831_v50, %v5833_v40  ;;  %2174 = vmax.xlane.f32.xlu1 %v2173_v39 }
 0x6f1   : > { %2177 = vmax.xlane.f32.xlu0 %v2176_v7 }
 0x700   : > { %1038 = vperm.xlu1 %4244, %v1008_v60  }
 0x704   : > { %2462 = vrot.lane.b32.xlu1 %v6944_v32, %s4864_s25  ;;  %v2085_v37 = vpop.xlane.xlu0 %2084 }
 0x705   : > { %v2179_v30 = vsub.f32 %v5637_v53, %v2085_v37  ;;  %v2180_v40 = vsub.f32 %v5639_v31, %v2085_v37 }
 0x706   : > { %v2088_v39 = vpop.xlane.xlu1 %2087 }
 0x707   : > { %v2243_v7 = vmul.f32 1.442695, %v2179_v30  ;;  %v2181_v50 = vsub.f32 %v5641_v41, %v2088_v39  ;;  %v2182_v62 = vsub.f32 %v5647_v43, %v2088_v39  ;;  %1023 = vperm.xlu0 %4243, %v1005_v47   ;;  %v2245_v60 = vmul.f32 1.442695, %v2180_v40 }
 0x708   : > { %2464 = vrot.lane.b32.xlu1 %v5166_v59, %s4864_s25 }
 0x709   : > { %v2247_v32 = vmul.f32 1.442695, %v2181_v50  ;;  %v2249_v10 = vmul.f32 1.442695, %v2182_v62  ;;  %4393 = vpow2.f32 %v2243_v7 }
 0x70b   : > { %4395 = vpow2.f32 %v2247_v32  ;;  %2466 = vrot.lane.b32.xlu0 %v5176_v6, %s4864_s25 }
 0x70c   : > { %4397 = vpow2.f32 %v2249_v10  ;;  %2468 = vrot.lane.b32.xlu1 %v5174_v5, %s4864_s25  ;;  %v2091_v30 = vpop.xlane.xlu0 %2090 }
 0x70d   : > { %4399 = vpow2.f32 %v2245_v60  ;;  %v2183_v53 = vsub.f32 %v5653_v29, %v2091_v30  ;;  %v2184_v31 = vsub.f32 %v5657_v19, %v2091_v30 }
 0x70f   : > { %v2251_v41 = vmul.f32 1.442695, %v2183_v53  ;;  %2470 = vrot.lane.b32.xlu0 %v5184_v18, %s4864_s25  ;;  %v2253_v43 = vmul.f32 1.442695, %v2184_v31 }
 0x710   : > { %2472 = vrot.lane.b32.xlu1 %v5182_v15, %s4864_s25  ;;  %v2094_v37 = vpop.xlane.xlu0 %2093 }
 0x711   : > { %v2185_v10 = vsub.f32 %v5661_v1, %v2094_v37  ;;  %v2186_v62 = vsub.f32 %v5665_v24, %v2094_v37  ;;  %4401 = vpow2.f32 %v2251_v41 }
 0x712   : > { %4403 = vpow2.f32 %v2253_v43 }
 0x713   : > { %v2255_v40 = vmul.f32 1.442695, %v2185_v10  ;;  %v2257_v50 = vmul.f32 1.442695, %v2186_v62  ;;  %2474 = vrot.lane.b32.xlu0 %v5192_v34, %s4864_s25  ;;  %v4394_v29 = vpop.eup %4393 }
 0x714   : > { %v2097_v19 = vpop.xlane.xlu1 %2096  ;;  %2476 = vrot.lane.b32.xlu1 %v5190_v33, %s4864_s25 }
 0x715   : > { %v4396_v47 = vpop.eup %4395  ;;  %4405 = vpow2.f32 %v2255_v40  ;;  %v2187_v32 = vsub.f32 %v5669_v58, %v2097_v19  ;;  %v2188_v1 = vsub.f32 %v5671_v21, %v2097_v19 }
 0x716   : > { %v4398_v39 = vpop.eup %4397  ;;  %4407 = vpow2.f32 %v2257_v50  ;;  %v2100_v24 = vpop.xlane.xlu0 %2099  ;;  %v2371_v7 = vpack.c.bf16 %v4396_v47, %v4394_v29 }
 0x717   : > { %v4400_v60 = vpop.eup %4399  ;;  %v2259_v30 = vmul.f32 1.442695, %v2187_v32  ;;  %v2189_v53 = vsub.f32 %v5675_v2, %v2100_v24  ;;  %v2190_v31 = vsub.f32 %v5677_v35, %v2100_v24  ;;  %2478 = vrot.lane.b32.xlu0 %v5200_v45, %s4864_s25  ;;  %v2261_v58 = vmul.f32 1.442695, %v2188_v1 }
 0x718   : > { %2480 = vrot.lane.b32.xlu1 %v5198_v44, %s4864_s25  ;;  %v2372_v41 = vpack.c.bf16 %v4398_v39, %v4400_v60 }
 0x719   : > { %v2263_v43 = vmul.f32 1.442695, %v2189_v53  ;;  %v2265_v21 = vmul.f32 1.442695, %v2190_v31  ;;  %4409 = vpow2.f32 %v2259_v30 }
 0x71a   : > { %2403 = vmatprep.subr.bf16.mxu0 %v2372_v41 }
 0x71b   : > { %4411 = vpow2.f32 %v2263_v43  ;;  %2404 = vmatpush1.bf16.xpose.msra.mxu0 %v2371_v7  ;;  %2482 = vrot.lane.b32.xlu0 %v5208_v52, %s4864_s25  ;;  %v4402_v35 = vpop.eup %4401 }
 0x71c   : > { %4413 = vpow2.f32 %v2265_v21  ;;  %v2103_v2 = vpop.xlane.xlu1 %2102  ;;  %2484 = vrot.lane.b32.xlu1 %v5206_v20, %s4864_s25  ;;  %v4404_v62 = vpop.eup %4403 }
 0x71d   : > { %4415 = vpow2.f32 %v2261_v58  ;;  %v2191_v37 = vsub.f32 %v5681_v46, %v2103_v2  ;;  %v2192_v10 = vsub.f32 %v5683_v22, %v2103_v2 }
 0x71e   : > { %v2106_v40 = vpop.xlane.xlu0 %2105 }
 0x71f   : > { %v4406_v50 = vpop.eup %4405  ;;  %v2267_v29 = vmul.f32 1.442695, %v2191_v37  ;;  %v2193_v19 = vsub.f32 %v5687_v23, %v2106_v40  ;;  %v2194_v47 = vsub.f32 %v5689_v4, %v2106_v40  ;;  %2486 = vrot.lane.b32.xlu0 %v5216_v0, %s4864_s25  ;;  %v2269_v39 = vmul.f32 1.442695, %v2192_v10 }
 0x720   : > { %v4408_v32 = vpop.eup %4407  ;;  %2488 = vrot.lane.b32.xlu1 %v5214_v63, %s4864_s25  ;;  %v2373_v1 = vpack.c.bf16 %v4406_v50, %v4402_v35 }
 0x721   : > { %v2271_v46 = vmul.f32 1.442695, %v2193_v19  ;;  %v2273_v24 = vmul.f32 1.442695, %v2194_v47  ;;  %v2374_v22 = vpack.c.bf16 %v4408_v32, %v4404_v62  ;;  %4417 = vpow2.f32 %v2267_v29 }
 0x723   : > { %4419 = vpow2.f32 %v2271_v46  ;;  %2405 = vmatprep.subr.bf16.mxu0 %v2374_v22  ;;  %2490 = vrot.lane.b32.xlu0 %v5224_v12, %s4864_s25  ;;  %v4410_v23 = vpop.eup %4409 }
 0x724   : > { %4421 = vpow2.f32 %v2273_v24  ;;  %2406 = vmatpush1.bf16.xpose.msra.mxu0 %v2373_v1  ;;  %v2109_v4 = vpop.xlane.xlu1 %2108  ;;  %2492 = vrot.lane.b32.xlu1 %v5222_v11, %s4864_s25 }
 0x725   : > { %v4412_v7 = vpop.eup %4411  ;;  %4423 = vpow2.f32 %v2269_v39  ;;  %v2195_v60 = vsub.f32 %v5693_v42, %v2109_v4  ;;  %v2196_v30 = vsub.f32 %v5695_v28, %v2109_v4 }
 0x726   : > { %v4414_v53 = vpop.eup %4413  ;;  %v2112_v31 = vpop.xlane.xlu0 %2111  ;;  %v2375_v41 = vpack.c.bf16 %v4412_v7, %v4410_v23 }
 0x727   : > { %v4416_v58 = vpop.eup %4415  ;;  %v2275_v43 = vmul.f32 1.442695, %v2195_v60  ;;  %v2197_v21 = vsub.f32 %v5699_v54, %v2112_v31  ;;  %v2198_v2 = vsub.f32 %v5701_v55, %v2112_v31  ;;  %v2277_v37 = vmul.f32 1.442695, %v2196_v30 }
 0x728   : > { %v2376_v35 = vpack.c.bf16 %v4414_v53, %v4416_v58 }
 0x729   : > { %v2279_v10 = vmul.f32 1.442695, %v2197_v21  ;;  %v2281_v62 = vmul.f32 1.442695, %v2198_v2  ;;  %4425 = vpow2.f32 %v2275_v43 }
 0x72a   : > { %2407 = vmatprep.subr.bf16.mxu0 %v2376_v35 }
 0x72b   : > { %4427 = vpow2.f32 %v2279_v10  ;;  %v4418_v40 = vpop.eup %4417 }
 0x72c   : > { %4429 = vpow2.f32 %v2281_v62  ;;  %2408 = vmatpush1.bf16.xpose.msra.mxu0 %v2375_v41  ;;  %v2115_v42 = vpop.xlane.xlu1 %2114 }
 0x72d   : > { %v4420_v28 = vpop.eup %4419  ;;  %4431 = vpow2.f32 %v2277_v37  ;;  %v2199_v50 = vsub.f32 %v5705_v16, %v2115_v42  ;;  %v2200_v29 = vsub.f32 %v5707_v3, %v2115_v42 }
 0x72e   : > { %v4422_v54 = vpop.eup %4421  ;;  %v2118_v19 = vpop.xlane.xlu0 %2117  ;;  %v2377_v55 = vpack.c.bf16 %v4420_v28, %v4418_v40 }
 0x72f   : > { %v4424_v47 = vpop.eup %4423  ;;  %v2283_v32 = vmul.f32 1.442695, %v2199_v50  ;;  %v2201_v1 = vsub.f32 %v5711_v8, %v2118_v19  ;;  %v2202_v39 = vsub.f32 %v5713_v13, %v2118_v19  ;;  %v2285_v24 = vmul.f32 1.442695, %v2200_v29 }
 0x730   : > { %v2378_v46 = vpack.c.bf16 %v4422_v54, %v4424_v47 }
 0x731   : > { %v2287_v22 = vmul.f32 1.442695, %v2201_v1  ;;  %v2289_v23 = vmul.f32 1.442695, %v2202_v39  ;;  %4433 = vpow2.f32 %v2283_v32 }
 0x732   : > { %2409 = vmatprep.subr.bf16.mxu0 %v2378_v46 }
 0x733   : > { %4435 = vpow2.f32 %v2287_v22  ;;  %v4426_v4 = vpop.eup %4425 }
 0x734   : > { %4437 = vpow2.f32 %v2289_v23  ;;  %2410 = vmatpush1.bf16.xpose.msra.mxu0 %v2377_v55  ;;  %v2121_v16 = vpop.xlane.xlu1 %2120 }
 0x735   : > { %v4428_v3 = vpop.eup %4427  ;;  %4439 = vpow2.f32 %v2285_v24  ;;  %v2203_v7 = vsub.f32 %v5717_v57, %v2121_v16  ;;  %v2204_v60 = vsub.f32 %v5719_v9, %v2121_v16 }
 0x736   : > { %v4430_v8 = vpop.eup %4429  ;;  %v2124_v30 = vpop.xlane.xlu0 %2123  ;;  %v2379_v13 = vpack.c.bf16 %v4428_v3, %v4426_v4 }
 0x737   : > { %v4432_v53 = vpop.eup %4431  ;;  %v2291_v31 = vmul.f32 1.442695, %v2203_v7  ;;  %v2205_v41 = vsub.f32 %v5723_v36, %v2124_v30  ;;  %v2206_v58 = vsub.f32 %v5725_v61, %v2124_v30  ;;  %v2293_v21 = vmul.f32 1.442695, %v2204_v60 }
 0x738   : > { %v2380_v43 = vpack.c.bf16 %v4430_v8, %v4432_v53 }
 0x739   : > { %v2295_v2 = vmul.f32 1.442695, %v2205_v41  ;;  %v2297_v35 = vmul.f32 1.442695, %v2206_v58  ;;  %4441 = vpow2.f32 %v2291_v31  ;;  %v6945_v58 = vld [vmem:[#allocation27_spill] sm:$0xff] }
 0x73a   : > { %2411 = vmatprep.subr.bf16.mxu0 %v2380_v43 }
 0x73b   : > { %4443 = vpow2.f32 %v2295_v2  ;;  %v4434_v37 = vpop.eup %4433 }
 0x73c   : > { %4445 = vpow2.f32 %v2297_v35  ;;  %2412 = vmatpush1.bf16.xpose.msra.mxu0 %v2379_v13  ;;  %v2127_v57 = vpop.xlane.xlu1 %2126 }
 0x73d   : > { %v4436_v9 = vpop.eup %4435  ;;  %4447 = vpow2.f32 %v2293_v21  ;;  %v2207_v10 = vsub.f32 %v5729_v14, %v2127_v57  ;;  %v2208_v62 = vsub.f32 %v5731_v49, %v2127_v57  ;;  %v6946_v21 = vld [vmem:[#allocation28_spill] sm:$0xff] }
 0x73e   : > { %v4438_v36 = vpop.eup %4437  ;;  %v2130_v40 = vpop.xlane.xlu0 %2129  ;;  %v2381_v61 = vpack.c.bf16 %v4436_v9, %v4434_v37 }
 0x73f   : > { %v4440_v42 = vpop.eup %4439  ;;  %v2299_v28 = vmul.f32 1.442695, %v2207_v10  ;;  %v2209_v50 = vsub.f32 %v5735_v48, %v2130_v40  ;;  %v2210_v29 = vsub.f32 %v5737_v51, %v2130_v40  ;;  %v2301_v19 = vmul.f32 1.442695, %v2208_v62  ;;  %v6947_v62 = vld [vmem:[#allocation29_spill] sm:$0xff]  ;;  %v6948_v40 = vld [vmem:[#allocation30_spill] sm:$0xff] }
 0x740   : > { %v2382_v54 = vpack.c.bf16 %v4438_v36, %v4440_v42 }
 0x741   : > { %v2303_v55 = vmul.f32 1.442695, %v2209_v50  ;;  %v2305_v47 = vmul.f32 1.442695, %v2210_v29  ;;  %4449 = vpow2.f32 %v2299_v28 }
 0x742   : > { %2413 = vmatprep.subr.bf16.mxu0 %v2382_v54 }
 0x743   : > { %4451 = vpow2.f32 %v2303_v55  ;;  %v4442_v32 = vpop.eup %4441 }
 0x744   : > { %4453 = vpow2.f32 %v2305_v47  ;;  %2414 = vmatpush1.bf16.xpose.msra.mxu0 %v2381_v61  ;;  %v2133_v14 = vpop.xlane.xlu1 %2132  ;;  %v6950_v47 = vld [vmem:[#allocation32_spill] sm:$0xff] }
 0x745   : > { %v4444_v49 = vpop.eup %4443  ;;  %4455 = vpow2.f32 %v2301_v19  ;;  %v2211_v1 = vsub.f32 %v5741_v27, %v2133_v14  ;;  %v2212_v39 = vsub.f32 %v5743_v17, %v2133_v14  ;;  %v6949_v19 = vld [vmem:[#allocation31_spill] sm:$0xff] }
 0x746   : > { %v4446_v48 = vpop.eup %4445  ;;  %v2136_v46 = vpop.xlane.xlu0 %2135  ;;  %v2383_v51 = vpack.c.bf16 %v4444_v49, %v4442_v32 }
 0x747   : > { %v4448_v24 = vpop.eup %4447  ;;  %v2307_v22 = vmul.f32 1.442695, %v2211_v1  ;;  %v2213_v23 = vsub.f32 %v5747_v25, %v2136_v46  ;;  %v2214_v4 = vsub.f32 %v5749_v26, %v2136_v46  ;;  %v2309_v3 = vmul.f32 1.442695, %v2212_v39 }
 0x748   : > { %v2384_v16 = vpack.c.bf16 %v4446_v48, %v4448_v24  ;;  %v6951_v24 = vld [vmem:[#allocation33_spill] sm:$0xff] }
 0x749   : > { %v2311_v7 = vmul.f32 1.442695, %v2213_v23  ;;  %v2313_v60 = vmul.f32 1.442695, %v2214_v4  ;;  %4457 = vpow2.f32 %v2307_v22  ;;  %v6952_v23 = vld [vmem:[#allocation34_spill] sm:$0xff] }
 0x74a   : > { %2415 = vmatprep.subr.bf16.mxu0 %v2384_v16 }
 0x74b   : > { %4459 = vpow2.f32 %v2311_v7  ;;  %v4450_v8 = vpop.eup %4449 }
 0x74c   : > { %4461 = vpow2.f32 %v2313_v60  ;;  %2416 = vmatpush1.bf16.xpose.msra.mxu0 %v2383_v51  ;;  %v2139_v27 = vpop.xlane.xlu1 %2138 }
 0x74d   : > { %v4452_v17 = vpop.eup %4451  ;;  %4463 = vpow2.f32 %v2309_v3  ;;  %v2215_v30 = vsub.f32 %v5753_v38, %v2139_v27  ;;  %v2216_v13 = vsub.f32 %v5755_v56, %v2139_v27  ;;  %v6953_v27 = vld [vmem:[#allocation35_spill] sm:$0xff] }
 0x74e   : > { %v4454_v25 = vpop.eup %4453  ;;  %v2142_v53 = vpop.xlane.xlu0 %2141  ;;  %v2385_v26 = vpack.c.bf16 %v4452_v17, %v4450_v8 }
 0x74f   : > { %v4456_v31 = vpop.eup %4455  ;;  %v2315_v41 = vmul.f32 1.442695, %v2215_v30  ;;  %v2217_v43 = vsub.f32 %v6945_v58, %v2142_v53  ;;  %v2218_v2 = vsub.f32 %v6946_v21, %v2142_v53  ;;  %v2317_v37 = vmul.f32 1.442695, %v2216_v13  ;;  %v6954_v30 = vld [vmem:[#allocation36_spill] sm:$0xff]  ;;  %v6955_v21 = vld [vmem:[#allocation37_spill] sm:$0xff] }
 0x750   : > { %v2386_v35 = vpack.c.bf16 %v4454_v25, %v4456_v31 }
 0x751   : > { %v2319_v57 = vmul.f32 1.442695, %v2217_v43  ;;  %v2321_v9 = vmul.f32 1.442695, %v2218_v2  ;;  %4465 = vpow2.f32 %v2315_v41 }
 0x752   : > { %2417 = vmatprep.subr.bf16.mxu0 %v2386_v35  ;;  %v6956_v35 = vld [vmem:[#allocation38_spill] sm:$0xff] }
 0x753   : > { %4467 = vpow2.f32 %v2319_v57  ;;  %v4458_v10 = vpop.eup %4457 }
 0x754   : > { %4469 = vpow2.f32 %v2321_v9  ;;  %2418 = vmatpush1.bf16.xpose.msra.mxu0 %v2385_v26  ;;  %v2145_v38 = vpop.xlane.xlu1 %2144 }
 0x755   : > { %v4460_v56 = vpop.eup %4459  ;;  %4471 = vpow2.f32 %v2317_v37  ;;  %v2219_v36 = vsub.f32 %v6947_v62, %v2145_v38  ;;  %v2220_v61 = vsub.f32 %v6948_v40, %v2145_v38  ;;  %v6957_v62 = vld [vmem:[#allocation39_spill] sm:$0xff]  ;;  %v6958_v40 = vld [vmem:[#allocation40_spill] sm:$0xff] }
 0x756   : > { %v4462_v42 = vpop.eup %4461  ;;  %v2148_v28 = vpop.xlane.xlu0 %2147  ;;  %v2387_v50 = vpack.c.bf16 %v4460_v56, %v4458_v10 }
 0x757   : > { %v4464_v29 = vpop.eup %4463  ;;  %v2323_v54 = vmul.f32 1.442695, %v2219_v36  ;;  %v2221_v55 = vsub.f32 %v6949_v19, %v2148_v28  ;;  %v2222_v32 = vsub.f32 %v6950_v47, %v2148_v28  ;;  %v2325_v49 = vmul.f32 1.442695, %v2220_v61  ;;  %v6959_v47 = vld [vmem:[#allocation41_spill] sm:$0xff] }
 0x758   : > { %v2388_v14 = vpack.c.bf16 %v4462_v42, %v4464_v29 }
 0x759   : > { %v2327_v1 = vmul.f32 1.442695, %v2221_v55  ;;  %v2329_v39 = vmul.f32 1.442695, %v2222_v32  ;;  %4473 = vpow2.f32 %v2323_v54 }
 0x75a   : > { %2419 = vmatprep.subr.bf16.mxu0 %v2388_v14  ;;  %v6960_v14 = vld [vmem:[#allocation42_spill] sm:$0xff] }
 0x75b   : > { %4475 = vpow2.f32 %v2327_v1  ;;  %v4466_v48 = vpop.eup %4465 }
 0x75c   : > { %4477 = vpow2.f32 %v2329_v39  ;;  %2420 = vmatpush1.bf16.xpose.msra.mxu0 %v2387_v50  ;;  %v2151_v46 = vpop.xlane.xlu1 %2150 }
 0x75d   : > { %v4468_v51 = vpop.eup %4467  ;;  %4479 = vpow2.f32 %v2325_v49  ;;  %v2223_v22 = vsub.f32 %v6951_v24, %v2151_v46  ;;  %v2224_v4 = vsub.f32 %v6952_v23, %v2151_v46  ;;  %v6961_v24 = vld [vmem:[#allocation43_spill] sm:$0xff]  ;;  %v6962_v23 = vld [vmem:[#allocation44_spill] sm:$0xff] }
 0x75e   : > { %v4470_v16 = vpop.eup %4469  ;;  %v2154_v3 = vpop.xlane.xlu0 %2153  ;;  %v2389_v7 = vpack.c.bf16 %v4468_v51, %v4466_v48 }
 0x75f   : > { %v4472_v60 = vpop.eup %4471  ;;  %v2331_v8 = vmul.f32 1.442695, %v2223_v22  ;;  %v2225_v17 = vsub.f32 %v6953_v27, %v2154_v3  ;;  %v2226_v13 = vsub.f32 %v6954_v30, %v2154_v3  ;;  %v2333_v53 = vmul.f32 1.442695, %v2224_v4  ;;  %v6963_v30 = vld [vmem:[#allocation45_spill] sm:$0xff] }
 0x760   : > { %v2390_v25 = vpack.c.bf16 %v4470_v16, %v4472_v60 }
 0x761   : > { %v2335_v26 = vmul.f32 1.442695, %v2225_v17  ;;  %v2337_v31 = vmul.f32 1.442695, %v2226_v13  ;;  %4481 = vpow2.f32 %v2331_v8 }
 0x762   : > { %2421 = vmatprep.subr.bf16.mxu0 %v2390_v25  ;;  %v6964_v25 = vld [vmem:[#allocation46_spill] sm:$0xff] }
 0x763   : > { %4483 = vpow2.f32 %v2335_v26  ;;  %v4474_v41 = vpop.eup %4473 }
 0x764   : > { %4485 = vpow2.f32 %v2337_v31  ;;  %2422 = vmatpush1.bf16.xpose.msra.mxu0 %v2389_v7  ;;  %v2157_v58 = vpop.xlane.xlu1 %2156 }
 0x765   : > { %v4476_v43 = vpop.eup %4475  ;;  %4487 = vpow2.f32 %v2333_v53  ;;  %v2227_v2 = vsub.f32 %v6955_v21, %v2157_v58  ;;  %v2228_v37 = vsub.f32 %v6956_v35, %v2157_v58 }
 0x766   : > { %v4478_v57 = vpop.eup %4477  ;;  %v2160_v9 = vpop.xlane.xlu0 %2159  ;;  %v2391_v10 = vpack.c.bf16 %v4476_v43, %v4474_v41 }
 0x767   : > { %v4480_v38 = vpop.eup %4479  ;;  %v2339_v56 = vmul.f32 1.442695, %v2227_v2  ;;  %v2229_v36 = vsub.f32 %v6957_v62, %v2160_v9  ;;  %v2230_v61 = vsub.f32 %v6958_v40, %v2160_v9  ;;  %v2341_v28 = vmul.f32 1.442695, %v2228_v37  ;;  %v6965_v2 = vld [vmem:[#allocation47_spill] sm:$0xff]  ;;  %v6966_v37 = vld [vmem:[#allocation48_spill] sm:$0xff] }
 0x768   : > { %v2392_v42 = vpack.c.bf16 %v4478_v57, %v4480_v38  ;;  %v6967_v40 = vld [vmem:[#allocation49_spill] sm:$0xff] }
 0x769   : > { %v2343_v50 = vmul.f32 1.442695, %v2229_v36  ;;  %v2345_v29 = vmul.f32 1.442695, %v2230_v61  ;;  %4489 = vpow2.f32 %v2339_v56 }
 0x76a   : > { %2423 = vmatprep.subr.bf16.mxu0 %v2392_v42  ;;  %v6968_v42 = vld [vmem:[#allocation17_spill] sm:$0xff] }
 0x76b   : > { %4491 = vpow2.f32 %v2343_v50  ;;  %v4482_v54 = vpop.eup %4481 }
 0x76c   : > { %4493 = vpow2.f32 %v2345_v29  ;;  %2424 = vmatpush1.bf16.xpose.msra.mxu0 %v2391_v10  ;;  %v2163_v19 = vpop.xlane.xlu1 %2162 }
 0x76d   : > { %v4484_v55 = vpop.eup %4483  ;;  %4495 = vpow2.f32 %v2341_v28  ;;  %v2231_v32 = vsub.f32 %v6959_v47, %v2163_v19  ;;  %v2232_v49 = vsub.f32 %v6960_v14, %v2163_v19 }
 0x76e   : > { %v4486_v1 = vpop.eup %4485  ;;  %v2166_v39 = vpop.xlane.xlu0 %2165  ;;  %v2393_v48 = vpack.c.bf16 %v4484_v55, %v4482_v54 }
 0x76f   : > { %v4488_v46 = vpop.eup %4487  ;;  %v2347_v51 = vmul.f32 1.442695, %v2231_v32  ;;  %v2233_v22 = vsub.f32 %v6961_v24, %v2166_v39  ;;  %v2234_v4 = vsub.f32 %v6962_v23, %v2166_v39  ;;  %v2349_v3 = vmul.f32 1.442695, %v2232_v49  ;;  %v6969_v32 = vld [vmem:[#allocation11_spill] sm:$0xff]  ;;  %v6970_v49 = vld [vmem:[#allocation10_spill] sm:$0xff] }
 0x770   : > { %v2394_v16 = vpack.c.bf16 %v4486_v1, %v4488_v46  ;;  %v6971_v24 = vld [vmem:[#allocation19_spill] sm:$0xff] }
 0x771   : > { %v2351_v7 = vmul.f32 1.442695, %v2233_v22  ;;  %v2353_v60 = vmul.f32 1.442695, %v2234_v4  ;;  %4497 = vpow2.f32 %v2347_v51 }
 0x772   : > { %2425 = vmatprep.subr.bf16.mxu0 %v2394_v16  ;;  %v6972_v16 = vmov 1.0  }
 0x773   : > { %4499 = vpow2.f32 %v2351_v7  ;;  %v4490_v8 = vpop.eup %4489 }
 0x774   : > { %4501 = vpow2.f32 %v2353_v60  ;;  %2426 = vmatpush1.bf16.xpose.msra.mxu0 %v2393_v48  ;;  %v2169_v27 = vpop.xlane.xlu1 %2168 }
 0x775   : > { %v4492_v17 = vpop.eup %4491  ;;  %4503 = vpow2.f32 %v2349_v3  ;;  %v2235_v13 = vsub.f32 %v6963_v30, %v2169_v27  ;;  %v2236_v53 = vsub.f32 %v6964_v25, %v2169_v27 }
 0x776   : > { %v4494_v26 = vpop.eup %4493  ;;  %v2172_v31 = vpop.xlane.xlu0 %2171  ;;  %v2395_v41 = vpack.c.bf16 %v4492_v17, %v4490_v8 }
 0x777   : > { %v4496_v58 = vpop.eup %4495  ;;  %v2355_v43 = vmul.f32 1.442695, %v2235_v13  ;;  %v2357_v21 = vmul.f32 1.442695, %v2236_v53  ;;  %v2237_v35 = vsub.f32 %v6965_v2, %v2172_v31  ;;  %v2238_v57 = vsub.f32 %v6966_v37, %v2172_v31  ;;  %v6973_v31 = vld [vmem:[#allocation13_spill] sm:$0xff] }
 0x778   : > { %v2396_v9 = vpack.c.bf16 %v4494_v26, %v4496_v58 }
 0x779   : > { %4505 = vpow2.f32 %v2355_v43  ;;  %v2359_v10 = vmul.f32 1.442695, %v2237_v35  ;;  %v2361_v38 = vmul.f32 1.442695, %v2238_v57  ;;  %v6974_v43 = vld [vmem:[#allocation12_spill] sm:$0xff]  ;;  %v6975_v35 = vld [vmem:[#allocation18_spill] sm:$0xff] }
 0x77a   : > { %4507 = vpow2.f32 %v2357_v21  ;;  %2427 = vmatprep.subr.bf16.mxu0 %v2396_v9 }
 0x77b   : > { %4509 = vpow2.f32 %v2359_v10  ;;  %v4498_v56 = vpop.eup %4497 }
 0x77c   : > { %4511 = vpow2.f32 %v2361_v38  ;;  %2428 = vmatpush1.bf16.xpose.msra.mxu0 %v2395_v41  ;;  %v2175_v62 = vpop.xlane.xlu1 %2174  ;;  %v6976_v38 = vmov 0  }
 0x77d   : > { %v4500_v36 = vpop.eup %4499  ;;  %v2239_v61 = vsub.f32 %v6967_v40, %v2175_v62  ;;  %v2240_v28 = vsub.f32 %v6968_v42, %v2175_v62 }
 0x77e   : > { %v4502_v50 = vpop.eup %4501  ;;  %v2178_v29 = vpop.xlane.xlu0 %2177  ;;  %v2397_v54 = vpack.c.bf16 %v4500_v36, %v4498_v56 }
 0x77f   : > { %v4504_v19 = vpop.eup %4503  ;;  %v2363_v55 = vmul.f32 1.442695, %v2239_v61  ;;  %v2365_v47 = vmul.f32 1.442695, %v2240_v28  ;;  %v2241_v14 = vsub.f32 %v6969_v32, %v2178_v29  ;;  %v2242_v1 = vsub.f32 %v6970_v49, %v2178_v29 }
 0x780   : > { %v1039_v39 = vpop.permute.xlu1 %1038  ;;  %v2398_v48 = vpack.c.bf16 %v4502_v50, %v4504_v19 }
 0x781   : > { %4513 = vpow2.f32 %v2363_v55  ;;  %v2367_v46 = vmul.f32 1.442695, %v2241_v14  ;;  %v2369_v51 = vmul.f32 1.442695, %v2242_v1  ;;  %v1144_v22 = vadd.f32 %v6971_v24, %v1039_v39 }
 0x782   : > { %4515 = vpow2.f32 %v2365_v47  ;;  %2429 = vmatprep.subr.bf16.mxu0 %v2398_v48  ;;  %v1142_v37 = vadd.f32 %v6975_v35, %v1039_v39 }
 0x783   : > { %v4506_v23 = vpop.eup %4505  ;;  %4517 = vpow2.f32 %v2367_v46  ;;  %v1787_v3 = vpack.c.bf16 %v6972_v16, %v1144_v22 }
 0x784   : > { %v4508_v4 = vpop.eup %4507  ;;  %4519 = vpow2.f32 %v2369_v51  ;;  %2430 = vmatpush1.bf16.xpose.msra.mxu0 %v2397_v54  ;;  %v1786_v9 = vpack.c.bf16 %v6972_v16, %v1142_v37  ;;  %v2463_v56 = vpop.permute.xlu1 %2462 }
 0x785   : > { %v4510_v7 = vpop.eup %4509  ;;  %2435 = vmatprep.mubr.bf16.mxu0 %v1787_v3 }
 0x786   : > { %v4512_v60 = vpop.eup %4511  ;;  %v2399_v8 = vpack.c.bf16 %v4510_v7, %v4506_v23  ;;  %v1024_v13 = vpop.permute.xlu0 %1023 }
 0x787   : > { %v2400_v27 = vpack.c.bf16 %v4512_v60, %v4508_v4  ;;  %v1130_v41 = vadd.f32 %v6973_v31, %v1024_v13  ;;  %v1128_v21 = vadd.f32 %v6974_v43, %v1024_v13 }
 0x788   : > { %v2465_v62 = vpop.permute.xlu1 %2464 }
 0x789   : > { %2431 = vmatprep.subr.bf16.mxu0 %v2400_v27  ;;  %v2459_v2 = vpack.c.bf16 %v1130_v41, %v1130_v41  ;;  %v2458_v57 = vpack.c.bf16 %v1128_v21, %v1128_v21 }
 0x78a   : > { %v2467_v36 = vpop.permute.xlu0 %2466 }
 0x78b   : > { %v4514_v17 = vpop.eup %4513  ;;  %v2543_v10 = vsel %vm1209_vm1, %v2458_v57, 0 }
 0x78c   : > { %v4516_v30 = vpop.eup %4515  ;;  %2432 = vmatpush1.bf16.xpose.msra.mxu0 %v2399_v8  ;;  %v2469_v40 = vpop.permute.xlu1 %2468  ;;  %v6977_v8 = vld [vmem:[#allocation24_spill] sm:$0xff] }
 0x78d   : > { %v4518_v25 = vpop.eup %4517 }
 0x78e   : > { %v4520_v53 = vpop.eup %4519  ;;  %v2401_v26 = vpack.c.bf16 %v4518_v25, %v4514_v17  ;;  %v2471_v61 = vpop.permute.xlu0 %2470 }
 0x78f   : > { %v2402_v58 = vpack.c.bf16 %v4520_v53, %v4516_v30 }
 0x790   : > { %v2473_v42 = vpop.permute.xlu1 %2472 }
 0x791   : > { %2433 = vmatprep.subr.bf16.mxu0 %v2402_v58 }
 0x792   : > { %v2475_v28 = vpop.permute.xlu0 %2474 }
 0x794   : > { %2434 = vmatpush1.bf16.xpose.msra.mxu0 %v2401_v26  ;;  %v2477_v50 = vpop.permute.xlu1 %2476 }
 0x795   : > { %4067 = vmatprep.subr.msk.bf16.mxu0 %vm1209_vm1, %v2459_v2 }
 0x796   : > { %v2479_v29 = vpop.permute.xlu0 %2478 }
 0x798   : > { %v2481_v54 = vpop.permute.xlu1 %2480 }
 0x79a   : > { %v2483_v19 = vpop.permute.xlu0 %2482 }
 0x79b   : > { %2436 = vmatmul.mubr.bf16.vlgmr.msra.gmra.mrb[116].mxu0 %v1786_v9 }
 0x79c   : > { %2549 = vmatpush1.bf16.msra.mxu0 %v2543_v10  ;;  %2580 = vmatprep.mubr.bf16.mxu0 %v6976_v38  ;;  %v2485_v55 = vpop.permute.xlu1 %2484 }
 0x79e   : > { %v2487_v47 = vpop.permute.xlu0 %2486 }
 0x7a0   : > { %v2489_v32 = vpop.permute.xlu1 %2488 }
 0x7a2   : > { %v2491_v14 = vpop.permute.xlu0 %2490 }
 0x7a3   : > { %4068 = vmatmul.mubr.msk.bf16.vlgmr.msra.gmra.mrb[120].mxu0 %vm1160_vm2, %v2463_v56 }
 0x7a4   : > { %2590 = vmatprep.mubr.bf16.mxu0 %v6976_v38  ;;  %v2493_v49 = vpop.permute.xlu1 %2492 }
 0x7ab   : > { %4069 = vmatmul.mubr.msk.bf16.gmra.mrb[124].mxu0 %vm1160_vm2, %v2465_v62 }
 0x7ac   : > { %2600 = vmatprep.mubr.bf16.mxu0 %v6976_v38 }
 0x7b3   : > { %4070 = vmatmul.mubr.msk.bf16.gmra.mrb[128].mxu0 %vm1160_vm2, %v2467_v36 }
 0x7b4   : > { %2610 = vmatprep.mubr.bf16.mxu0 %v6976_v38 }
 0x7bb   : > { %4071 = vmatmul.mubr.msk.bf16.gmra.mrb[132].mxu0 %vm1160_vm2, %v2469_v40 }
 0x7bc   : > { %2620 = vmatprep.mubr.bf16.mxu0 %v6976_v38 }
 0x7c3   : > { %4072 = vmatmul.mubr.msk.bf16.gmra.mrb[136].mxu0 %vm1160_vm2, %v2471_v61 }
 0x7c4   : > { %2630 = vmatprep.mubr.bf16.mxu0 %v6976_v38 }
 0x7cb   : > { %4073 = vmatmul.mubr.msk.bf16.gmra.mrb[140].mxu0 %vm1160_vm2, %v2473_v42 }
 0x7cc   : > { %2640 = vmatprep.mubr.bf16.mxu0 %v6976_v38 }
 0x7d3   : > { %4074 = vmatmul.mubr.msk.bf16.gmra.mrb[144].mxu0 %vm1160_vm2, %v2475_v28 }
 0x7d4   : > { %2650 = vmatprep.mubr.bf16.mxu0 %v6976_v38 }
 0x7db   : > { %4075 = vmatmul.mubr.msk.bf16.gmra.mrb[148].mxu0 %vm1160_vm2, %v2477_v50 }
 0x7dc   : > { %2660 = vmatprep.mubr.bf16.mxu0 %v6976_v38 }
 0x7e3   : > { %4076 = vmatmul.mubr.msk.bf16.gmra.mrb[152].mxu0 %vm1160_vm2, %v2479_v29 }
 0x7e4   : > { %2670 = vmatprep.mubr.bf16.mxu0 %v6976_v38 }
 0x7eb   : > { %4077 = vmatmul.mubr.msk.bf16.gmra.mrb[156].mxu0 %vm1160_vm2, %v2481_v54 }
 0x7ec   : > { %2680 = vmatprep.mubr.bf16.mxu0 %v6976_v38 }
 0x7f3   : > { %4078 = vmatmul.mubr.msk.bf16.gmra.mrb[160].mxu0 %vm1160_vm2, %v2483_v19 }
 0x7f4   : > { %2690 = vmatprep.mubr.bf16.mxu0 %v6976_v38 }
 0x7fb   : > { %4079 = vmatmul.mubr.msk.bf16.gmra.mrb[164].mxu0 %vm1160_vm2, %v2485_v55 }
 0x7fc   : > { %2700 = vmatprep.mubr.bf16.mxu0 %v6976_v38 }
 0x803   : > { %4080 = vmatmul.mubr.msk.bf16.gmra.mrb[168].mxu0 %vm1160_vm2, %v2487_v47 }
 0x804   : > { %2710 = vmatprep.mubr.bf16.mxu0 %v6976_v38 }
 0x80b   : > { %4081 = vmatmul.mubr.msk.bf16.gmra.mrb[172].mxu0 %vm1160_vm2, %v2489_v32 }
 0x80c   : > { %2720 = vmatprep.mubr.bf16.mxu0 %v6976_v38 }
 0x813   : > { %4082 = vmatmul.mubr.msk.bf16.gmra.mrb[176].mxu0 %vm1160_vm2, %v2491_v14 }
 0x814   : > { %2730 = vmatprep.mubr.bf16.mxu0 %v6976_v38 }
 0x81b   : > { %4083 = vmatmul.mubr.msk.bf16.gmra.mrb[180].mxu0 %vm1160_vm2, %v2493_v49 }
 0x86e   : > { %v2437_v1 = vpop.f32.mrb[116].mxu0 }
 0x86f   : > { %v2439_v39 = vpop.f32.mrb[117].mxu0 }
 0x870   : > { %v2441_v48 = vpop.f32.mrb[118].mxu0 }
 0x871   : > { %4521 = vrcp.f32 %v2441_v48  ;;  %v2443_v46 = vpop.f32.mrb[119].mxu0 }
 0x872   : > { %4523 = vrcp.f32 %v2443_v46 }
 0x876   : > { %v5979_v51 = vpop.f32.mrb[120].mxu0 }
 0x877   : > { %v5981_v24 = vpop.f32.mrb[121].mxu0 }
 0x878   : > { %v2741_v22 = vmax.f32 %v5979_v51, %v5981_v24  ;;  %v5985_v23 = vpop.f32.mrb[122].mxu0 }
 0x879   : > { %v5987_v4 = vpop.f32.mrb[123].mxu0 }
 0x87a   : > { %v2744_v3 = vmax.f32 %v5985_v23, %v5987_v4  ;;  %2742 = vmax.xlane.f32.xlu0 %v2741_v22 }
 0x87b   : > { %v4522_v7 = vpop.eup %4521 }
 0x87c   : > { %v4524_v60 = vpop.eup %4523  ;;  %2745 = vmax.xlane.f32.xlu1 %v2744_v3  ;;  %v2451_v27 = vrot.slane %v4522_v7, %v6977_v8 }
 0x87d   : > { %v2455_v17 = vrot.slane %v4524_v60, %v6977_v8 }
 0x87e   : > { %v5993_v30 = vpop.f32.mrb[124].mxu0  ;;  %v5995_v13 = vmul.f32 %v2451_v27, %v2437_v1 }
 0x87f   : > { %v5997_v25 = vpop.f32.mrb[125].mxu0  ;;  %v5999_v53 = vmul.f32 %v2455_v17, %v2439_v39 }
 0x880   : > { %6978 = vst [vmem:[#allocation16_spill] sm:$0xff] %v5995_v13  ;;  %v2747_v26 = vmax.f32 %v5993_v30, %v5997_v25  ;;  %v6003_v31 = vpop.f32.mrb[126].mxu0 }
 0x881   : > { %6979 = vst [vmem:[#allocation27_spill] sm:$0xff] %v5999_v53  ;;  %v6007_v43 = vpop.f32.mrb[127].mxu0 }
 0x882   : > { %v2750_v35 = vmax.f32 %v6003_v31, %v6007_v43  ;;  %2748 = vmax.xlane.f32.xlu0 %v2747_v26 }
 0x886   : > { %2751 = vmax.xlane.f32.xlu0 %v2750_v35  ;;  %v6013_v37 = vpop.f32.mrb[128].mxu0 }
 0x887   : > { %v6015_v57 = vpop.f32.mrb[129].mxu0 }
 0x888   : > { %v2753_v9 = vmax.f32 %v6013_v37, %v6015_v57  ;;  %v6019_v10 = vpop.f32.mrb[130].mxu0 }
 0x889   : > { %v6021_v56 = vpop.f32.mrb[131].mxu0 }
 0x88a   : > { %v2756_v62 = vmax.f32 %v6019_v10, %v6021_v56  ;;  %2754 = vmax.xlane.f32.xlu1 %v2753_v9 }
 0x88c   : > { %2757 = vmax.xlane.f32.xlu0 %v2756_v62 }
 0x88e   : > { %v6025_v36 = vpop.f32.mrb[132].mxu0 }
 0x88f   : > { %v6027_v40 = vpop.f32.mrb[133].mxu0 }
 0x890   : > { %v2759_v61 = vmax.f32 %v6025_v36, %v6027_v40  ;;  %v6031_v42 = vpop.f32.mrb[134].mxu0 }
 0x891   : > { %v6033_v28 = vpop.f32.mrb[135].mxu0 }
 0x892   : > { %v2762_v50 = vmax.f32 %v6031_v42, %v6033_v28  ;;  %2760 = vmax.xlane.f32.xlu1 %v2759_v61 }
 0x894   : > { %2763 = vmax.xlane.f32.xlu0 %v2762_v50 }
 0x896   : > { %v6037_v29 = vpop.f32.mrb[136].mxu0 }
 0x897   : > { %v6039_v54 = vpop.f32.mrb[137].mxu0 }
 0x898   : > { %v2765_v19 = vmax.f32 %v6037_v29, %v6039_v54  ;;  %v6043_v55 = vpop.f32.mrb[138].mxu0 }
 0x899   : > { %v6045_v47 = vpop.f32.mrb[139].mxu0 }
 0x89a   : > { %v2768_v32 = vmax.f32 %v6043_v55, %v6045_v47  ;;  %2766 = vmax.xlane.f32.xlu1 %v2765_v19 }
 0x89c   : > { %2769 = vmax.xlane.f32.xlu0 %v2768_v32 }
 0x89e   : > { %v6049_v14 = vpop.f32.mrb[140].mxu0 }
 0x89f   : > { %v6051_v49 = vpop.f32.mrb[141].mxu0 }
 0x8a0   : > { %v2771_v1 = vmax.f32 %v6049_v14, %v6051_v49  ;;  %v6055_v39 = vpop.f32.mrb[142].mxu0 }
 0x8a1   : > { %v6057_v48 = vpop.f32.mrb[143].mxu0 }
 0x8a2   : > { %v2774_v46 = vmax.f32 %v6055_v39, %v6057_v48  ;;  %2772 = vmax.xlane.f32.xlu1 %v2771_v1 }
 0x8a4   : > { %2775 = vmax.xlane.f32.xlu0 %v2774_v46 }
 0x8a6   : > { %v6061_v22 = vpop.f32.mrb[144].mxu0 }
 0x8a7   : > { %v6063_v3 = vpop.f32.mrb[145].mxu0 }
 0x8a8   : > { %v2777_v7 = vmax.f32 %v6061_v22, %v6063_v3  ;;  %v6067_v60 = vpop.f32.mrb[146].mxu0 }
 0x8a9   : > { %v6069_v27 = vpop.f32.mrb[147].mxu0 }
 0x8aa   : > { %v2780_v17 = vmax.f32 %v6067_v60, %v6069_v27  ;;  %2778 = vmax.xlane.f32.xlu1 %v2777_v7 }
 0x8ac   : > { %2781 = vmax.xlane.f32.xlu0 %v2780_v17 }
 0x8ae   : > { %v6073_v26 = vpop.f32.mrb[148].mxu0 }
 0x8af   : > { %v6075_v35 = vpop.f32.mrb[149].mxu0 }
 0x8b0   : > { %v2783_v9 = vmax.f32 %v6073_v26, %v6075_v35  ;;  %v6079_v62 = vpop.f32.mrb[150].mxu0 }
 0x8b1   : > { %v6081_v61 = vpop.f32.mrb[151].mxu0 }
 0x8b2   : > { %v2786_v50 = vmax.f32 %v6079_v62, %v6081_v61  ;;  %2784 = vmax.xlane.f32.xlu1 %v2783_v9 }
 0x8b4   : > { %2787 = vmax.xlane.f32.xlu0 %v2786_v50 }
 0x8b6   : > { %v6085_v19 = vpop.f32.mrb[152].mxu0 }
 0x8b7   : > { %v6087_v32 = vpop.f32.mrb[153].mxu0 }
 0x8b8   : > { %v2789_v1 = vmax.f32 %v6085_v19, %v6087_v32  ;;  %v6091_v46 = vpop.f32.mrb[154].mxu0 }
 0x8b9   : > { %v6093_v7 = vpop.f32.mrb[155].mxu0 }
 0x8ba   : > { %v2792_v17 = vmax.f32 %v6091_v46, %v6093_v7  ;;  %2790 = vmax.xlane.f32.xlu1 %v2789_v1 }
 0x8bc   : > { %2793 = vmax.xlane.f32.xlu0 %v2792_v17 }
 0x8be   : > { %v6097_v58 = vpop.f32.mrb[156].mxu0 }
 0x8bf   : > { %v6099_v9 = vpop.f32.mrb[157].mxu0 }
 0x8c0   : > { %v2795_v50 = vmax.f32 %v6097_v58, %v6099_v9  ;;  %v6103_v2 = vpop.f32.mrb[158].mxu0 }
 0x8c1   : > { %6982 = vst [vmem:[#allocation28_spill] sm:$0xff] %v6103_v2  ;;  %v6105_v41 = vpop.f32.mrb[159].mxu0 }
 0x8c2   : > { %6983 = vst [vmem:[#allocation29_spill] sm:$0xff] %v6105_v41  ;;  %v2798_v13 = vmax.f32 %v6103_v2, %v6105_v41  ;;  %2796 = vmax.xlane.f32.xlu1 %v2795_v50 }
 0x8c4   : > { %2799 = vmax.xlane.f32.xlu0 %v2798_v13 }
 0x8c6   : > { %v6109_v21 = vpop.f32.mrb[160].mxu0 }
 0x8c7   : > { %6984 = vst [vmem:[#allocation30_spill] sm:$0xff] %v6109_v21  ;;  %v6111_v1 = vpop.f32.mrb[161].mxu0 }
 0x8c8   : > { %6985 = vst [vmem:[#allocation31_spill] sm:$0xff] %v6111_v1  ;;  %v2801_v17 = vmax.f32 %v6109_v21, %v6111_v1  ;;  %v6115_v53 = vpop.f32.mrb[162].mxu0 }
 0x8c9   : > { %6986 = vst [vmem:[#allocation32_spill] sm:$0xff] %v6115_v53  ;;  %v6117_v8 = vpop.f32.mrb[163].mxu0 }
 0x8ca   : > { %6987 = vst [vmem:[#allocation33_spill] sm:$0xff] %v6117_v8  ;;  %v2804_v38 = vmax.f32 %v6115_v53, %v6117_v8  ;;  %2802 = vmax.xlane.f32.xlu1 %v2801_v17 }
 0x8cc   : > { %2805 = vmax.xlane.f32.xlu0 %v2804_v38 }
 0x8ce   : > { %v6121_v16 = vpop.f32.mrb[164].mxu0 }
 0x8cf   : > { %6988 = vst [vmem:[#allocation34_spill] sm:$0xff] %v6121_v16  ;;  %v6123_v50 = vpop.f32.mrb[165].mxu0 }
 0x8d0   : > { %6989 = vst [vmem:[#allocation35_spill] sm:$0xff] %v6123_v50  ;;  %v2807_v13 = vmax.f32 %v6121_v16, %v6123_v50  ;;  %v6127_v41 = vpop.f32.mrb[166].mxu0 }
 0x8d1   : > { %6990 = vst [vmem:[#allocation36_spill] sm:$0xff] %v6127_v41  ;;  %v6129_v2 = vpop.f32.mrb[167].mxu0 }
 0x8d2   : > { %6991 = vst [vmem:[#allocation37_spill] sm:$0xff] %v6129_v2  ;;  %v2810_v1 = vmax.f32 %v6127_v41, %v6129_v2  ;;  %2808 = vmax.xlane.f32.xlu1 %v2807_v13 }
 0x8d4   : > { %2811 = vmax.xlane.f32.xlu0 %v2810_v1 }
 0x8d6   : > { %v6133_v21 = vpop.f32.mrb[168].mxu0 }
 0x8d7   : > { %6992 = vst [vmem:[#allocation38_spill] sm:$0xff] %v6133_v21  ;;  %v6135_v17 = vpop.f32.mrb[169].mxu0 }
 0x8d8   : > { %6993 = vst [vmem:[#allocation39_spill] sm:$0xff] %v6135_v17  ;;  %v2813_v38 = vmax.f32 %v6133_v21, %v6135_v17  ;;  %v6139_v8 = vpop.f32.mrb[170].mxu0 }
 0x8d9   : > { %6994 = vst [vmem:[#allocation40_spill] sm:$0xff] %v6139_v8  ;;  %v6141_v53 = vpop.f32.mrb[171].mxu0 }
 0x8da   : > { %6995 = vst [vmem:[#allocation41_spill] sm:$0xff] %v6141_v53  ;;  %v2816_v50 = vmax.f32 %v6139_v8, %v6141_v53  ;;  %2814 = vmax.xlane.f32.xlu1 %v2813_v38 }
 0x8dc   : > { %2817 = vmax.xlane.f32.xlu0 %v2816_v50 }
 0x8de   : > { %v6145_v16 = vpop.f32.mrb[172].mxu0 }
 0x8df   : > { %6996 = vst [vmem:[#allocation42_spill] sm:$0xff] %v6145_v16  ;;  %v6147_v13 = vpop.f32.mrb[173].mxu0 }
 0x8e0   : > { %6997 = vst [vmem:[#allocation43_spill] sm:$0xff] %v6147_v13  ;;  %v2819_v1 = vmax.f32 %v6145_v16, %v6147_v13  ;;  %v6151_v2 = vpop.f32.mrb[174].mxu0 }
 0x8e1   : > { %6998 = vst [vmem:[#allocation44_spill] sm:$0xff] %v6151_v2  ;;  %v6153_v41 = vpop.f32.mrb[175].mxu0 }
 0x8e2   : > { %6999 = vst [vmem:[#allocation45_spill] sm:$0xff] %v6153_v41  ;;  %v2822_v17 = vmax.f32 %v6151_v2, %v6153_v41  ;;  %2820 = vmax.xlane.f32.xlu1 %v2819_v1 }
 0x8e4   : > { %2823 = vmax.xlane.f32.xlu0 %v2822_v17 }
 0x8e6   : > { %v6157_v21 = vpop.f32.mrb[176].mxu0 }
 0x8e7   : > { %7000 = vst [vmem:[#allocation46_spill] sm:$0xff] %v6157_v21  ;;  %v6159_v38 = vpop.f32.mrb[177].mxu0 }
 0x8e8   : > { %7001 = vst [vmem:[#allocation47_spill] sm:$0xff] %v6159_v38  ;;  %v2825_v50 = vmax.f32 %v6157_v21, %v6159_v38  ;;  %v6163_v53 = vpop.f32.mrb[178].mxu0 }
 0x8e9   : > { %7002 = vst [vmem:[#allocation48_spill] sm:$0xff] %v6163_v53  ;;  %v6165_v8 = vpop.f32.mrb[179].mxu0 }
 0x8ea   : > { %7003 = vst [vmem:[#allocation49_spill] sm:$0xff] %v6165_v8  ;;  %v2828_v13 = vmax.f32 %v6163_v53, %v6165_v8  ;;  %2826 = vmax.xlane.f32.xlu1 %v2825_v50  ;;  %v7008_v50 = vld [vmem:[#allocation9_spill] sm:$0xff] }
 0x8ec   : > { %2829 = vmax.xlane.f32.xlu0 %v2828_v13  ;;  %v1009_v13 = vld [vmem:[%s6720_s7 + $0x30] sm:$0xff] }
 0x8ee   : > { %v6169_v16 = vpop.f32.mrb[180].mxu0 }
 0x8ef   : > { %7004 = vst [vmem:[#allocation17_spill] sm:$0xff] %v6169_v16  ;;  %v6171_v1 = vpop.f32.mrb[181].mxu0 }
 0x8f0   : > { %7005 = vst [vmem:[#allocation11_spill] sm:$0xff] %v6171_v1  ;;  %v2831_v17 = vmax.f32 %v6169_v16, %v6171_v1  ;;  %v6175_v41 = vpop.f32.mrb[182].mxu0  ;;  %v1006_v1 = vld [vmem:[%s6720_s7 + $0x18] sm:$0xff] }
 0x8f1   : > { %7006 = vst [vmem:[#allocation10_spill] sm:$0xff] %v6175_v41  ;;  %v6177_v2 = vpop.f32.mrb[183].mxu0 }
 0x8f2   : > { %7007 = vst [vmem:[#allocation19_spill] sm:$0xff] %v6177_v2  ;;  %v2834_v38 = vmax.f32 %v6175_v41, %v6177_v2  ;;  %2832 = vmax.xlane.f32.xlu1 %v2831_v17 }
 0x8f4   : > { %2835 = vmax.xlane.f32.xlu0 %v2834_v38 }
 0x903   : > { %1043 = vperm.xlu1 %4244, %v1009_v13  }
 0x907   : > { %3120 = vrot.lane.b32.xlu1 %v7008_v50, %s4865_s3  ;;  %v2743_v8 = vpop.xlane.xlu0 %2742 }
 0x908   : > { %v2837_v16 = vsub.f32 %v5979_v51, %v2743_v8  ;;  %v2838_v2 = vsub.f32 %v5981_v24, %v2743_v8 }
 0x909   : > { %v2746_v17 = vpop.xlane.xlu1 %2745 }
 0x90a   : > { %v2901_v38 = vmul.f32 1.442695, %v2837_v16  ;;  %v2839_v41 = vsub.f32 %v5985_v23, %v2746_v17  ;;  %v2840_v53 = vsub.f32 %v5987_v4, %v2746_v17  ;;  %1028 = vperm.xlu0 %4243, %v1006_v1   ;;  %v2903_v13 = vmul.f32 1.442695, %v2838_v2 }
 0x90b   : > { %3122 = vrot.lane.b32.xlu1 %v5166_v59, %s4865_s3 }
 0x90c   : > { %v2905_v50 = vmul.f32 1.442695, %v2839_v41  ;;  %v2907_v21 = vmul.f32 1.442695, %v2840_v53  ;;  %4525 = vpow2.f32 %v2901_v38 }
 0x90e   : > { %4527 = vpow2.f32 %v2905_v50  ;;  %3124 = vrot.lane.b32.xlu0 %v5176_v6, %s4865_s3 }
 0x90f   : > { %4529 = vpow2.f32 %v2907_v21  ;;  %3126 = vrot.lane.b32.xlu1 %v5174_v5, %s4865_s3  ;;  %v2749_v16 = vpop.xlane.xlu0 %2748 }
 0x910   : > { %4531 = vpow2.f32 %v2903_v13  ;;  %v2841_v51 = vsub.f32 %v5993_v30, %v2749_v16  ;;  %v2842_v24 = vsub.f32 %v5997_v25, %v2749_v16 }
 0x912   : > { %v2909_v23 = vmul.f32 1.442695, %v2841_v51  ;;  %3128 = vrot.lane.b32.xlu0 %v5184_v18, %s4865_s3  ;;  %v2911_v59 = vmul.f32 1.442695, %v2842_v24 }
 0x913   : > { %3130 = vrot.lane.b32.xlu1 %v5182_v15, %s4865_s3  ;;  %v2752_v4 = vpop.xlane.xlu0 %2751 }
 0x914   : > { %v2843_v6 = vsub.f32 %v6003_v31, %v2752_v4  ;;  %v2844_v8 = vsub.f32 %v6007_v43, %v2752_v4  ;;  %4533 = vpow2.f32 %v2909_v23 }
 0x915   : > { %4535 = vpow2.f32 %v2911_v59 }
 0x916   : > { %v2913_v5 = vmul.f32 1.442695, %v2843_v6  ;;  %v2915_v53 = vmul.f32 1.442695, %v2844_v8  ;;  %3132 = vrot.lane.b32.xlu0 %v5192_v34, %s4865_s3  ;;  %v4526_v30 = vpop.eup %4525 }
 0x917   : > { %v2755_v25 = vpop.xlane.xlu1 %2754  ;;  %3134 = vrot.lane.b32.xlu1 %v5190_v33, %s4865_s3 }
 0x918   : > { %v4528_v18 = vpop.eup %4527  ;;  %4537 = vpow2.f32 %v2913_v5  ;;  %v2845_v15 = vsub.f32 %v6013_v37, %v2755_v25  ;;  %v2846_v31 = vsub.f32 %v6015_v57, %v2755_v25 }
 0x919   : > { %v4530_v41 = vpop.eup %4529  ;;  %4539 = vpow2.f32 %v2915_v53  ;;  %v2758_v43 = vpop.xlane.xlu0 %2757  ;;  %v3029_v21 = vpack.c.bf16 %v4528_v18, %v4526_v30 }
 0x91a   : > { %v4532_v2 = vpop.eup %4531  ;;  %v2917_v1 = vmul.f32 1.442695, %v2845_v15  ;;  %v2847_v34 = vsub.f32 %v6019_v10, %v2758_v43  ;;  %v2848_v17 = vsub.f32 %v6021_v56, %v2758_v43  ;;  %3136 = vrot.lane.b32.xlu0 %v5200_v45, %s4865_s3  ;;  %v2919_v37 = vmul.f32 1.442695, %v2846_v31 }
 0x91b   : > { %3138 = vrot.lane.b32.xlu1 %v5198_v44, %s4865_s3  ;;  %v3030_v33 = vpack.c.bf16 %v4530_v41, %v4532_v2 }
 0x91c   : > { %v2921_v38 = vmul.f32 1.442695, %v2847_v34  ;;  %v2923_v57 = vmul.f32 1.442695, %v2848_v17  ;;  %4541 = vpow2.f32 %v2917_v1 }
 0x91d   : > { %3061 = vmatprep.subr.bf16.mxu1 %v3030_v33 }
 0x91e   : > { %4543 = vpow2.f32 %v2921_v38  ;;  %3062 = vmatpush1.bf16.xpose.msra.mxu1 %v3029_v21  ;;  %3140 = vrot.lane.b32.xlu0 %v5208_v52, %s4865_s3  ;;  %v4534_v45 = vpop.eup %4533 }
 0x91f   : > { %4545 = vpow2.f32 %v2923_v57  ;;  %v2761_v10 = vpop.xlane.xlu1 %2760  ;;  %3142 = vrot.lane.b32.xlu1 %v5206_v20, %s4865_s3  ;;  %v4536_v13 = vpop.eup %4535 }
 0x920   : > { %4547 = vpow2.f32 %v2919_v37  ;;  %v2849_v44 = vsub.f32 %v6025_v36, %v2761_v10  ;;  %v2850_v56 = vsub.f32 %v6027_v40, %v2761_v10 }
 0x921   : > { %v2764_v50 = vpop.xlane.xlu0 %2763 }
 0x922   : > { %v4538_v16 = vpop.eup %4537  ;;  %v2925_v51 = vmul.f32 1.442695, %v2849_v44  ;;  %v2851_v24 = vsub.f32 %v6031_v42, %v2764_v50  ;;  %v2852_v23 = vsub.f32 %v6033_v28, %v2764_v50  ;;  %3144 = vrot.lane.b32.xlu0 %v5216_v0, %s4865_s3  ;;  %v2927_v59 = vmul.f32 1.442695, %v2850_v56 }
 0x923   : > { %v4540_v52 = vpop.eup %4539  ;;  %3146 = vrot.lane.b32.xlu1 %v5214_v63, %s4865_s3  ;;  %v3031_v20 = vpack.c.bf16 %v4538_v16, %v4534_v45 }
 0x924   : > { %v2929_v36 = vmul.f32 1.442695, %v2851_v24  ;;  %v2931_v4 = vmul.f32 1.442695, %v2852_v23  ;;  %v3032_v40 = vpack.c.bf16 %v4540_v52, %v4536_v13  ;;  %4549 = vpow2.f32 %v2925_v51 }
 0x926   : > { %4551 = vpow2.f32 %v2929_v36  ;;  %3063 = vmatprep.subr.bf16.mxu1 %v3032_v40  ;;  %3148 = vrot.lane.b32.xlu0 %v5224_v12, %s4865_s3  ;;  %v4542_v42 = vpop.eup %4541 }
 0x927   : > { %4553 = vpow2.f32 %v2931_v4  ;;  %3064 = vmatpush1.bf16.xpose.msra.mxu1 %v3031_v20  ;;  %v2767_v28 = vpop.xlane.xlu1 %2766  ;;  %3150 = vrot.lane.b32.xlu1 %v5222_v11, %s4865_s3  ;;  %s6645_s3 = scalar_lea.vmem [#allocation2], %s3999_s15  ;;  %s4866_s15 = smov [#allocation2]  }
 0x928   : > { %v4544_v0 = vpop.eup %4543  ;;  %4555 = vpow2.f32 %v2927_v59  ;;  %v2853_v63 = vsub.f32 %v6037_v29, %v2767_v28  ;;  %v2854_v6 = vsub.f32 %v6039_v54, %v2767_v28  ;;  %s3933_s18 = sshll.u32 %s6645_s3, 4  ;;  %s4801_s16 = sshll.u32 %s4866_s15, 4  ;;  %s6664_s18 = int_to_ptr.vmem [resolvable:$true] %s3933_s18  ;;  %s4802_s16 = int_to_ptr.vmem [resolvable:$false] %s4801_s16 }
 0x929   : > { %v4546_v8 = vpop.eup %4545  ;;  %v2770_v5 = vpop.xlane.xlu0 %2769  ;;  %v3033_v53 = vpack.c.bf16 %v4544_v0, %v4542_v42  ;;  %s4797_s28 = scalar_lea.vmem %s6664_s18, 1024  ;;  %s4803_s19 = scalar_lea.vmem %s4802_s16, 2048 }
 0x92a   : > { %v4548_v30 = vpop.eup %4547  ;;  %v2933_v25 = vmul.f32 1.442695, %v2853_v63  ;;  %v2855_v12 = vsub.f32 %v6043_v55, %v2770_v5  ;;  %v2856_v18 = vsub.f32 %v6045_v47, %v2770_v5  ;;  %v2935_v31 = vmul.f32 1.442695, %v2854_v6  ;;  %p4798_p11 = scmp.ne.s32.totalorder %s6664_s18, %s4797_s28  ;;  %p4804_p0 = scmp.lt.s32.totalorder %s6664_s18, %s4802_s16 }
 0x92b   : > { %v3034_v15 = vpack.c.bf16 %v4546_v8, %v4548_v30  ;;  %p4805_p1 = scmp.lt.s32.totalorder %s4803_s19, %s4797_s28 }
 0x92c   : > { %v2937_v41 = vmul.f32 1.442695, %v2855_v12  ;;  %v2939_v43 = vmul.f32 1.442695, %v2856_v18  ;;  %4557 = vpow2.f32 %v2933_v25  ;;  %p4799_p12 = pnand %p4798_p11, %p4972_p5 }
 0x92d   : > { %3065 = vmatprep.subr.bf16.mxu1 %v3034_v15  ;;  %p4806_p2 = por %p4805_p1, %p4804_p0 }
 0x92e   : > { %4559 = vpow2.f32 %v2937_v41  ;;  %v4550_v11 = vpop.eup %4549  ;;  %p4800_p13 = pneg %p4799_p12 }
 0x92f   : > { %4561 = vpow2.f32 %v2939_v43  ;;  %3066 = vmatpush1.bf16.xpose.msra.mxu1 %v3033_v53  ;;  %v2773_v29 = vpop.xlane.xlu1 %2772 }
 0x930   : > { %v4552_v54 = vpop.eup %4551  ;;  %4563 = vpow2.f32 %v2935_v31  ;;  %v2857_v21 = vsub.f32 %v6049_v14, %v2773_v29  ;;  %v2858_v2 = vsub.f32 %v6051_v49, %v2773_v29  ;;  %p4807_p3 = pnand %p4806_p2, %p4800_p13 }
 0x931   : > { %v4554_v55 = vpop.eup %4553  ;;  %v2776_v1 = vpop.xlane.xlu0 %2775  ;;  %v3035_v47 = vpack.c.bf16 %v4552_v54, %v4550_v11 }
 0x932   : > { %v4556_v34 = vpop.eup %4555  ;;  %v2941_v17 = vmul.f32 1.442695, %v2857_v21  ;;  %v2859_v33 = vsub.f32 %v6055_v39, %v2776_v1  ;;  %v2860_v37 = vsub.f32 %v6057_v48, %v2776_v1  ;;  %v2943_v57 = vmul.f32 1.442695, %v2858_v2 }
 0x933   : > { %v3036_v38 = vpack.c.bf16 %v4554_v55, %v4556_v34 }
 0x934   : > { %v2945_v10 = vmul.f32 1.442695, %v2859_v33  ;;  %v2947_v45 = vmul.f32 1.442695, %v2860_v37  ;;  %4565 = vpow2.f32 %v2941_v17 }
 0x935   : > { %3067 = vmatprep.subr.bf16.mxu1 %v3036_v38  ;;  %v7009_v38 = vld [vmem:[#allocation28_spill] sm:$0xff] }
 0x936   : > { %4567 = vpow2.f32 %v2945_v10  ;;  %v4558_v44 = vpop.eup %4557  ;;  %v7010_v10 = vld [vmem:[#allocation29_spill] sm:$0xff] }
 0x937   : > { %4569 = vpow2.f32 %v2947_v45  ;;  %3068 = vmatpush1.bf16.xpose.msra.mxu1 %v3035_v47  ;;  %v2779_v14 = vpop.xlane.xlu1 %2778 }
 0x938   : > { %v4560_v49 = vpop.eup %4559  ;;  %4571 = vpow2.f32 %v2943_v57  ;;  %v2861_v56 = vsub.f32 %v6061_v22, %v2779_v14  ;;  %v2862_v13 = vsub.f32 %v6063_v3, %v2779_v14 }
 0x939   : > { %v4562_v39 = vpop.eup %4561  ;;  %v2782_v50 = vpop.xlane.xlu0 %2781  ;;  %v3037_v48 = vpack.c.bf16 %v4560_v49, %v4558_v44 }
 0x93a   : > { %v4564_v16 = vpop.eup %4563  ;;  %v2949_v51 = vmul.f32 1.442695, %v2861_v56  ;;  %v2863_v24 = vsub.f32 %v6067_v60, %v2782_v50  ;;  %v2864_v23 = vsub.f32 %v6069_v27, %v2782_v50  ;;  %v2951_v20 = vmul.f32 1.442695, %v2862_v13 }
 0x93b   : > { %v3038_v52 = vpack.c.bf16 %v4562_v39, %v4564_v16  ;;  %v7011_v39 = vld [vmem:[#allocation30_spill] sm:$0xff] }
 0x93c   : > { %v2953_v59 = vmul.f32 1.442695, %v2863_v24  ;;  %v2955_v36 = vmul.f32 1.442695, %v2864_v23  ;;  %4573 = vpow2.f32 %v2949_v51 }
 0x93d   : > { %3069 = vmatprep.subr.bf16.mxu1 %v3038_v52 }
 0x93e   : > { %4575 = vpow2.f32 %v2953_v59  ;;  %v4566_v4 = vpop.eup %4565  ;;  %v7013_v59 = vld [vmem:[#allocation32_spill] sm:$0xff] }
 0x93f   : > { %4577 = vpow2.f32 %v2955_v36  ;;  %3070 = vmatpush1.bf16.xpose.msra.mxu1 %v3037_v48  ;;  %v2785_v22 = vpop.xlane.xlu1 %2784  ;;  %v7012_v48 = vld [vmem:[#allocation31_spill] sm:$0xff] }
 0x940   : > { %v4568_v3 = vpop.eup %4567  ;;  %4579 = vpow2.f32 %v2951_v20  ;;  %v2865_v40 = vsub.f32 %v6073_v26, %v2785_v22  ;;  %v2866_v42 = vsub.f32 %v6075_v35, %v2785_v22 }
 0x941   : > { %v4570_v60 = vpop.eup %4569  ;;  %v2788_v28 = vpop.xlane.xlu0 %2787  ;;  %v3039_v27 = vpack.c.bf16 %v4568_v3, %v4566_v4  ;;  %v7014_v4 = vld [vmem:[#allocation33_spill] sm:$0xff] }
 0x942   : > { %v4572_v0 = vpop.eup %4571  ;;  %v2957_v63 = vmul.f32 1.442695, %v2865_v40  ;;  %v2867_v6 = vsub.f32 %v6079_v62, %v2788_v28  ;;  %v2868_v8 = vsub.f32 %v6081_v61, %v2788_v28  ;;  %v2959_v53 = vmul.f32 1.442695, %v2866_v42 }
 0x943   : > { %v3040_v5 = vpack.c.bf16 %v4570_v60, %v4572_v0 }
 0x944   : > { %v2961_v30 = vmul.f32 1.442695, %v2867_v6  ;;  %v2963_v25 = vmul.f32 1.442695, %v2868_v8  ;;  %4581 = vpow2.f32 %v2957_v63  ;;  %v7015_v63 = vld [vmem:[#allocation34_spill] sm:$0xff]  ;;  %v7016_v8 = vld [vmem:[#allocation35_spill] sm:$0xff] }
 0x945   : > { %3071 = vmatprep.subr.bf16.mxu1 %v3040_v5 }
 0x946   : > { %4583 = vpow2.f32 %v2961_v30  ;;  %v4574_v12 = vpop.eup %4573 }
 0x947   : > { %4585 = vpow2.f32 %v2963_v25  ;;  %3072 = vmatpush1.bf16.xpose.msra.mxu1 %v3039_v27  ;;  %v2791_v26 = vpop.xlane.xlu1 %2790 }
 0x948   : > { %v4576_v35 = vpop.eup %4575  ;;  %4587 = vpow2.f32 %v2959_v53  ;;  %v2869_v18 = vsub.f32 %v6085_v19, %v2791_v26  ;;  %v2870_v15 = vsub.f32 %v6087_v32, %v2791_v26 }
 0x949   : > { %v4578_v62 = vpop.eup %4577  ;;  %v2794_v31 = vpop.xlane.xlu0 %2793  ;;  %v3041_v61 = vpack.c.bf16 %v4576_v35, %v4574_v12  ;;  %v7017_v35 = vld [vmem:[#allocation36_spill] sm:$0xff] }
 0x94a   : > { %v4580_v41 = vpop.eup %4579  ;;  %v2965_v43 = vmul.f32 1.442695, %v2869_v18  ;;  %v2871_v11 = vsub.f32 %v6091_v46, %v2794_v31  ;;  %v2872_v29 = vsub.f32 %v6093_v7, %v2794_v31  ;;  %v2967_v21 = vmul.f32 1.442695, %v2870_v15  ;;  %v7018_v15 = vld [vmem:[#allocation37_spill] sm:$0xff] }
 0x94b   : > { %v3042_v54 = vpack.c.bf16 %v4578_v62, %v4580_v41 }
 0x94c   : > { %v2969_v2 = vmul.f32 1.442695, %v2871_v11  ;;  %v2971_v55 = vmul.f32 1.442695, %v2872_v29  ;;  %4589 = vpow2.f32 %v2965_v43 }
 0x94d   : > { %3073 = vmatprep.subr.bf16.mxu1 %v3042_v54 }
 0x94e   : > { %4591 = vpow2.f32 %v2969_v2  ;;  %v4582_v1 = vpop.eup %4581 }
 0x94f   : > { %4593 = vpow2.f32 %v2971_v55  ;;  %3074 = vmatpush1.bf16.xpose.msra.mxu1 %v3041_v61  ;;  %v2797_v19 = vpop.xlane.xlu1 %2796  ;;  %v7020_v55 = vld [vmem:[#allocation39_spill] sm:$0xff] }
 0x950   : > { %v4584_v32 = vpop.eup %4583  ;;  %4595 = vpow2.f32 %v2967_v21  ;;  %v2873_v47 = vsub.f32 %v6097_v58, %v2797_v19  ;;  %v2874_v34 = vsub.f32 %v6099_v9, %v2797_v19  ;;  %v7019_v21 = vld [vmem:[#allocation38_spill] sm:$0xff] }
 0x951   : > { %v4586_v46 = vpop.eup %4585  ;;  %v2800_v17 = vpop.xlane.xlu0 %2799  ;;  %v3043_v7 = vpack.c.bf16 %v4584_v32, %v4582_v1 }
 0x952   : > { %v4588_v33 = vpop.eup %4587  ;;  %v2973_v37 = vmul.f32 1.442695, %v2873_v47  ;;  %v2875_v57 = vsub.f32 %v7009_v38, %v2800_v17  ;;  %v2876_v45 = vsub.f32 %v7010_v10, %v2800_v17  ;;  %v2975_v14 = vmul.f32 1.442695, %v2874_v34  ;;  %v7021_v17 = vld [vmem:[#allocation40_spill] sm:$0xff] }
 0x953   : > { %v3044_v44 = vpack.c.bf16 %v4586_v46, %v4588_v33  ;;  %v7022_v33 = vld [vmem:[#allocation41_spill] sm:$0xff] }
 0x954   : > { %v2977_v49 = vmul.f32 1.442695, %v2875_v57  ;;  %v2979_v56 = vmul.f32 1.442695, %v2876_v45  ;;  %4597 = vpow2.f32 %v2973_v37 }
 0x955   : > { %3075 = vmatprep.subr.bf16.mxu1 %v3044_v44 }
 0x956   : > { %4599 = vpow2.f32 %v2977_v49  ;;  %v4590_v13 = vpop.eup %4589 }
 0x957   : > { %4601 = vpow2.f32 %v2979_v56  ;;  %3076 = vmatpush1.bf16.xpose.msra.mxu1 %v3043_v7  ;;  %v2803_v58 = vpop.xlane.xlu1 %2802  ;;  %v7023_v56 = vld [vmem:[#allocation42_spill] sm:$0xff] }
 0x958   : > { %v4592_v9 = vpop.eup %4591  ;;  %4603 = vpow2.f32 %v2975_v14  ;;  %v2877_v50 = vsub.f32 %v7011_v39, %v2803_v58  ;;  %v2878_v16 = vsub.f32 %v7012_v48, %v2803_v58  ;;  %v7024_v58 = vld [vmem:[#allocation43_spill] sm:$0xff] }
 0x959   : > { %v4594_v51 = vpop.eup %4593  ;;  %v2806_v24 = vpop.xlane.xlu0 %2805  ;;  %v3045_v23 = vpack.c.bf16 %v4592_v9, %v4590_v13 }
 0x95a   : > { %v4596_v52 = vpop.eup %4595  ;;  %v2981_v20 = vmul.f32 1.442695, %v2877_v50  ;;  %v2879_v36 = vsub.f32 %v7013_v59, %v2806_v24  ;;  %v2880_v22 = vsub.f32 %v7014_v4, %v2806_v24  ;;  %v2983_v40 = vmul.f32 1.442695, %v2878_v16  ;;  %v7025_v24 = vld [vmem:[#allocation44_spill] sm:$0xff] }
 0x95b   : > { %v3046_v3 = vpack.c.bf16 %v4594_v51, %v4596_v52  ;;  %v7026_v52 = vld [vmem:[#allocation45_spill] sm:$0xff] }
 0x95c   : > { %v2985_v42 = vmul.f32 1.442695, %v2879_v36  ;;  %v2987_v60 = vmul.f32 1.442695, %v2880_v22  ;;  %4605 = vpow2.f32 %v2981_v20 }
 0x95d   : > { %3077 = vmatprep.subr.bf16.mxu1 %v3046_v3 }
 0x95e   : > { %4607 = vpow2.f32 %v2985_v42  ;;  %v4598_v28 = vpop.eup %4597 }
 0x95f   : > { %4609 = vpow2.f32 %v2987_v60  ;;  %3078 = vmatpush1.bf16.xpose.msra.mxu1 %v3045_v23  ;;  %v2809_v27 = vpop.xlane.xlu1 %2808  ;;  %v7027_v60 = vld [vmem:[#allocation46_spill] sm:$0xff] }
 0x960   : > { %v4600_v0 = vpop.eup %4599  ;;  %4611 = vpow2.f32 %v2983_v40  ;;  %v2881_v6 = vsub.f32 %v7015_v63, %v2809_v27  ;;  %v2882_v5 = vsub.f32 %v7016_v8, %v2809_v27  ;;  %v7028_v27 = vld [vmem:[#allocation47_spill] sm:$0xff] }
 0x961   : > { %v4602_v53 = vpop.eup %4601  ;;  %v2812_v30 = vpop.xlane.xlu0 %2811  ;;  %v3047_v25 = vpack.c.bf16 %v4600_v0, %v4598_v28 }
 0x962   : > { %v4604_v12 = vpop.eup %4603  ;;  %v2989_v26 = vmul.f32 1.442695, %v2881_v6  ;;  %v2883_v18 = vsub.f32 %v7017_v35, %v2812_v30  ;;  %v2884_v62 = vsub.f32 %v7018_v15, %v2812_v30  ;;  %v2991_v61 = vmul.f32 1.442695, %v2882_v5 }
 0x963   : > { %v3048_v31 = vpack.c.bf16 %v4602_v53, %v4604_v12 }
 0x964   : > { %v2993_v41 = vmul.f32 1.442695, %v2883_v18  ;;  %v2995_v43 = vmul.f32 1.442695, %v2884_v62  ;;  %4613 = vpow2.f32 %v2989_v26  ;;  %v7030_v26 = vld [vmem:[#allocation49_spill] sm:$0xff] }
 0x965   : > { %3079 = vmatprep.subr.bf16.mxu1 %v3048_v31 }
 0x966   : > { %4615 = vpow2.f32 %v2993_v41  ;;  %v4606_v11 = vpop.eup %4605 }
 0x967   : > { %4617 = vpow2.f32 %v2995_v43  ;;  %3080 = vmatpush1.bf16.xpose.msra.mxu1 %v3047_v25  ;;  %v2815_v29 = vpop.xlane.xlu1 %2814  ;;  %v7029_v25 = vld [vmem:[#allocation48_spill] sm:$0xff]  ;;  %v7031_v43 = vld [vmem:[#allocation17_spill] sm:$0xff] }
 0x968   : > { %v4608_v54 = vpop.eup %4607  ;;  %4619 = vpow2.f32 %v2991_v61  ;;  %v2885_v2 = vsub.f32 %v7019_v21, %v2815_v29  ;;  %v2886_v1 = vsub.f32 %v7020_v55, %v2815_v29  ;;  %v7032_v29 = vld [vmem:[#allocation11_spill] sm:$0xff] }
 0x969   : > { %v4610_v19 = vpop.eup %4609  ;;  %v2818_v32 = vpop.xlane.xlu0 %2817  ;;  %v3049_v47 = vpack.c.bf16 %v4608_v54, %v4606_v11 }
 0x96a   : > { %v4612_v34 = vpop.eup %4611  ;;  %v2997_v46 = vmul.f32 1.442695, %v2885_v2  ;;  %v2887_v7 = vsub.f32 %v7021_v17, %v2818_v32  ;;  %v2888_v37 = vsub.f32 %v7022_v33, %v2818_v32  ;;  %v2999_v57 = vmul.f32 1.442695, %v2886_v1 }
 0x96b   : > { %v3050_v38 = vpack.c.bf16 %v4610_v19, %v4612_v34 }
 0x96c   : > { %v3001_v10 = vmul.f32 1.442695, %v2887_v7  ;;  %v3003_v45 = vmul.f32 1.442695, %v2888_v37  ;;  %4621 = vpow2.f32 %v2997_v46  ;;  %v7034_v46 = vld [vmem:[#allocation19_spill] sm:$0xff] }
 0x96d   : > { %3081 = vmatprep.subr.bf16.mxu1 %v3050_v38 }
 0x96e   : > { %4623 = vpow2.f32 %v3001_v10  ;;  %v4614_v44 = vpop.eup %4613 }
 0x96f   : > { %4625 = vpow2.f32 %v3003_v45  ;;  %3082 = vmatpush1.bf16.xpose.msra.mxu1 %v3049_v47  ;;  %v2821_v14 = vpop.xlane.xlu1 %2820  ;;  %v7033_v47 = vld [vmem:[#allocation10_spill] sm:$0xff] }
 0x970   : > { %v4616_v49 = vpop.eup %4615  ;;  %4627 = vpow2.f32 %v2999_v57  ;;  %v2889_v13 = vsub.f32 %v7023_v56, %v2821_v14  ;;  %v2890_v9 = vsub.f32 %v7024_v58, %v2821_v14  ;;  %v7035_v57 = vld [vmem:[#allocation21_spill] sm:$0xff]  ;;  %v7036_v14 = vmov 1.0  }
 0x971   : > { %v4618_v39 = vpop.eup %4617  ;;  %v2824_v50 = vpop.xlane.xlu0 %2823  ;;  %v3051_v48 = vpack.c.bf16 %v4616_v49, %v4614_v44 }
 0x972   : > { %v4620_v16 = vpop.eup %4619  ;;  %v3005_v51 = vmul.f32 1.442695, %v2889_v13  ;;  %v2891_v23 = vsub.f32 %v7025_v24, %v2824_v50  ;;  %v2892_v20 = vsub.f32 %v7026_v52, %v2824_v50  ;;  %v3007_v36 = vmul.f32 1.442695, %v2890_v9 }
 0x973   : > { %v3052_v59 = vpack.c.bf16 %v4618_v39, %v4620_v16 }
 0x974   : > { %v3009_v4 = vmul.f32 1.442695, %v2891_v23  ;;  %v3011_v22 = vmul.f32 1.442695, %v2892_v20  ;;  %4629 = vpow2.f32 %v3005_v51  ;;  %v7037_v23 = vld [vmem:[#allocation15_spill] sm:$0xff] }
 0x975   : > { %3083 = vmatprep.subr.bf16.mxu1 %v3052_v59  ;;  %v7038_v59 = vld [vmem:[#allocation14_spill] sm:$0xff] }
 0x976   : > { %4631 = vpow2.f32 %v3009_v4  ;;  %v4622_v3 = vpop.eup %4621 }
 0x977   : > { %4633 = vpow2.f32 %v3011_v22  ;;  %3084 = vmatpush1.bf16.xpose.msra.mxu1 %v3051_v48  ;;  %v2827_v40 = vpop.xlane.xlu1 %2826  ;;  %v7039_v22 = vld [vmem:[#allocation20_spill] sm:$0xff] }
 0x978   : > { %v4624_v42 = vpop.eup %4623  ;;  %4635 = vpow2.f32 %v3007_v36  ;;  %v2893_v28 = vsub.f32 %v7027_v60, %v2827_v40  ;;  %v2894_v0 = vsub.f32 %v7028_v27, %v2827_v40 }
 0x979   : > { %v4626_v63 = vpop.eup %4625  ;;  %v2830_v6 = vpop.xlane.xlu0 %2829  ;;  %v3053_v8 = vpack.c.bf16 %v4624_v42, %v4622_v3 }
 0x97a   : > { %v4628_v5 = vpop.eup %4627  ;;  %v3013_v53 = vmul.f32 1.442695, %v2893_v28  ;;  %v3015_v30 = vmul.f32 1.442695, %v2894_v0  ;;  %v2895_v12 = vsub.f32 %v7029_v25, %v2830_v6  ;;  %v2896_v35 = vsub.f32 %v7030_v26, %v2830_v6 }
 0x97b   : > { %v3054_v18 = vpack.c.bf16 %v4626_v63, %v4628_v5  ;;  %v7040_v28 = vmov 0  }
 0x97c   : > { %4637 = vpow2.f32 %v3013_v53  ;;  %v3017_v15 = vmul.f32 1.442695, %v2895_v12  ;;  %v3019_v62 = vmul.f32 1.442695, %v2896_v35 }
 0x97d   : > { %4639 = vpow2.f32 %v3015_v30  ;;  %3085 = vmatprep.subr.bf16.mxu1 %v3054_v18 }
 0x97e   : > { %4641 = vpow2.f32 %v3017_v15  ;;  %v4630_v31 = vpop.eup %4629 }
 0x97f   : > { %4643 = vpow2.f32 %v3019_v62  ;;  %3086 = vmatpush1.bf16.xpose.msra.mxu1 %v3053_v8  ;;  %v2833_v61 = vpop.xlane.xlu1 %2832 }
 0x980   : > { %v4632_v41 = vpop.eup %4631  ;;  %v2897_v11 = vsub.f32 %v7031_v43, %v2833_v61  ;;  %v2898_v54 = vsub.f32 %v7032_v29, %v2833_v61 }
 0x981   : > { %v4634_v21 = vpop.eup %4633  ;;  %v2836_v2 = vpop.xlane.xlu0 %2835  ;;  %v3055_v55 = vpack.c.bf16 %v4632_v41, %v4630_v31 }
 0x982   : > { %v4636_v1 = vpop.eup %4635  ;;  %v3021_v19 = vmul.f32 1.442695, %v2897_v11  ;;  %v3023_v32 = vmul.f32 1.442695, %v2898_v54  ;;  %v2899_v34 = vsub.f32 %v7033_v47, %v2836_v2  ;;  %v2900_v17 = vsub.f32 %v7034_v46, %v2836_v2  ;;  %v7041_v47 = vld [vmem:[#allocation24_spill] sm:$0xff] }
 0x983   : > { %v1044_v7 = vpop.permute.xlu1 %1043  ;;  %v3056_v33 = vpack.c.bf16 %v4634_v21, %v4636_v1 }
 0x984   : > { %4645 = vpow2.f32 %v3021_v19  ;;  %v3025_v37 = vmul.f32 1.442695, %v2899_v34  ;;  %v3027_v38 = vmul.f32 1.442695, %v2900_v17  ;;  %v1150_v10 = vadd.f32 %v7035_v57, %v1044_v7 }
 0x985   : > { %4647 = vpow2.f32 %v3023_v32  ;;  %3087 = vmatprep.subr.bf16.mxu1 %v3056_v33  ;;  %v1148_v3 = vadd.f32 %v7039_v22, %v1044_v7 }
 0x986   : > { %v4638_v45 = vpop.eup %4637  ;;  %4649 = vpow2.f32 %v3025_v37  ;;  %v2461_v49 = vpack.c.bf16 %v7036_v14, %v1150_v10 }
 0x987   : > { %v4640_v44 = vpop.eup %4639  ;;  %4651 = vpow2.f32 %v3027_v38  ;;  %3088 = vmatpush1.bf16.xpose.msra.mxu1 %v3055_v55  ;;  %v2460_v42 = vpack.c.bf16 %v7036_v14, %v1148_v3  ;;  %v3121_v27 = vpop.permute.xlu1 %3120 }
 0x988   : > { %v4642_v56 = vpop.eup %4641  ;;  %3093 = vmatprep.mubr.bf16.mxu1 %v2461_v49 }
 0x989   : > { %v4644_v13 = vpop.eup %4643  ;;  %v3057_v58 = vpack.c.bf16 %v4642_v56, %v4638_v45  ;;  %v1029_v48 = vpop.permute.xlu0 %1028 }
 0x98a   : > { %v3058_v9 = vpack.c.bf16 %v4644_v13, %v4640_v44  ;;  %v1134_v52 = vadd.f32 %v7037_v23, %v1029_v48  ;;  %v1132_v36 = vadd.f32 %v7038_v59, %v1029_v48 }
 0x98b   : > { %v3123_v0 = vpop.permute.xlu1 %3122 }
 0x98c   : > { %3089 = vmatprep.subr.bf16.mxu1 %v3058_v9  ;;  %v3117_v4 = vpack.c.bf16 %v1134_v52, %v1134_v52  ;;  %v3116_v40 = vpack.c.bf16 %v1132_v36, %v1132_v36 }
 0x98d   : > { %v3125_v63 = vpop.permute.xlu0 %3124 }
 0x98e   : > { %v4646_v39 = vpop.eup %4645  ;;  %v3201_v60 = vsel %vm1209_vm1, %v3116_v40, 0 }
 0x98f   : > { %v4648_v50 = vpop.eup %4647  ;;  %3090 = vmatpush1.bf16.xpose.msra.mxu1 %v3057_v58  ;;  %v3127_v6 = vpop.permute.xlu1 %3126 }
 0x990   : > { %v4650_v16 = vpop.eup %4649 }
 0x991   : > { %v4652_v51 = vpop.eup %4651  ;;  %v3059_v24 = vpack.c.bf16 %v4650_v16, %v4646_v39  ;;  %v3129_v8 = vpop.permute.xlu0 %3128 }
 0x992   : > { %v3060_v20 = vpack.c.bf16 %v4652_v51, %v4648_v50 }
 0x993   : > { %v3131_v5 = vpop.permute.xlu1 %3130 }
 0x994   : > { %3091 = vmatprep.subr.bf16.mxu1 %v3060_v20 }
 0x995   : > { %v3133_v53 = vpop.permute.xlu0 %3132 }
 0x997   : > { %3092 = vmatpush1.bf16.xpose.msra.mxu1 %v3059_v24  ;;  %v3135_v30 = vpop.permute.xlu1 %3134 }
 0x998   : > { %4084 = vmatprep.subr.msk.bf16.mxu1 %vm1209_vm1, %v3117_v4 }
 0x999   : > { %v3137_v25 = vpop.permute.xlu0 %3136 }
 0x99b   : > { %v3139_v12 = vpop.permute.xlu1 %3138 }
 0x99d   : > { %v3141_v26 = vpop.permute.xlu0 %3140 }
 0x99e   : > { %3094 = vmatmul.mubr.bf16.vlgmr.msra.gmra.mrb[68].mxu1 %v2460_v42 }
 0x99f   : > { %3207 = vmatpush1.bf16.msra.mxu1 %v3201_v60  ;;  %3238 = vmatprep.mubr.bf16.mxu1 %v7040_v28  ;;  %v3143_v35 = vpop.permute.xlu1 %3142 }
 0x9a1   : > { %v3145_v18 = vpop.permute.xlu0 %3144 }
 0x9a3   : > { %v3147_v15 = vpop.permute.xlu1 %3146 }
 0x9a5   : > { %v3149_v62 = vpop.permute.xlu0 %3148 }
 0x9a6   : > { %4085 = vmatmul.mubr.msk.bf16.vlgmr.msra.gmra.mrb[72].mxu1 %vm1160_vm2, %v3121_v27 }
 0x9a7   : > { %3248 = vmatprep.mubr.bf16.mxu1 %v7040_v28  ;;  %v3151_v31 = vpop.permute.xlu1 %3150 }
 0x9ae   : > { %4086 = vmatmul.mubr.msk.bf16.gmra.mrb[76].mxu1 %vm1160_vm2, %v3123_v0 }
 0x9af   : > { %3258 = vmatprep.mubr.bf16.mxu1 %v7040_v28 }
 0x9b6   : > { %4087 = vmatmul.mubr.msk.bf16.gmra.mrb[80].mxu1 %vm1160_vm2, %v3125_v63 }
 0x9b7   : > { %3268 = vmatprep.mubr.bf16.mxu1 %v7040_v28 }
 0x9be   : > { %4088 = vmatmul.mubr.msk.bf16.gmra.mrb[84].mxu1 %vm1160_vm2, %v3127_v6 }
 0x9bf   : > { %3278 = vmatprep.mubr.bf16.mxu1 %v7040_v28 }
 0x9c6   : > { %4089 = vmatmul.mubr.msk.bf16.gmra.mrb[88].mxu1 %vm1160_vm2, %v3129_v8 }
 0x9c7   : > { %3288 = vmatprep.mubr.bf16.mxu1 %v7040_v28 }
 0x9ce   : > { %4090 = vmatmul.mubr.msk.bf16.gmra.mrb[92].mxu1 %vm1160_vm2, %v3131_v5 }
 0x9cf   : > { %3298 = vmatprep.mubr.bf16.mxu1 %v7040_v28 }
 0x9d6   : > { %4091 = vmatmul.mubr.msk.bf16.gmra.mrb[96].mxu1 %vm1160_vm2, %v3133_v53 }
 0x9d7   : > { %3308 = vmatprep.mubr.bf16.mxu1 %v7040_v28 }
 0x9de   : > { %4092 = vmatmul.mubr.msk.bf16.gmra.mrb[100].mxu1 %vm1160_vm2, %v3135_v30 }
 0x9df   : > { %3318 = vmatprep.mubr.bf16.mxu1 %v7040_v28 }
 0x9e6   : > { %4093 = vmatmul.mubr.msk.bf16.gmra.mrb[104].mxu1 %vm1160_vm2, %v3137_v25 }
 0x9e7   : > { %3328 = vmatprep.mubr.bf16.mxu1 %v7040_v28 }
 0x9ee   : > { %4094 = vmatmul.mubr.msk.bf16.gmra.mrb[108].mxu1 %vm1160_vm2, %v3139_v12 }
 0x9ef   : > { %3338 = vmatprep.mubr.bf16.mxu1 %v7040_v28 }
 0x9f6   : > { %4095 = vmatmul.mubr.msk.bf16.gmra.mrb[112].mxu1 %vm1160_vm2, %v3141_v26 }
 0x9f7   : > { %3348 = vmatprep.mubr.bf16.mxu1 %v7040_v28 }
 0x9fe   : > { %4096 = vmatmul.mubr.msk.bf16.gmra.mrb[116].mxu1 %vm1160_vm2, %v3143_v35 }
 0x9ff   : > { %3358 = vmatprep.mubr.bf16.mxu1 %v7040_v28 }
 0xa06   : > { %4097 = vmatmul.mubr.msk.bf16.gmra.mrb[120].mxu1 %vm1160_vm2, %v3145_v18 }
 0xa07   : > { %3368 = vmatprep.mubr.bf16.mxu1 %v7040_v28 }
 0xa0e   : > { %4098 = vmatmul.mubr.msk.bf16.gmra.mrb[124].mxu1 %vm1160_vm2, %v3147_v15 }
 0xa0f   : > { %3378 = vmatprep.mubr.bf16.mxu1 %v7040_v28 }
 0xa16   : > { %4099 = vmatmul.mubr.msk.bf16.gmra.mrb[128].mxu1 %vm1160_vm2, %v3149_v62 }
 0xa17   : > { %3388 = vmatprep.mubr.bf16.mxu1 %v7040_v28 }
 0xa1e   : > { %4100 = vmatmul.mubr.msk.bf16.gmra.mrb[132].mxu1 %vm1160_vm2, %v3151_v31 }
 0xa71   : > { %v3095_v61 = vpop.f32.mrb[68].mxu1 }
 0xa72   : > { %v3097_v41 = vpop.f32.mrb[69].mxu1 }
 0xa73   : > { %v3099_v43 = vpop.f32.mrb[70].mxu1 }
 0xa74   : > { %4653 = vrcp.f32 %v3099_v43  ;;  %v3101_v11 = vpop.f32.mrb[71].mxu1 }
 0xa75   : > { %4655 = vrcp.f32 %v3101_v11 }
 0xa79   : > { %v6323_v29 = vpop.f32.mrb[72].mxu1 }
 0xa7a   : > { %v6325_v54 = vpop.f32.mrb[73].mxu1 }
 0xa7b   : > { %v3399_v21 = vmax.f32 %v6323_v29, %v6325_v54  ;;  %v6329_v2 = vpop.f32.mrb[74].mxu1 }
 0xa7c   : > { %v6331_v55 = vpop.f32.mrb[75].mxu1 }
 0xa7d   : > { %v3402_v1 = vmax.f32 %v6329_v2, %v6331_v55  ;;  %3400 = vmax.xlane.f32.xlu0 %v3399_v21 }
 0xa7e   : > { %v4654_v19 = vpop.eup %4653 }
 0xa7f   : > { %v4656_v32 = vpop.eup %4655  ;;  %3403 = vmax.xlane.f32.xlu1 %v3402_v1  ;;  %v3109_v34 = vrot.slane %v4654_v19, %v7041_v47 }
 0xa80   : > { %v3113_v46 = vrot.slane %v4656_v32, %v7041_v47 }
 0xa81   : > { %v6337_v17 = vpop.f32.mrb[76].mxu1  ;;  %v6339_v7 = vmul.f32 %v3109_v34, %v3095_v61 }
 0xa82   : > { %v6341_v33 = vpop.f32.mrb[77].mxu1  ;;  %v6343_v37 = vmul.f32 %v3113_v46, %v3097_v41 }
 0xa83   : > { %7042 = vst [vmem:[#allocation13_spill] sm:$0xff] %v6339_v7  ;;  %v3405_v38 = vmax.f32 %v6337_v17, %v6341_v33  ;;  %v6347_v57 = vpop.f32.mrb[78].mxu1 }
 0xa84   : > { %7043 = vst [vmem:[#allocation12_spill] sm:$0xff] %v6343_v37  ;;  %v6349_v10 = vpop.f32.mrb[79].mxu1 }
 0xa85   : > { %v3408_v45 = vmax.f32 %v6347_v57, %v6349_v10  ;;  %3406 = vmax.xlane.f32.xlu0 %v3405_v38 }
 0xa89   : > { %3409 = vmax.xlane.f32.xlu0 %v3408_v45  ;;  %v6353_v44 = vpop.f32.mrb[80].mxu1 }
 0xa8a   : > { %v6355_v49 = vpop.f32.mrb[81].mxu1 }
 0xa8b   : > { %v3411_v56 = vmax.f32 %v6353_v44, %v6355_v49  ;;  %v6359_v13 = vpop.f32.mrb[82].mxu1 }
 0xa8c   : > { %v6361_v58 = vpop.f32.mrb[83].mxu1 }
 0xa8d   : > { %v3414_v9 = vmax.f32 %v6359_v13, %v6361_v58  ;;  %3412 = vmax.xlane.f32.xlu1 %v3411_v56 }
 0xa8f   : > { %3415 = vmax.xlane.f32.xlu0 %v3414_v9 }
 0xa91   : > { %v6365_v39 = vpop.f32.mrb[84].mxu1 }
 0xa92   : > { %v6367_v50 = vpop.f32.mrb[85].mxu1 }
 0xa93   : > { %v3417_v48 = vmax.f32 %v6365_v39, %v6367_v50  ;;  %v6371_v16 = vpop.f32.mrb[86].mxu1 }
 0xa94   : > { %v6373_v51 = vpop.f32.mrb[87].mxu1 }
 0xa95   : > { %v3420_v24 = vmax.f32 %v6371_v16, %v6373_v51  ;;  %3418 = vmax.xlane.f32.xlu1 %v3417_v48 }
 0xa97   : > { %3421 = vmax.xlane.f32.xlu0 %v3420_v24 }
 0xa99   : > { %v6377_v23 = vpop.f32.mrb[88].mxu1 }
 0xa9a   : > { %v6379_v52 = vpop.f32.mrb[89].mxu1 }
 0xa9b   : > { %v3423_v20 = vmax.f32 %v6377_v23, %v6379_v52  ;;  %v6383_v59 = vpop.f32.mrb[90].mxu1 }
 0xa9c   : > { %v6385_v36 = vpop.f32.mrb[91].mxu1 }
 0xa9d   : > { %v3426_v4 = vmax.f32 %v6383_v59, %v6385_v36  ;;  %3424 = vmax.xlane.f32.xlu1 %v3423_v20 }
 0xa9f   : > { %3427 = vmax.xlane.f32.xlu0 %v3426_v4 }
 0xaa1   : > { %v6389_v22 = vpop.f32.mrb[92].mxu1 }
 0xaa2   : > { %v6391_v3 = vpop.f32.mrb[93].mxu1 }
 0xaa3   : > { %v3429_v40 = vmax.f32 %v6389_v22, %v6391_v3  ;;  %v6395_v42 = vpop.f32.mrb[94].mxu1 }
 0xaa4   : > { %v6397_v60 = vpop.f32.mrb[95].mxu1 }
 0xaa5   : > { %v3432_v27 = vmax.f32 %v6395_v42, %v6397_v60  ;;  %3430 = vmax.xlane.f32.xlu1 %v3429_v40 }
 0xaa7   : > { %3433 = vmax.xlane.f32.xlu0 %v3432_v27 }
 0xaa9   : > { %v6401_v0 = vpop.f32.mrb[96].mxu1 }
 0xaaa   : > { %v6403_v63 = vpop.f32.mrb[97].mxu1 }
 0xaab   : > { %v3435_v6 = vmax.f32 %v6401_v0, %v6403_v63  ;;  %v6407_v8 = vpop.f32.mrb[98].mxu1 }
 0xaac   : > { %v6409_v5 = vpop.f32.mrb[99].mxu1 }
 0xaad   : > { %v3438_v53 = vmax.f32 %v6407_v8, %v6409_v5  ;;  %3436 = vmax.xlane.f32.xlu1 %v3435_v6 }
 0xaaf   : > { %3439 = vmax.xlane.f32.xlu0 %v3438_v53 }
 0xab1   : > { %v6413_v30 = vpop.f32.mrb[100].mxu1 }
 0xab2   : > { %v6415_v25 = vpop.f32.mrb[101].mxu1 }
 0xab3   : > { %v3441_v12 = vmax.f32 %v6413_v30, %v6415_v25  ;;  %v6419_v26 = vpop.f32.mrb[102].mxu1 }
 0xab4   : > { %v6421_v35 = vpop.f32.mrb[103].mxu1 }
 0xab5   : > { %v3444_v18 = vmax.f32 %v6419_v26, %v6421_v35  ;;  %3442 = vmax.xlane.f32.xlu1 %v3441_v12 }
 0xab7   : > { %3445 = vmax.xlane.f32.xlu0 %v3444_v18 }
 0xab9   : > { %v6425_v15 = vpop.f32.mrb[104].mxu1 }
 0xaba   : > { %v6427_v62 = vpop.f32.mrb[105].mxu1 }
 0xabb   : > { %v3447_v31 = vmax.f32 %v6425_v15, %v6427_v62  ;;  %v6431_v61 = vpop.f32.mrb[106].mxu1 }
 0xabc   : > { %v6433_v41 = vpop.f32.mrb[107].mxu1 }
 0xabd   : > { %v3450_v43 = vmax.f32 %v6431_v61, %v6433_v41  ;;  %3448 = vmax.xlane.f32.xlu1 %v3447_v31 }
 0xabf   : > { %3451 = vmax.xlane.f32.xlu0 %v3450_v43 }
 0xac1   : > { %v6437_v11 = vpop.f32.mrb[108].mxu1 }
 0xac2   : > { %v6439_v21 = vpop.f32.mrb[109].mxu1 }
 0xac3   : > { %v3453_v1 = vmax.f32 %v6437_v11, %v6439_v21  ;;  %v6443_v19 = vpop.f32.mrb[110].mxu1 }
 0xac4   : > { %v6445_v32 = vpop.f32.mrb[111].mxu1 }
 0xac5   : > { %v3456_v34 = vmax.f32 %v6443_v19, %v6445_v32  ;;  %3454 = vmax.xlane.f32.xlu1 %v3453_v1 }
 0xac7   : > { %3457 = vmax.xlane.f32.xlu0 %v3456_v34 }
 0xac9   : > { %v6449_v46 = vpop.f32.mrb[112].mxu1 }
 0xaca   : > { %v6451_v38 = vpop.f32.mrb[113].mxu1 }
 0xacb   : > { %v3459_v45 = vmax.f32 %v6449_v46, %v6451_v38  ;;  %v6455_v56 = vpop.f32.mrb[114].mxu1 }
 0xacc   : > { %v6457_v9 = vpop.f32.mrb[115].mxu1 }
 0xacd   : > { %v3462_v48 = vmax.f32 %v6455_v56, %v6457_v9  ;;  %3460 = vmax.xlane.f32.xlu1 %v3459_v45 }
 0xacf   : > { %3463 = vmax.xlane.f32.xlu0 %v3462_v48 }
 0xad1   : > { %v6461_v24 = vpop.f32.mrb[116].mxu1 }
 0xad2   : > { %v6463_v20 = vpop.f32.mrb[117].mxu1 }
 0xad3   : > { %v3465_v4 = vmax.f32 %v6461_v24, %v6463_v20  ;;  %v6467_v40 = vpop.f32.mrb[118].mxu1 }
 0xad4   : > { %v6469_v27 = vpop.f32.mrb[119].mxu1 }
 0xad5   : > { %v3468_v6 = vmax.f32 %v6467_v40, %v6469_v27  ;;  %3466 = vmax.xlane.f32.xlu1 %v3465_v4 }
 0xad7   : > { %3469 = vmax.xlane.f32.xlu0 %v3468_v6 }
 0xad9   : > { %v6473_v53 = vpop.f32.mrb[120].mxu1 }
 0xada   : > { %v6475_v12 = vpop.f32.mrb[121].mxu1 }
 0xadb   : > { %v3471_v18 = vmax.f32 %v6473_v53, %v6475_v12  ;;  %v6479_v31 = vpop.f32.mrb[122].mxu1 }
 0xadc   : > { %7044 = vst [vmem:[#allocation18_spill] sm:$0xff] %v6479_v31  ;;  %v6481_v43 = vpop.f32.mrb[123].mxu1 }
 0xadd   : > { %7045 = vst [vmem:[#allocation9_spill] sm:$0xff] %v6481_v43  ;;  %v3474_v1 = vmax.f32 %v6479_v31, %v6481_v43  ;;  %3472 = vmax.xlane.f32.xlu1 %v3471_v18  ;;  %v7058_v43 = vld [vmem:[#allocation6_spill] sm:$0xff] }
 0xadf   : > { %3475 = vmax.xlane.f32.xlu0 %v3474_v1 }
 0xae1   : > { %v6485_v34 = vpop.f32.mrb[124].mxu1 }
 0xae2   : > { %7046 = vst [vmem:[#allocation28_spill] sm:$0xff] %v6485_v34  ;;  %v6487_v45 = vpop.f32.mrb[125].mxu1 }
 0xae3   : > { %7047 = vst [vmem:[#allocation29_spill] sm:$0xff] %v6487_v45  ;;  %v3477_v48 = vmax.f32 %v6485_v34, %v6487_v45  ;;  %v6491_v4 = vpop.f32.mrb[126].mxu1  ;;  %v562_v34 = vld [vmem:[%s6722_s9 + $0x8] sm:$0xff] }
 0xae4   : > { %7048 = vst [vmem:[#allocation30_spill] sm:$0xff] %v6491_v4  ;;  %v6493_v6 = vpop.f32.mrb[127].mxu1 }
 0xae5   : > { %7049 = vst [vmem:[#allocation31_spill] sm:$0xff] %v6493_v6  ;;  %v3480_v37 = vmax.f32 %v6491_v4, %v6493_v6  ;;  %3478 = vmax.xlane.f32.xlu1 %v3477_v48 }
 0xae7   : > { %3481 = vmax.xlane.f32.xlu0 %v3480_v37 }
 0xae9   : > { %v6497_v7 = vpop.f32.mrb[128].mxu1 }
 0xaea   : > { %7050 = vst [vmem:[#allocation32_spill] sm:$0xff] %v6497_v7  ;;  %v6499_v18 = vpop.f32.mrb[129].mxu1 }
 0xaeb   : > { %7051 = vst [vmem:[#allocation33_spill] sm:$0xff] %v6499_v18  ;;  %v3483_v1 = vmax.f32 %v6497_v7, %v6499_v18  ;;  %v6503_v47 = vpop.f32.mrb[130].mxu1 }
 0xaec   : > { %7052 = vst [vmem:[#allocation34_spill] sm:$0xff] %v6503_v47  ;;  %v6505_v28 = vpop.f32.mrb[131].mxu1 }
 0xaed   : > { %7053 = vst [vmem:[#allocation35_spill] sm:$0xff] %v6505_v28  ;;  %v3486_v14 = vmax.f32 %v6503_v47, %v6505_v28  ;;  %3484 = vmax.xlane.f32.xlu1 %v3483_v1  ;;  %v3783_v1 = vld [vmem:[%s6724_s11 + $0x8] sm:$0xff] }
 0xaef   : > { %3487 = vmax.xlane.f32.xlu0 %v3486_v14  ;;  %v1010_v14 = vld [vmem:[%s6720_s7 + $0x38] sm:$0xff] }
 0xaf1   : > { %v6509_v45 = vpop.f32.mrb[132].mxu1 }
 0xaf2   : > { %7054 = vst [vmem:[#allocation36_spill] sm:$0xff] %v6509_v45  ;;  %v6511_v48 = vpop.f32.mrb[133].mxu1 }
 0xaf3   : > { %7055 = vst [vmem:[#allocation37_spill] sm:$0xff] %v6511_v48  ;;  %v3489_v37 = vmax.f32 %v6509_v45, %v6511_v48  ;;  %v6515_v6 = vpop.f32.mrb[134].mxu1  ;;  %v3782_v45 = vld [vmem:[%s6724_s11] sm:$0xff] }
 0xaf4   : > { %7056 = vst [vmem:[#allocation38_spill] sm:$0xff] %v6515_v6  ;;  %v6517_v4 = vpop.f32.mrb[135].mxu1 }
 0xaf5   : > { %7057 = vst [vmem:[#allocation39_spill] sm:$0xff] %v6517_v4  ;;  %v3492_v18 = vmax.f32 %v6515_v6, %v6517_v4  ;;  %3490 = vmax.xlane.f32.xlu1 %v3489_v37 }
 0xaf7   : > { %3493 = vmax.xlane.f32.xlu0 %v3492_v18  ;;  %v3784_v18 = vld [vmem:[%s6724_s11 + $0x10] sm:$0xff] }
 0xb06   : > { %1048 = vperm.xlu1 %4244, %v1010_v14   ;;  %v561_v14 = vld [vmem:[%s6722_s9] sm:$0xff] }
 0xb07   : > { %v645_v31 = vadd.f32 %v7058_v43, %v561_v14  ;;  %v564_v43 = vld [vmem:[%s6722_s9 + $0x18] sm:$0xff] }
 0xb0a   : > { %3793 = vperm.xlu1 %4244, %v3783_v1   ;;  %v3401_v48 = vpop.xlane.xlu0 %3400 }
 0xb0b   : > { %v3495_v28 = vsub.f32 %v6323_v29, %v3401_v48  ;;  %v3496_v37 = vsub.f32 %v6325_v54, %v3401_v48  ;;  %v3785_v29 = vld [vmem:[%s6724_s11 + $0x18] sm:$0xff] }
 0xb0c   : > { %v3404_v4 = vpop.xlane.xlu1 %3403 }
 0xb0d   : > { %v3559_v6 = vmul.f32 1.442695, %v3495_v28  ;;  %v3497_v1 = vsub.f32 %v6329_v2, %v3404_v4  ;;  %v3498_v47 = vsub.f32 %v6331_v55, %v3404_v4  ;;  %3788 = vperm.xlu0 %4243, %v3782_v45   ;;  %v3561_v54 = vmul.f32 1.442695, %v3496_v37  ;;  %v563_v28 = vld [vmem:[%s6722_s9 + $0x10] sm:$0xff]  ;;  %v7059_v55 = vld [vmem:[#allocation5_spill] sm:$0xff] }
 0xb0e   : > { %3798 = vperm.xlu1 %4244, %v3784_v18   ;;  %v650_v45 = vadd.f32 %v7059_v55, %v562_v34 }
 0xb0f   : > { %v3563_v48 = vmul.f32 1.442695, %v3497_v1  ;;  %v3565_v7 = vmul.f32 1.442695, %v3498_v47  ;;  %4657 = vpow2.f32 %v3559_v6  ;;  %v7060_v6 = vld [vmem:[#allocation8_spill] sm:$0xff] }
 0xb10   : > { %v655_v37 = vadd.f32 %v7060_v6, %v563_v28 }
 0xb11   : > { %4659 = vpow2.f32 %v3563_v48  ;;  %3803 = vperm.xlu0 %4243, %v3785_v29  }
 0xb12   : > { %4661 = vpow2.f32 %v3565_v7  ;;  %3877 = vperm.xlu1 %4244, %v645_v31   ;;  %v3407_v2 = vpop.xlane.xlu0 %3406  ;;  %v7061_v31 = vld [vmem:[#allocation7_spill] sm:$0xff] }
 0xb13   : > { %4663 = vpow2.f32 %v3561_v54  ;;  %v3499_v47 = vsub.f32 %v6337_v17, %v3407_v2  ;;  %v3500_v4 = vsub.f32 %v6341_v33, %v3407_v2  ;;  %v660_v1 = vadd.f32 %v7061_v31, %v564_v43 }
 0xb15   : > { %v3567_v18 = vmul.f32 1.442695, %v3499_v47  ;;  %3882 = vperm.xlu0 %4243, %v650_v45   ;;  %v3569_v14 = vmul.f32 1.442695, %v3500_v4 }
 0xb16   : > { %3887 = vperm.xlu1 %4244, %v655_v37   ;;  %v3410_v7 = vpop.xlane.xlu0 %3409 }
 0xb17   : > { %v3501_v34 = vsub.f32 %v6347_v57, %v3410_v7  ;;  %v3502_v29 = vsub.f32 %v6349_v10, %v3410_v7  ;;  %4665 = vpow2.f32 %v3567_v18 }
 0xb18   : > { %4667 = vpow2.f32 %v3569_v14 }
 0xb19   : > { %v3571_v17 = vmul.f32 1.442695, %v3501_v34  ;;  %v3573_v33 = vmul.f32 1.442695, %v3502_v29  ;;  %3892 = vperm.xlu0 %4243, %v660_v1   ;;  %v4658_v54 = vpop.eup %4657 }
 0xb1a   : > { %v3413_v48 = vpop.xlane.xlu1 %3412 }
 0xb1b   : > { %v4660_v2 = vpop.eup %4659  ;;  %4669 = vpow2.f32 %v3571_v17  ;;  %v3503_v28 = vsub.f32 %v6353_v44, %v3413_v48  ;;  %v3504_v55 = vsub.f32 %v6355_v49, %v3413_v48 }
 0xb1c   : > { %v4662_v45 = vpop.eup %4661  ;;  %4671 = vpow2.f32 %v3573_v33  ;;  %v3416_v47 = vpop.xlane.xlu0 %3415  ;;  %v3687_v4 = vpack.c.bf16 %v4660_v2, %v4658_v54 }
 0xb1d   : > { %v4664_v57 = vpop.eup %4663  ;;  %v3575_v43 = vmul.f32 1.442695, %v3503_v28  ;;  %v3505_v10 = vsub.f32 %v6359_v13, %v3416_v47  ;;  %v3506_v6 = vsub.f32 %v6361_v58, %v3416_v47  ;;  %v3577_v18 = vmul.f32 1.442695, %v3504_v55 }
 0xb1e   : > { %v3688_v37 = vpack.c.bf16 %v4662_v45, %v4664_v57 }
 0xb1f   : > { %v3579_v14 = vmul.f32 1.442695, %v3505_v10  ;;  %v3581_v7 = vmul.f32 1.442695, %v3506_v6  ;;  %4673 = vpow2.f32 %v3575_v43 }
 0xb20   : > { %3719 = vmatprep.subr.bf16.mxu0 %v3688_v37 }
 0xb21   : > { %4675 = vpow2.f32 %v3579_v14  ;;  %3720 = vmatpush1.bf16.xpose.msra.mxu0 %v3687_v4  ;;  %v4666_v49 = vpop.eup %4665 }
 0xb22   : > { %4677 = vpow2.f32 %v3581_v7  ;;  %v3419_v44 = vpop.xlane.xlu1 %3418  ;;  %v4668_v34 = vpop.eup %4667 }
 0xb23   : > { %4679 = vpow2.f32 %v3577_v18  ;;  %v3507_v31 = vsub.f32 %v6365_v39, %v3419_v44  ;;  %v3508_v1 = vsub.f32 %v6367_v50, %v3419_v44 }
 0xb24   : > { %v3422_v13 = vpop.xlane.xlu0 %3421 }
 0xb25   : > { %v4670_v29 = vpop.eup %4669  ;;  %v3583_v58 = vmul.f32 1.442695, %v3507_v31  ;;  %v3509_v17 = vsub.f32 %v6371_v16, %v3422_v13  ;;  %v3510_v33 = vsub.f32 %v6373_v51, %v3422_v13  ;;  %v3585_v2 = vmul.f32 1.442695, %v3508_v1 }
 0xb26   : > { %v4672_v54 = vpop.eup %4671  ;;  %v3689_v48 = vpack.c.bf16 %v4670_v29, %v4666_v49 }
 0xb27   : > { %v3587_v28 = vmul.f32 1.442695, %v3509_v17  ;;  %v3589_v55 = vmul.f32 1.442695, %v3510_v33  ;;  %v3690_v45 = vpack.c.bf16 %v4672_v54, %v4668_v34  ;;  %4681 = vpow2.f32 %v3583_v58 }
 0xb29   : > { %4683 = vpow2.f32 %v3587_v28  ;;  %3721 = vmatprep.subr.bf16.mxu0 %v3690_v45  ;;  %v4674_v39 = vpop.eup %4673 }
 0xb2a   : > { %4685 = vpow2.f32 %v3589_v55  ;;  %3722 = vmatpush1.bf16.xpose.msra.mxu0 %v3689_v48  ;;  %v3425_v50 = vpop.xlane.xlu1 %3424 }
 0xb2b   : > { %v4676_v47 = vpop.eup %4675  ;;  %4687 = vpow2.f32 %v3585_v2  ;;  %v3511_v4 = vsub.f32 %v6377_v23, %v3425_v50  ;;  %v3512_v16 = vsub.f32 %v6379_v52, %v3425_v50 }
 0xb2c   : > { %v4678_v51 = vpop.eup %4677  ;;  %v3428_v57 = vpop.xlane.xlu0 %3427  ;;  %v3691_v43 = vpack.c.bf16 %v4676_v47, %v4674_v39 }
 0xb2d   : > { %v4680_v10 = vpop.eup %4679  ;;  %v3591_v6 = vmul.f32 1.442695, %v3511_v4  ;;  %v3513_v37 = vsub.f32 %v6383_v59, %v3428_v57  ;;  %v3514_v18 = vsub.f32 %v6385_v36, %v3428_v57  ;;  %v3593_v7 = vmul.f32 1.442695, %v3512_v16 }
 0xb2e   : > { %v3692_v14 = vpack.c.bf16 %v4678_v51, %v4680_v10 }
 0xb2f   : > { %v3595_v44 = vmul.f32 1.442695, %v3513_v37  ;;  %v3597_v49 = vmul.f32 1.442695, %v3514_v18  ;;  %4689 = vpow2.f32 %v3591_v6 }
 0xb30   : > { %3723 = vmatprep.subr.bf16.mxu0 %v3692_v14 }
 0xb31   : > { %4691 = vpow2.f32 %v3595_v44  ;;  %v4682_v31 = vpop.eup %4681 }
 0xb32   : > { %4693 = vpow2.f32 %v3597_v49  ;;  %3724 = vmatpush1.bf16.xpose.msra.mxu0 %v3691_v43  ;;  %v3431_v23 = vpop.xlane.xlu1 %3430 }
 0xb33   : > { %v4684_v52 = vpop.eup %4683  ;;  %4695 = vpow2.f32 %v3593_v7  ;;  %v3515_v1 = vsub.f32 %v6389_v22, %v3431_v23  ;;  %v3516_v34 = vsub.f32 %v6391_v3, %v3431_v23 }
 0xb34   : > { %v4686_v59 = vpop.eup %4685  ;;  %v3434_v13 = vpop.xlane.xlu0 %3433  ;;  %v3693_v36 = vpack.c.bf16 %v4684_v52, %v4682_v31 }
 0xb35   : > { %v4688_v29 = vpop.eup %4687  ;;  %v3599_v58 = vmul.f32 1.442695, %v3515_v1  ;;  %v3517_v17 = vsub.f32 %v6395_v42, %v3434_v13  ;;  %v3518_v33 = vsub.f32 %v6397_v60, %v3434_v13  ;;  %v3601_v48 = vmul.f32 1.442695, %v3516_v34 }
 0xb36   : > { %v3694_v54 = vpack.c.bf16 %v4686_v59, %v4688_v29 }
 0xb37   : > { %v3603_v2 = vmul.f32 1.442695, %v3517_v17  ;;  %v3605_v28 = vmul.f32 1.442695, %v3518_v33  ;;  %4697 = vpow2.f32 %v3599_v58 }
 0xb38   : > { %3725 = vmatprep.subr.bf16.mxu0 %v3694_v54 }
 0xb39   : > { %4699 = vpow2.f32 %v3603_v2  ;;  %v4690_v55 = vpop.eup %4689 }
 0xb3a   : > { %4701 = vpow2.f32 %v3605_v28  ;;  %3726 = vmatpush1.bf16.xpose.msra.mxu0 %v3693_v36  ;;  %v3437_v22 = vpop.xlane.xlu1 %3436 }
 0xb3b   : > { %v4692_v3 = vpop.eup %4691  ;;  %4703 = vpow2.f32 %v3601_v48  ;;  %v3519_v45 = vsub.f32 %v6401_v0, %v3437_v22  ;;  %v3520_v39 = vsub.f32 %v6403_v63, %v3437_v22 }
 0xb3c   : > { %v4694_v42 = vpop.eup %4693  ;;  %v3440_v50 = vpop.xlane.xlu0 %3439  ;;  %v3695_v60 = vpack.c.bf16 %v4692_v3, %v4690_v55 }
 0xb3d   : > { %v4696_v47 = vpop.eup %4695  ;;  %v3607_v4 = vmul.f32 1.442695, %v3519_v45  ;;  %v3521_v16 = vsub.f32 %v6407_v8, %v3440_v50  ;;  %v3522_v51 = vsub.f32 %v6409_v5, %v3440_v50  ;;  %v3609_v43 = vmul.f32 1.442695, %v3520_v39 }
 0xb3e   : > { %v3696_v57 = vpack.c.bf16 %v4694_v42, %v4696_v47 }
 0xb3f   : > { %v3611_v10 = vmul.f32 1.442695, %v3521_v16  ;;  %v3613_v6 = vmul.f32 1.442695, %v3522_v51  ;;  %4705 = vpow2.f32 %v3607_v4 }
 0xb40   : > { %3727 = vmatprep.subr.bf16.mxu0 %v3696_v57 }
 0xb41   : > { %4707 = vpow2.f32 %v3611_v10  ;;  %v4698_v37 = vpop.eup %4697 }
 0xb42   : > { %4709 = vpow2.f32 %v3613_v6  ;;  %3728 = vmatpush1.bf16.xpose.msra.mxu0 %v3695_v60  ;;  %v3443_v0 = vpop.xlane.xlu1 %3442 }
 0xb43   : > { %v4700_v63 = vpop.eup %4699  ;;  %4711 = vpow2.f32 %v3609_v43  ;;  %v3523_v18 = vsub.f32 %v6413_v30, %v3443_v0  ;;  %v3524_v14 = vsub.f32 %v6415_v25, %v3443_v0 }
 0xb44   : > { %v4702_v8 = vpop.eup %4701  ;;  %v3446_v7 = vpop.xlane.xlu0 %3445  ;;  %v3697_v5 = vpack.c.bf16 %v4700_v63, %v4698_v37 }
 0xb45   : > { %v4704_v44 = vpop.eup %4703  ;;  %v3615_v49 = vmul.f32 1.442695, %v3523_v18  ;;  %v3525_v31 = vsub.f32 %v6419_v26, %v3446_v7  ;;  %v3526_v23 = vsub.f32 %v6421_v35, %v3446_v7  ;;  %v3617_v1 = vmul.f32 1.442695, %v3524_v14 }
 0xb46   : > { %v3698_v52 = vpack.c.bf16 %v4702_v8, %v4704_v44 }
 0xb47   : > { %v3619_v34 = vmul.f32 1.442695, %v3525_v31  ;;  %v3621_v59 = vmul.f32 1.442695, %v3526_v23  ;;  %4713 = vpow2.f32 %v3615_v49 }
 0xb48   : > { %3729 = vmatprep.subr.bf16.mxu0 %v3698_v52 }
 0xb49   : > { %4715 = vpow2.f32 %v3619_v34  ;;  %v4706_v13 = vpop.eup %4705 }
 0xb4a   : > { %4717 = vpow2.f32 %v3621_v59  ;;  %3730 = vmatpush1.bf16.xpose.msra.mxu0 %v3697_v5  ;;  %v3449_v30 = vpop.xlane.xlu1 %3448 }
 0xb4b   : > { %v4708_v25 = vpop.eup %4707  ;;  %4719 = vpow2.f32 %v3617_v1  ;;  %v3527_v36 = vsub.f32 %v6425_v15, %v3449_v30  ;;  %v3528_v29 = vsub.f32 %v6427_v62, %v3449_v30 }
 0xb4c   : > { %v4710_v26 = vpop.eup %4709  ;;  %v3452_v58 = vpop.xlane.xlu0 %3451  ;;  %v3699_v35 = vpack.c.bf16 %v4708_v25, %v4706_v13 }
 0xb4d   : > { %v4712_v17 = vpop.eup %4711  ;;  %v3623_v33 = vmul.f32 1.442695, %v3527_v36  ;;  %v3529_v54 = vsub.f32 %v6431_v61, %v3452_v58  ;;  %v3530_v48 = vsub.f32 %v6433_v41, %v3452_v58  ;;  %v3625_v28 = vmul.f32 1.442695, %v3528_v29 }
 0xb4e   : > { %v3700_v2 = vpack.c.bf16 %v4710_v26, %v4712_v17 }
 0xb4f   : > { %v3627_v55 = vmul.f32 1.442695, %v3529_v54  ;;  %v3629_v22 = vmul.f32 1.442695, %v3530_v48  ;;  %4721 = vpow2.f32 %v3623_v33 }
 0xb50   : > { %3731 = vmatprep.subr.bf16.mxu0 %v3700_v2  ;;  %v7062_v2 = vld [vmem:[#allocation18_spill] sm:$0xff] }
 0xb51   : > { %4723 = vpow2.f32 %v3627_v55  ;;  %v4714_v3 = vpop.eup %4713  ;;  %v7063_v55 = vld [vmem:[#allocation9_spill] sm:$0xff] }
 0xb52   : > { %4725 = vpow2.f32 %v3629_v22  ;;  %3732 = vmatpush1.bf16.xpose.msra.mxu0 %v3699_v35  ;;  %v3455_v15 = vpop.xlane.xlu1 %3454 }
 0xb53   : > { %v4716_v62 = vpop.eup %4715  ;;  %4727 = vpow2.f32 %v3625_v28  ;;  %v3531_v45 = vsub.f32 %v6437_v11, %v3455_v15  ;;  %v3532_v39 = vsub.f32 %v6439_v21, %v3455_v15 }
 0xb54   : > { %v4718_v61 = vpop.eup %4717  ;;  %v3458_v42 = vpop.xlane.xlu0 %3457  ;;  %v3701_v41 = vpack.c.bf16 %v4716_v62, %v4714_v3 }
 0xb55   : > { %v4720_v50 = vpop.eup %4719  ;;  %v3631_v60 = vmul.f32 1.442695, %v3531_v45  ;;  %v3533_v47 = vsub.f32 %v6443_v19, %v3458_v42  ;;  %v3534_v4 = vsub.f32 %v6445_v32, %v3458_v42  ;;  %v3633_v51 = vmul.f32 1.442695, %v3532_v39 }
 0xb56   : > { %v3702_v16 = vpack.c.bf16 %v4718_v61, %v4720_v50  ;;  %v7064_v61 = vld [vmem:[#allocation28_spill] sm:$0xff] }
 0xb57   : > { %v3635_v57 = vmul.f32 1.442695, %v3533_v47  ;;  %v3637_v43 = vmul.f32 1.442695, %v3534_v4  ;;  %4729 = vpow2.f32 %v3631_v60 }
 0xb58   : > { %3733 = vmatprep.subr.bf16.mxu0 %v3702_v16 }
 0xb59   : > { %4731 = vpow2.f32 %v3635_v57  ;;  %v4722_v10 = vpop.eup %4721  ;;  %v7066_v57 = vld [vmem:[#allocation30_spill] sm:$0xff] }
 0xb5a   : > { %4733 = vpow2.f32 %v3637_v43  ;;  %3734 = vmatpush1.bf16.xpose.msra.mxu0 %v3701_v41  ;;  %v3461_v11 = vpop.xlane.xlu1 %3460  ;;  %v7065_v41 = vld [vmem:[#allocation29_spill] sm:$0xff] }
 0xb5b   : > { %v4724_v21 = vpop.eup %4723  ;;  %4735 = vpow2.f32 %v3633_v51  ;;  %v3535_v6 = vsub.f32 %v6449_v46, %v3461_v11  ;;  %v3536_v37 = vsub.f32 %v6451_v38, %v3461_v11 }
 0xb5c   : > { %v4726_v19 = vpop.eup %4725  ;;  %v3464_v0 = vpop.xlane.xlu0 %3463  ;;  %v3703_v32 = vpack.c.bf16 %v4724_v21, %v4722_v10  ;;  %v7067_v10 = vld [vmem:[#allocation31_spill] sm:$0xff] }
 0xb5d   : > { %v4728_v63 = vpop.eup %4727  ;;  %v3639_v18 = vmul.f32 1.442695, %v3535_v6  ;;  %v3537_v14 = vsub.f32 %v6455_v56, %v3464_v0  ;;  %v3538_v8 = vsub.f32 %v6457_v9, %v3464_v0  ;;  %v3641_v5 = vmul.f32 1.442695, %v3536_v37 }
 0xb5e   : > { %v3704_v7 = vpack.c.bf16 %v4726_v19, %v4728_v63 }
 0xb5f   : > { %v3643_v44 = vmul.f32 1.442695, %v3537_v14  ;;  %v3645_v49 = vmul.f32 1.442695, %v3538_v8  ;;  %4737 = vpow2.f32 %v3639_v18  ;;  %v7068_v18 = vld [vmem:[#allocation32_spill] sm:$0xff]  ;;  %v7069_v8 = vld [vmem:[#allocation33_spill] sm:$0xff] }
 0xb60   : > { %3735 = vmatprep.subr.bf16.mxu0 %v3704_v7 }
 0xb61   : > { %4739 = vpow2.f32 %v3643_v44  ;;  %v4730_v31 = vpop.eup %4729 }
 0xb62   : > { %4741 = vpow2.f32 %v3645_v49  ;;  %3736 = vmatpush1.bf16.xpose.msra.mxu0 %v3703_v32  ;;  %v3467_v46 = vpop.xlane.xlu1 %3466 }
 0xb63   : > { %v4732_v38 = vpop.eup %4731  ;;  %4743 = vpow2.f32 %v3641_v5  ;;  %v3539_v23 = vsub.f32 %v6461_v24, %v3467_v46  ;;  %v3540_v52 = vsub.f32 %v6463_v20, %v3467_v46 }
 0xb64   : > { %v4734_v56 = vpop.eup %4733  ;;  %v3470_v1 = vpop.xlane.xlu0 %3469  ;;  %v3705_v9 = vpack.c.bf16 %v4732_v38, %v4730_v31 }
 0xb65   : > { %v4736_v34 = vpop.eup %4735  ;;  %v3647_v59 = vmul.f32 1.442695, %v3539_v23  ;;  %v3541_v13 = vsub.f32 %v6467_v40, %v3470_v1  ;;  %v3542_v30 = vsub.f32 %v6469_v27, %v3470_v1  ;;  %v3649_v36 = vmul.f32 1.442695, %v3540_v52  ;;  %v7070_v23 = vld [vmem:[#allocation34_spill] sm:$0xff] }
 0xb66   : > { %v3706_v25 = vpack.c.bf16 %v4734_v56, %v4736_v34  ;;  %v7071_v56 = vld [vmem:[#allocation35_spill] sm:$0xff] }
 0xb67   : > { %v3651_v29 = vmul.f32 1.442695, %v3541_v13  ;;  %v3653_v26 = vmul.f32 1.442695, %v3542_v30  ;;  %4745 = vpow2.f32 %v3647_v59 }
 0xb68   : > { %3737 = vmatprep.subr.bf16.mxu0 %v3706_v25 }
 0xb69   : > { %4747 = vpow2.f32 %v3651_v29  ;;  %v4738_v58 = vpop.eup %4737 }
 0xb6a   : > { %4749 = vpow2.f32 %v3653_v26  ;;  %3738 = vmatpush1.bf16.xpose.msra.mxu0 %v3705_v9  ;;  %v3473_v24 = vpop.xlane.xlu1 %3472  ;;  %v7073_v26 = vld [vmem:[#allocation37_spill] sm:$0xff] }
 0xb6b   : > { %v4740_v20 = vpop.eup %4739  ;;  %4751 = vpow2.f32 %v3649_v36  ;;  %v3543_v35 = vsub.f32 %v6473_v53, %v3473_v24  ;;  %v3544_v17 = vsub.f32 %v6475_v12, %v3473_v24  ;;  %v7072_v36 = vld [vmem:[#allocation36_spill] sm:$0xff] }
 0xb6c   : > { %v4742_v40 = vpop.eup %4741  ;;  %v3476_v33 = vpop.xlane.xlu0 %3475  ;;  %v3707_v27 = vpack.c.bf16 %v4740_v20, %v4738_v58 }
 0xb6d   : > { %v4744_v54 = vpop.eup %4743  ;;  %v3655_v48 = vmul.f32 1.442695, %v3543_v35  ;;  %v3545_v28 = vsub.f32 %v7062_v2, %v3476_v33  ;;  %v3546_v22 = vsub.f32 %v7063_v55, %v3476_v33  ;;  %v3657_v15 = vmul.f32 1.442695, %v3544_v17 }
 0xb6e   : > { %v3708_v3 = vpack.c.bf16 %v4742_v40, %v4744_v54 }
 0xb6f   : > { %v3659_v62 = vmul.f32 1.442695, %v3545_v28  ;;  %v3661_v45 = vmul.f32 1.442695, %v3546_v22  ;;  %4753 = vpow2.f32 %v3655_v48  ;;  %v7075_v48 = vld [vmem:[#allocation39_spill] sm:$0xff] }
 0xb70   : > { %3739 = vmatprep.subr.bf16.mxu0 %v3708_v3 }
 0xb71   : > { %4755 = vpow2.f32 %v3659_v62  ;;  %v4746_v39 = vpop.eup %4745 }
 0xb72   : > { %4757 = vpow2.f32 %v3661_v45  ;;  %3740 = vmatpush1.bf16.xpose.msra.mxu0 %v3707_v27  ;;  %v3479_v53 = vpop.xlane.xlu1 %3478  ;;  %v7074_v27 = vld [vmem:[#allocation38_spill] sm:$0xff] }
 0xb73   : > { %v4748_v12 = vpop.eup %4747  ;;  %4759 = vpow2.f32 %v3657_v15  ;;  %v3547_v42 = vsub.f32 %v7064_v61, %v3479_v53  ;;  %v3548_v50 = vsub.f32 %v7065_v41, %v3479_v53  ;;  %v7076_v15 = vld [vmem:[#allocation23_spill] sm:$0xff]  ;;  %v7077_v53 = vmov 1.0  }
 0xb74   : > { %v4750_v60 = vpop.eup %4749  ;;  %v3482_v47 = vpop.xlane.xlu0 %3481  ;;  %v3709_v4 = vpack.c.bf16 %v4748_v12, %v4746_v39 }
 0xb75   : > { %v4752_v16 = vpop.eup %4751  ;;  %v3663_v51 = vmul.f32 1.442695, %v3547_v42  ;;  %v3549_v43 = vsub.f32 %v7066_v57, %v3482_v47  ;;  %v3550_v11 = vsub.f32 %v7067_v10, %v3482_v47  ;;  %v3665_v6 = vmul.f32 1.442695, %v3548_v50 }
 0xb76   : > { %v3710_v21 = vpack.c.bf16 %v4750_v60, %v4752_v16 }
 0xb77   : > { %v3667_v37 = vmul.f32 1.442695, %v3549_v43  ;;  %v3669_v19 = vmul.f32 1.442695, %v3550_v11  ;;  %4761 = vpow2.f32 %v3663_v51  ;;  %v7078_v43 = vld [vmem:[#allocation22_spill] sm:$0xff]  ;;  %v7079_v11 = vld [vmem:[#allocation27_spill] sm:$0xff] }
 0xb78   : > { %3741 = vmatprep.subr.bf16.mxu0 %v3710_v21  ;;  %v7080_v21 = vld [vmem:[#allocation26_spill] sm:$0xff] }
 0xb79   : > { %4763 = vpow2.f32 %v3667_v37  ;;  %v4754_v0 = vpop.eup %4753 }
 0xb7a   : > { %4765 = vpow2.f32 %v3669_v19  ;;  %3742 = vmatpush1.bf16.xpose.msra.mxu0 %v3709_v4  ;;  %v3485_v32 = vpop.xlane.xlu1 %3484  ;;  %v7082_v19 = vld [vmem:[#allocation16_spill] sm:$0xff] }
 0xb7b   : > { %v4756_v63 = vpop.eup %4755  ;;  %4767 = vpow2.f32 %v3665_v6  ;;  %v3551_v14 = vsub.f32 %v7068_v18, %v3485_v32  ;;  %v3552_v7 = vsub.f32 %v7069_v8, %v3485_v32  ;;  %v7081_v6 = vpack.c.bf16 %v7079_v11, %v7080_v21 }
 0xb7c   : > { %v4758_v5 = vpop.eup %4757  ;;  %v3488_v44 = vpop.xlane.xlu0 %3487  ;;  %v3711_v49 = vpack.c.bf16 %v4756_v63, %v4754_v0  ;;  %v7083_v0 = vld [vmem:[#allocation25_spill] sm:$0xff]  ;;  %v7085_v63 = vmov 0  }
 0xb7d   : > { %v4760_v31 = vpop.eup %4759  ;;  %v3671_v46 = vmul.f32 1.442695, %v3551_v14  ;;  %v3673_v38 = vmul.f32 1.442695, %v3552_v7  ;;  %v3553_v52 = vsub.f32 %v7070_v23, %v3488_v44  ;;  %v3554_v1 = vsub.f32 %v7071_v56, %v3488_v44 }
 0xb7e   : > { %v3712_v9 = vpack.c.bf16 %v4758_v5, %v4760_v31  ;;  %v7084_v32 = vpack.c.bf16 %v7082_v19, %v7083_v0  ;;  %v4795_v0 = vld [vmem:[%s4987_s17 + $0x30] sm:$0xff] }
 0xb7f   : > { %4769 = vpow2.f32 %v3671_v46  ;;  %v3675_v34 = vmul.f32 1.442695, %v3553_v52  ;;  %v3677_v59 = vmul.f32 1.442695, %v3554_v1  ;;  %v7087_v52 = vld [vmem:[#allocation13_spill] sm:$0xff]  ;;  %v7088_v1 = vld [vmem:[#allocation12_spill] sm:$0xff] }
 0xb80   : > { %4771 = vpow2.f32 %v3673_v38  ;;  %3743 = vmatprep.subr.bf16.mxu0 %v3712_v9 }
 0xb81   : > { %4773 = vpow2.f32 %v3675_v34  ;;  %v4762_v13 = vpop.eup %4761  ;;  %v4251_v34 = vld [vmem:[%s6723_s10] sm:$0xff]  }
 0xb82   : > { %4775 = vpow2.f32 %v3677_v59  ;;  %3744 = vmatpush1.bf16.xpose.msra.mxu0 %v3711_v49  ;;  %v3491_v30 = vpop.xlane.xlu1 %3490  ;;  %v7086_v49 = vld [vmem:[#allocation24_spill] sm:$0xff]  ;;  %v4252_v59 = vld [vmem:[%s6723_s10 + $0x8] sm:$0xff]  }
 0xb83   : > { %v4764_v25 = vpop.eup %4763  ;;  %v3555_v29 = vsub.f32 %v7072_v36, %v3491_v30  ;;  %v3556_v58 = vsub.f32 %v7073_v26, %v3491_v30 }
 0xb84   : > { %v4766_v24 = vpop.eup %4765  ;;  %v3494_v20 = vpop.xlane.xlu0 %3493  ;;  %v3713_v35 = vpack.c.bf16 %v4764_v25, %v4762_v13 }
 0xb85   : > { %v4768_v17 = vpop.eup %4767  ;;  %v3679_v40 = vmul.f32 1.442695, %v3555_v29  ;;  %v3681_v33 = vmul.f32 1.442695, %v3556_v58  ;;  %v3557_v54 = vsub.f32 %v7074_v27, %v3494_v20  ;;  %v3558_v2 = vsub.f32 %v7075_v48, %v3494_v20 }
 0xb86   : > { %v1049_v28 = vpop.permute.xlu1 %1048  ;;  %v3714_v55 = vpack.c.bf16 %v4766_v24, %v4768_v17 }
 0xb87   : > { %4777 = vpow2.f32 %v3679_v40  ;;  %v3683_v22 = vmul.f32 1.442695, %v3557_v54  ;;  %v3685_v3 = vmul.f32 1.442695, %v3558_v2  ;;  %v1154_v62 = vadd.f32 %v7076_v15, %v1049_v28  ;;  %v4789_v2 = vld [vmem:[%s4987_s17] sm:$0xff] }
 0xb88   : > { %4779 = vpow2.f32 %v3681_v33  ;;  %3745 = vmatprep.subr.bf16.mxu0 %v3714_v55  ;;  %v1152_v10 = vadd.f32 %v7078_v43, %v1049_v28 }
 0xb89   : > { %v4770_v45 = vpop.eup %4769  ;;  %4781 = vpow2.f32 %v3683_v22  ;;  %v3119_v12 = vpack.c.bf16 %v7077_v53, %v1154_v62  ;;  %v4790_v22 = vld [vmem:[%s4987_s17 + $0x8] sm:$0xff]  ;;  %v4791_v62 = vld [vmem:[%s4987_s17 + $0x10] sm:$0xff] }
 0xb8a   : > { %v4772_v39 = vpop.eup %4771  ;;  %4783 = vpow2.f32 %v3685_v3  ;;  %3746 = vmatpush1.bf16.xpose.msra.mxu0 %v3713_v35  ;;  %v3118_v37 = vpack.c.bf16 %v7077_v53, %v1152_v10  ;;  %v3794_v13 = vpop.permute.xlu1 %3793  ;;  %v4793_v10 = vld [vmem:[%s4987_s17 + $0x20] sm:$0xff] }
 0xb8b   : > { %v4774_v61 = vpop.eup %4773  ;;  %3751 = vmatprep.mubr.bf16.mxu0 %v3119_v12 }
 0xb8c   : > { %v4776_v42 = vpop.eup %4775  ;;  %v3715_v41 = vpack.c.bf16 %v4774_v61, %v4770_v45  ;;  %v3789_v30 = vpop.permute.xlu0 %3788 }
 0xb8d   : > { %v3716_v50 = vpack.c.bf16 %v4776_v42, %v4772_v39  ;;  %v4792_v39 = vld [vmem:[%s4987_s17 + $0x18] sm:$0xff] }
 0xb8e   : > { %v3799_v25 = vpop.permute.xlu1 %3798 }
 0xb8f   : > { %3747 = vmatprep.subr.bf16.mxu0 %v3716_v50 }
 0xb90   : > { %v3804_v36 = vpop.permute.xlu0 %3803 }
 0xb91   : > { %v4778_v60 = vpop.eup %4777 }
 0xb92   : > { %v4780_v47 = vpop.eup %4779  ;;  %3748 = vmatpush1.bf16.xpose.msra.mxu0 %v3715_v41  ;;  %v3878_v24 = vpop.permute.xlu1 %3877 }
 0xb93   : > { %v4782_v4 = vpop.eup %4781 }
 0xb94   : > { %v4784_v16 = vpop.eup %4783  ;;  %v3717_v51 = vpack.c.bf16 %v4782_v4, %v4778_v60  ;;  %v3883_v27 = vpop.permute.xlu0 %3882 }
 0xb95   : > { %v3718_v57 = vpack.c.bf16 %v4784_v16, %v4780_v47 }
 0xb96   : > { %v3888_v41 = vpop.permute.xlu1 %3887 }
 0xb97   : > { %3749 = vmatprep.subr.bf16.mxu0 %v3718_v57 }
 0xb9a   : > { %3750 = vmatpush1.bf16.xpose.msra.mxu0 %v3717_v51  ;;  %v3893_v51 = vpop.permute.xlu0 %3892 }
 0xb9b   : > { %3822 = vmatprep.subr.bf16.mxu0 %v7081_v6  ;;  %v4794_v6 = vld [vmem:[%s4987_s17 + $0x28] sm:$0xff] }
 0xba1   : > { %3752 = vmatmul.mubr.bf16.vlgmr.msra.gmra.mrb[184].mxu0 %v3118_v37 }
 0xba2   : > { %3823 = vmatpush1.bf16.msra.mxu0 %v7084_v32  ;;  %3854 = vmatprep.mubr.bf16.mxu0 %v7085_v63 }
 0xc74   : > { %v3753_v18 = vpop.f32.mrb[184].mxu0 }
 0xc75   : > { %v3755_v14 = vpop.f32.mrb[185].mxu0 }
 0xc76   : > { %v3757_v8 = vpop.f32.mrb[186].mxu0 }
 0xc77   : > { %4785 = vrcp.f32 %v3757_v8  ;;  %v3759_v7 = vpop.f32.mrb[187].mxu0 }
 0xc78   : > { %4787 = vrcp.f32 %v3759_v7 }
 0xc81   : > { %v4786_v5 = vpop.eup %4785 }
 0xc82   : > { %v4788_v44 = vpop.eup %4787  ;;  %v3767_v31 = vrot.slane %v4786_v5, %v7086_v49 }
 0xc83   : > { %v3771_v46 = vrot.slane %v4788_v44, %v7086_v49 }
 0xc84   : > { %v3772_v38 = vmul.f32 %v3767_v31, %v3753_v18 }
 0xc85   : > { %v3773_v23 = vmul.f32 %v3771_v46, %v3755_v14 }
 0xc86   : > { %v3776_v56 = vpack.c.bf16 %v3772_v38, %v7087_v52 }
 0xc87   : > { %v3777_v9 = vpack.c.bf16 %v3773_v23, %v7088_v1 }
 0xc89   : > { %3824 = vmatprep.subr.bf16.mxu0 %v3777_v9 }
 0xc8a   : > { %3825 = vmatpush1.bf16.msra.mxu0 %v3776_v56 }
 0xc8d   : > { %4103 = vmatmul.mubr.msk.bf16.vlgmr.msra.gmra.mrb[188].mxu0 %vm565_vm0, %v4251_v34 }
 0xc8e   : > { %3864 = vmatprep.mubr.bf16.mxu0 %v7085_v63  ;;  %v4796_v63 = vld [vmem:[%s4987_s17 + $0x38] sm:$0xff] }
 0xc95   : > { %4104 = vmatmul.mubr.msk.bf16.gmra.mrb[192].mxu0 %vm565_vm0, %v4252_v59 }
 0xd60   : > { %v3856_v29 = vpop.f32.mrb[188].mxu0 }
 0xd61   : > { %v3857_v26 = vadd.f32 %v3856_v29, %v3789_v30  ;;  %v3858_v58 = vpop.f32.mrb[189].mxu0 }
 0xd62   : > { %v3859_v20 = vadd.f32 %v3858_v58, %v3789_v30  ;;  %v3860_v35 = vpop.f32.mrb[190].mxu0 }
 0xd63   : > { %v3895_v17 = vadd.f32 %v3878_v24, %v3857_v26  ;;  %v3861_v40 = vadd.f32 %v3860_v35, %v3794_v13  ;;  %v3862_v33 = vpop.f32.mrb[191].mxu0 }
 0xd64   : > { %v3896_v54 = vadd.f32 %v3878_v24, %v3859_v20  ;;  %v3863_v48 = vadd.f32 %v3862_v33, %v3794_v13 }
 0xd65   : > { %v3903_v28 = vadd.f32 %v4789_v2, %v3895_v17  ;;  %v3897_v55 = vadd.f32 %v3883_v27, %v3861_v40 }
 0xd66   : > { %v3904_v3 = vadd.f32 %v4790_v22, %v3896_v54  ;;  %v3898_v15 = vadd.f32 %v3883_v27, %v3863_v48 }
 0xd67   : > { %3911 = vst [vmem:[%s6645_s3] sm:$0xff] %v3903_v28  ;;  %v3905_v45 = vadd.f32 %v4791_v62, %v3897_v55 }
 0xd68   : > { %3912 = vst [vmem:[%s6645_s3 + $0x8] sm:$0xff] %v3904_v3  ;;  %v3906_v53 = vadd.f32 %v4792_v39, %v3898_v15  ;;  %v3866_v12 = vpop.f32.mrb[192].mxu0 }
 0xd69   : > { %3913 = vst [vmem:[%s6645_s3 + $0x10] sm:$0xff] %v3905_v45  ;;  %v3867_v61 = vadd.f32 %v3866_v12, %v3799_v25  ;;  %v3868_v42 = vpop.f32.mrb[193].mxu0 }
 0xd6a   : > { %3914 = vst [vmem:[%s6645_s3 + $0x18] sm:$0xff] %v3906_v53  ;;  %v3869_v50 = vadd.f32 %v3868_v42, %v3799_v25  ;;  %v3870_v60 = vpop.f32.mrb[194].mxu0 }
 0xd6b   : > { %v3899_v47 = vadd.f32 %v3888_v41, %v3867_v61  ;;  %v3871_v4 = vadd.f32 %v3870_v60, %v3804_v36  ;;  %v3872_v16 = vpop.f32.mrb[195].mxu0 }
 0xd6c   : > { %v3900_v57 = vadd.f32 %v3888_v41, %v3869_v50  ;;  %v3873_v43 = vadd.f32 %v3872_v16, %v3804_v36 }
 0xd6d   : > { %v3907_v11 = vadd.f32 %v4793_v10, %v3899_v47  ;;  %v3901_v21 = vadd.f32 %v3893_v51, %v3871_v4 }
 0xd6e   : > { %v3908_v37 = vadd.f32 %v4794_v6, %v3900_v57  ;;  %v3902_v19 = vadd.f32 %v3893_v51, %v3873_v43 }
 0xd6f   : > { %3915 = vst [vmem:[%s6645_s3 + $0x20] sm:$0xff] %v3907_v11  ;;  %v3909_v32 = vadd.f32 %v4795_v0, %v3901_v21 }
 0xd70   : > { %3916 = vst [vmem:[%s6645_s3 + $0x28] sm:$0xff] %v3908_v37  ;;  %v3910_v18 = vadd.f32 %v4796_v63, %v3902_v19 }
 0xd71   : > { %3917 = vst [vmem:[%s6645_s3 + $0x30] sm:$0xff] %v3909_v32 }
 0xd72   : > { %3918 = vst [vmem:[%s6645_s3 + $0x38] sm:$0xff] %v3910_v18 }
 0xd73   : > { %4810 = shalt.err (!%p4807_p3)
}
 0xd74   : > { %s4811_s17 = scalar_lea.hbm %s6662_s27, 1024  ;;  %s4815_s25 = scalar_lea.hbm %s6725_s12, 2048 }
 0xd75   : > { %p4812_p4 = scmp.ne.s32.totalorder %s6662_s27, %s4811_s17  ;;  %p4816_p9 = scmp.lt.u32.totalorder %s6662_s27, %s6725_s12 }
 0xd76   : > { %p4817_p10 = scmp.lt.u32.totalorder %s4815_s25, %s4811_s17  ;;  %p4819_p12 = scmp.lt.u32.totalorder %s4811_s17, %s6662_s27 }
 0xd77   : > { %p4813_p7 = pnand %p4812_p4, %p4972_p5 }
 0xd78   : > { %p4818_p11 = por %p4817_p10, %p4816_p9 }
 0xd79   : > { %p4814_p8 = pneg %p4813_p7 }
 0xd7a   : > { %p4820_p13 = por %p4819_p12, %p4818_p11 }
 0xd7c   : > { %p4821_p0 = pnand %p4820_p13, %p4814_p8 }
 0xd7e   : > { %4824 = shalt.err (!%p4821_p0)
}
 0xd7f   : > { %s4867_s28 = smov 256   ;;  %s4868_s19 = smov 16  }
 0xd80   : > { %4196 = dma.vmem_to_hbm [thread:$0]  (%p4972_p5), %s6664_s18, 1024, %s6662_s27, %s6672_s24, %s4867_s28, %s4867_s28, %s4868_s19  }
 0xd81 PF: > { %p4202_p1 = scmp.ge.s32.totalorder %s4859_s23, 2  ;;  %s3948_s14 = sand.u32 1, %s4847_s20  }
 0xd82   : > { %s3949_s17 = scalar_lea.sflag [#allocation3], %s3948_s14 }
 0xd83   : > { %p4199_p2 = pnand %p4202_p1, %p4976_p6 }
 0xd85   : > { %4842 = dma.done.wait (!%p4199_p2), %s3949_s17, 1024  }
 0xd86   : > { %4844 = vsyncadd (!%p4199_p2), %s3949_s17, 4294966272  ;;  %p22_p3 = scmp.ge.s32.totalorder %s4959_s26, 4   ;;  %s7089_s20 = smov %s4851_s21 }
 0xd87   : > { %s7090_s21 = smov %s4855_s22  ;;  %s7091_s22 = smov %s4970_s29 }
 0xd88   : > { %s7092_s23 = smov %s4959_s26  ;;  %24 = sbr.rel (!%p22_p3) target bundleno = 3 (0x3), region = 103 }
 0xd8f   :  { %3954 = vsyncpa [#allocation3], 1 }
 0xd90   :  { %3956 = vsyncpa [#allocation3 + $0x1], 1 }

</bundles_post_ra>
